<compile_context>
chip_gen: v7x
topology: tpu7x:2x2x1
jax: 0.10.0
libtpu: 0.0.40
codegen_flags: <defaults>
</compile_context>

<pallas_src>
import functools

import jax
import jax.numpy as jnp
from jax.experimental import pallas as pl
from jax.experimental.pallas import tpu as pltpu


def _round_up(x, m):
    return (x + m - 1) // m * m


# -----------------------------------------------------------------------------
# Generation-aware VMEM budgets
# -----------------------------------------------------------------------------
@functools.lru_cache(maxsize=None)
def _vmem_capacity():
    try:
        info = pltpu.get_tpu_info()
        cap = getattr(info, "vmem_capacity_bytes", None)
        if cap:
            return int(cap)
    except Exception:
        pass
    return 64 * 1024 * 1024          # conservative (v7x per-TensorCore)


def _vmem_limit():
    # headroom for Mosaic internal scratch; 89.6 MiB on 128 MiB parts, 44.8 MiB on v7x
    return min(int(0.70 * _vmem_capacity()), 100 * 1024 * 1024)


def _tile_budget():
    return int(0.45 * _vmem_capacity())


# -----------------------------------------------------------------------------
# Pallas GEMM:  C = A @ B (+bias)(+ReLU)   bf16 operands, f32 accumulate, full-K
# -----------------------------------------------------------------------------
def _mm_kernel(relu, has_bias, *refs):
    if has_bias:
        a_ref, b_ref, bias_ref, o_ref = refs
    else:
        a_ref, b_ref, o_ref = refs
    r = jnp.dot(a_ref[...], b_ref[...], preferred_element_type=jnp.float32)
    if has_bias:
        r = r + bias_ref[...]
    if relu:
        r = jnp.maximum(r, 0.0)
    o_ref[...] = r.astype(o_ref.dtype)


@functools.lru_cache(maxsize=None)
def _build_matmul(Mp, K, N, TM, TN, relu, has_bias, out_dtype_name, vmem_limit):
    kernel = functools.partial(_mm_kernel, relu, has_bias)
    in_specs = [pl.BlockSpec((TM, K), lambda i, j: (i, 0)),
                pl.BlockSpec((K, TN), lambda i, j: (0, j))]
    if has_bias:
        in_specs.append(pl.BlockSpec((1, TN), lambda i, j: (0, j)))
    fn = pl.pallas_call(
        kernel,
        out_shape=jax.ShapeDtypeStruct((Mp, N), jnp.dtype(out_dtype_name)),
        grid_spec=pltpu.PrefetchScalarGridSpec(
            num_scalar_prefetch=0,
            grid=(Mp // TM, N // TN),
            in_specs=in_specs,
            out_specs=pl.BlockSpec((TM, TN), lambda i, j: (i, j)),
            scratch_shapes=[]),
        compiler_params=pltpu.CompilerParams(
            dimension_semantics=("parallel", "parallel"),
            vmem_limit_bytes=vmem_limit),
    )
    return jax.jit(fn)


_TM_CANDIDATES = (1024, 512, 256, 128, 64, 32, 16, 8)


def matmul_pallas(a, b, bias=None, relu=False, out_dtype=jnp.float32):
    """a: (M, K), b: (K, N), bias: (N,) or None."""
    M, K = a.shape
    K2, N = b.shape
    assert K == K2
    TN = N if N <= 256 else 256
    if N % TN:
        TN = N
    out_bytes = jnp.dtype(out_dtype).itemsize
    budget = _tile_budget()

    def tile_bytes(tm):
        # double-buffered bf16 A & B, double-buffered output, f32 epilogue temp, bias
        return (2 * tm * K * 2) + (2 * K * TN * 2) + (2 * tm * TN * out_bytes) \
            + tm * TN * 4 + TN * 4

    Mr = _round_up(M, 8)
    cands = [c for c in _TM_CANDIDATES if c <= Mr] or [8]
    TM = next((c for c in cands if tile_bytes(c) <= budget), None)
    if TM is None:
        # TODO(synk): extreme-K shapes would need a K-split accumulator path; fall back to XLA.
        r = jnp.dot(a.astype(jnp.float32), b.astype(jnp.float32))
        if bias is not None:
            r = r + bias
        if relu:
            r = jnp.maximum(r, 0.0)
        return r.astype(out_dtype)

    Mp = _round_up(M, TM)
    # keep >= 2 steps on a parallel axis so both v7x TensorCores get work
    if (Mp // TM) * (N // TN) < 2 and TM >= 16:
        TM //= 2
        Mp = _round_up(M, TM)

    a_p = a.astype(jnp.bfloat16)
    if Mp != M:
        a_p = jnp.pad(a_p, ((0, Mp - M), (0, 0)))
    b_p = b.astype(jnp.bfloat16)

    args = [a_p, b_p]
    has_bias = bias is not None
    if has_bias:
        args.append(bias.astype(jnp.float32).reshape(1, N))

    out = _build_matmul(Mp, K, N, TM, TN, bool(relu), has_bias,
                        jnp.dtype(out_dtype).name, _vmem_limit())(*args)
    if Mp != M:
        out = out[:M]
    return out


# -----------------------------------------------------------------------------
# Fused direct conv (3x3, stride 1, pad 1): no im2col HBM buffer.
# Grid (batch, cout-tiles); whole padded image resident in VMEM; 9 taps accumulated
# in-kernel with one small matmul per tap.
# -----------------------------------------------------------------------------
def _conv3x3_kernel(relu, has_bias, *refs):
    if has_bias:
        x_ref, w_ref, b_ref, o_ref = refs
    else:
        x_ref, w_ref, o_ref = refs
    _, Ho, Wo, TN = o_ref.shape
    C = x_ref.shape[3]
    acc = None
    for dh in range(3):
        for dw in range(3):
            xs = x_ref[0, dh:dh + Ho, dw:dw + Wo, :]          # (Ho, Wo, C)
            p = jnp.dot(xs.reshape(Ho * Wo, C), w_ref[dh, dw],
                        preferred_element_type=jnp.float32)
            acc = p if acc is None else acc + p
    if has_bias:
        acc = acc + b_ref[...]
    if relu:
        acc = jnp.maximum(acc, 0.0)
    o_ref[0] = acc.reshape(Ho, Wo, TN).astype(o_ref.dtype)


@functools.lru_cache(maxsize=None)
def _build_conv3x3(Nb, Hp, Wp, C, Ho, Wo, Cout, TN, relu, has_bias,
                   out_dtype_name, vmem_limit):
    kernel = functools.partial(_conv3x3_kernel, relu, has_bias)
    in_specs = [pl.BlockSpec((1, Hp, Wp, C), lambda n, j: (n, 0, 0, 0)),
                pl.BlockSpec((3, 3, C, TN), lambda n, j: (0, 0, 0, j))]
    if has_bias:
        in_specs.append(pl.BlockSpec((1, TN), lambda n, j: (0, j)))
    fn = pl.pallas_call(
        kernel,
        out_shape=jax.ShapeDtypeStruct((Nb, Ho, Wo, Cout), jnp.dtype(out_dtype_name)),
        grid_spec=pltpu.PrefetchScalarGridSpec(
            num_scalar_prefetch=0,
            grid=(Nb, Cout // TN),
            in_specs=in_specs,
            out_specs=pl.BlockSpec((1, Ho, Wo, TN), lambda n, j: (n, 0, 0, j)),
            scratch_shapes=[]),
        compiler_params=pltpu.CompilerParams(
            dimension_semantics=("parallel", "parallel"),
            vmem_limit_bytes=vmem_limit),
    )
    return jax.jit(fn)


def _conv3x3_fused(x_bf16, w_hwio, b, relu, out_dtype):
    N, H, W, C = x_bf16.shape
    cout = w_hwio.shape[3]
    TN = cout if cout <= 256 else 256
    xp = jnp.pad(x_bf16, ((0, 0), (1, 1), (1, 1), (0, 0)))
    args = [xp, w_hwio.astype(jnp.bfloat16)]
    has_bias = b is not None
    if has_bias:
        args.append(b.astype(jnp.float32).reshape(1, cout))
    fn = _build_conv3x3(N, H + 2, W + 2, C, H, W, cout, TN, bool(relu), has_bias,
                        jnp.dtype(out_dtype).name, _vmem_limit())
    return fn(*args)


def _fused3x3_ok(shape, cout, out_dtype):
    _, H, W, C = shape
    if W % 16 != 0:                       # keeps the in-kernel reshape sublane-exact
        return False
    TN = cout if cout <= 256 else 256
    if cout % TN != 0:
        return False
    ob = jnp.dtype(out_dtype).itemsize
    xblk = (H + 2) * (W + 2) * C * 2
    wblk = 9 * C * TN * 2
    oblk = H * W * TN * ob
    accb = H * W * TN * 4
    temps = 4 * H * W * C * 2
    return 2 * xblk + 2 * wblk + 2 * oblk + accb + temps <= _tile_budget()


_FUSED3X3_STATE = {"enabled": None}


def _fused3x3_enabled():
    """One-time probe; if the fused kernel fails to lower, fall back to im2col GEMM."""
    if _FUSED3X3_STATE["enabled"] is None:
        try:
            y = _conv3x3_fused(jnp.zeros((1, 16, 16, 64), jnp.bfloat16),
                               jnp.zeros((3, 3, 64, 64), jnp.float32),
                               jnp.zeros((64,), jnp.float32), True, jnp.bfloat16)
            jax.block_until_ready(y)
            _FUSED3X3_STATE["enabled"] = True
        except Exception:
            _FUSED3X3_STATE["enabled"] = False
    return _FUSED3X3_STATE["enabled"]


# -----------------------------------------------------------------------------
# im2col fallback path (7x7 stem, stride-2 convs, tiny-spatial convs, 1x1 convs)
# -----------------------------------------------------------------------------
def _im2col(x, kh, kw, stride, pad):
    """x NHWC -> (N*Ho*Wo, K_aligned); K alignment folded into the single concatenate."""
    N, H, W, C = x.shape
    xp = jnp.pad(x, ((0, 0), (pad, pad), (pad, pad), (0, 0))) if pad else x
    Ho = (H + 2 * pad - kh) // stride + 1
    Wo = (W + 2 * pad - kw) // stride + 1
    if kh == 1 and kw == 1:
        cols = xp[:, ::stride, ::stride, :] if stride > 1 else xp
        return cols.reshape(N * Ho * Wo, C), (N, Ho, Wo), C
    patches = []
    for i in range(kh):
        for j in range(kw):
            patches.append(xp[:, i:i + stride * Ho:stride, j:j + stride * Wo:stride, :])
    K = kh * kw * C
    Kp = _round_up(K, 128)
    if Kp != K:
        patches.append(jnp.zeros((N, Ho, Wo, Kp - K), x.dtype))
    cols = jnp.concatenate(patches, axis=-1)
    return cols.reshape(N * Ho * Wo, Kp), (N, Ho, Wo), K


def conv2d(x, w_hwio, b, stride, pad, relu=False, out_dtype=jnp.float32):
    kh, kw, cin, cout = w_hwio.shape
    xb = x.astype(jnp.bfloat16)
    if (kh == 3 and kw == 3 and stride == 1 and pad == 1
            and _fused3x3_ok(xb.shape, cout, out_dtype) and _fused3x3_enabled()):
        return _conv3x3_fused(xb, w_hwio, b, relu, out_dtype)
    cols, (N, Ho, Wo), K = _im2col(xb, kh, kw, stride, pad)
    wm = w_hwio.reshape(kh * kw * cin, cout)
    if cols.shape[1] != K:
        wm = jnp.pad(wm, ((0, cols.shape[1] - K), (0, 0)))
    y = matmul_pallas(cols, wm, bias=b, relu=relu, out_dtype=out_dtype)
    return y.reshape(N, Ho, Wo, cout)


def conv_transpose2x2(x, wm, b):
    """ConvTranspose2d(kernel=2, stride=2). wm: (Cin, 4*Cout) in (kh,kw,Cout) order."""
    N, H, W, cin = x.shape
    cout = wm.shape[1] // 4
    y = matmul_pallas(x.reshape(N * H * W, cin), wm, bias=jnp.tile(b, 4),
                      out_dtype=jnp.bfloat16)
    # TODO(synk): pixel-shuffle still goes through an XLA transpose (bf16 now); fusing
    # it into the next conv's input layout would remove that pass entirely.
    y = y.reshape(N, H, W, 2, 2, cout).transpose(0, 1, 3, 2, 4, 5)
    return y.reshape(N, 2 * H, 2 * W, cout)


# -----------------------------------------------------------------------------
# Fused BatchNorm apply (+ residual add)(+ ReLU), bf16 output.  Train-mode stats
# (biased variance) computed once in plain f32 JAX.
# -----------------------------------------------------------------------------
def _bn_kernel(relu, has_res, *refs):
    if has_res:
        x_ref, s_ref, t_ref, r_ref, o_ref = refs
    else:
        x_ref, s_ref, t_ref, o_ref = refs
    y = x_ref[...].astype(jnp.float32) * s_ref[...] + t_ref[...]
    if has_res:
        y = y + r_ref[...].astype(jnp.float32)
    if relu:
        y = jnp.maximum(y, 0.0)
    o_ref[...] = y.astype(o_ref.dtype)


@functools.lru_cache(maxsize=None)
def _build_bn(M, C, TM, relu, has_res, out_dtype_name, vmem_limit):
    kernel = functools.partial(_bn_kernel, relu, has_res)
    in_specs = [pl.BlockSpec((TM, C), lambda i: (i, 0)),
                pl.BlockSpec((1, C), lambda i: (0, 0)),
                pl.BlockSpec((1, C), lambda i: (0, 0))]
    if has_res:
        in_specs.append(pl.BlockSpec((TM, C), lambda i: (i, 0)))
    fn = pl.pallas_call(
        kernel,
        out_shape=jax.ShapeDtypeStruct((M, C), jnp.dtype(out_dtype_name)),
        grid_spec=pltpu.PrefetchScalarGridSpec(
            num_scalar_prefetch=0,
            grid=(M // TM,),
            in_specs=in_specs,
            out_specs=pl.BlockSpec((TM, C), lambda i: (i, 0)),
            scratch_shapes=[]),
        compiler_params=pltpu.CompilerParams(
            dimension_semantics=("parallel",),
            vmem_limit_bytes=vmem_limit),
    )
    return jax.jit(fn)


def batchnorm(x, gamma, beta, residual=None, relu=False,
              out_dtype=jnp.bfloat16, eps=1e-5):
    N, H, W, C = x.shape
    M = N * H * W
    x2 = x.reshape(M, C).astype(jnp.float32)
    mean = jnp.mean(x2, axis=0)
    var = jnp.maximum(jnp.mean(x2 * x2, axis=0) - mean * mean, 0.0)
    s = gamma * jax.lax.rsqrt(var + eps)
    t = beta - mean * s
    TM = 512 if (M > 512 and M % 512 == 0) else M
    args = [x2, s.reshape(1, C), t.reshape(1, C)]
    has_res = residual is not None
    if has_res:
        args.append(residual.reshape(M, C))
    y = _build_bn(M, C, TM, bool(relu), has_res,
                  jnp.dtype(out_dtype).name, _vmem_limit())(*args)
    return y.reshape(N, H, W, C)


def maxpool_3x3_s2_p1(x):
    N, H, W, C = x.shape
    xp = jnp.pad(x, ((0, 0), (1, 1), (1, 1), (0, 0)), constant_values=-jnp.inf)
    Ho = (H + 2 - 3) // 2 + 1
    Wo = (W + 2 - 3) // 2 + 1
    out = None
    for i in range(3):
        for j in range(3):
            s = xp[:, i:i + 2 * Ho:2, j:j + 2 * Wo:2, :]
            out = s if out is None else jnp.maximum(out, s)
    return out


# -----------------------------------------------------------------------------
# Network blocks
# -----------------------------------------------------------------------------
def residual_block(x, p, stride):
    out = conv2d(x, p['conv1_w'], None, stride, 1, out_dtype=jnp.float32)
    out = batchnorm(out, p['bn1_g'], p['bn1_b'], relu=True)             # -> bf16
    out = conv2d(out, p['conv2_w'], None, 1, 1, out_dtype=jnp.float32)
    if 'ds_w' in p:
        idn = conv2d(x, p['ds_w'], None, stride, 0, out_dtype=jnp.float32)
        idn = batchnorm(idn, p['ds_bn_g'], p['ds_bn_b'], relu=False)     # -> bf16
    else:
        idn = x
    return batchnorm(out, p['bn2_g'], p['bn2_b'], residual=idn, relu=True)


def run_layer(x, blocks, stride):
    x = residual_block(x, blocks[0], stride)
    for bp in blocks[1:]:
        x = residual_block(x, bp, 1)
    return x


def basic_block(x, p):
    x = conv2d(x, p['conv1_w'], p['conv1_b'], 1, 1, relu=True, out_dtype=jnp.bfloat16)
    x = conv2d(x, p['conv2_w'], p['conv2_b'], 1, 1, relu=True, out_dtype=jnp.bfloat16)
    return x


def forward(x_nchw, params):
    x = jnp.transpose(x_nchw, (0, 2, 3, 1)).astype(jnp.float32)   # NCHW -> NHWC

    # stem
    x = conv2d(x, params['conv1_w'], params['conv1_b'], stride=2, pad=3,
               out_dtype=jnp.float32)
    x = batchnorm(x, params['bn1_g'], params['bn1_b'], relu=True)
    x = maxpool_3x3_s2_p1(x)

    # encoder
    e1 = run_layer(x, params['layer1'], 1)
    e2 = run_layer(e1, params['layer2'], 2)
    e3 = run_layer(e2, params['layer3'], 2)
    e4 = run_layer(e3, params['layer4'], 2)
    e5 = run_layer(e4, params['bottleneck'], 2)

    # decoder
    d4 = conv_transpose2x2(e5, params['upconv4']['w'], params['upconv4']['b'])
    d4 = basic_block(jnp.concatenate([d4, e4], axis=-1), params['decoder4'])
    d3 = conv_transpose2x2(d4, params['upconv3']['w'], params['upconv3']['b'])
    d3 = basic_block(jnp.concatenate([d3, e3], axis=-1), params['decoder3'])
    d2 = conv_transpose2x2(d3, params['upconv2']['w'], params['upconv2']['b'])
    d2 = basic_block(jnp.concatenate([d2, e2], axis=-1), params['decoder2'])
    d1 = conv_transpose2x2(d2, params['upconv1']['w'], params['upconv1']['b'])
    d1 = basic_block(jnp.concatenate([d1, e1], axis=-1), params['decoder1'])

    # output head: upT -> block -> upT -> block -> 1x1 conv -> ReLU -> BN -> Softmax(C)
    o = conv_transpose2x2(d1, params['out_up1']['w'], params['out_up1']['b'])
    o = basic_block(o, params['out_block1'])
    o = conv_transpose2x2(o, params['out_up2']['w'], params['out_up2']['b'])
    o = basic_block(o, params['out_block2'])

    # 2-channel head on the VPU path: padding 2 channels to 128 MXU lanes is ~98% waste.
    ow = params['out_conv_w'].reshape(-1, params['out_conv_w'].shape[-1])
    o = jnp.einsum('nhwc,co->nhwo', o.astype(jnp.float32), ow) + params['out_conv_b']
    o = jnp.maximum(o, 0.0)
    mean = jnp.mean(o, axis=(0, 1, 2), keepdims=True)
    var = jnp.mean(jnp.square(o - mean), axis=(0, 1, 2), keepdims=True)
    o = (o - mean) * jax.lax.rsqrt(var + 1e-5) * params['out_bn_g'] + params['out_bn_b']
    o = jax.nn.softmax(o, axis=-1)                                # channel softmax (dim=1 NCHW)

    return jnp.transpose(o, (0, 3, 1, 2))                         # back to NCHW


# -----------------------------------------------------------------------------
# Deterministic parameter init (synthetic, He-scaled)
# -----------------------------------------------------------------------------
def _he_conv(key, kh, kw, cin, cout):
    std = (2.0 / (kh * kw * cin)) ** 0.5
    return (std * jax.random.normal(key, (kh, kw, cin, cout))).astype(jnp.float32)


def _init_resblock(keys, cin, cout, stride):
    p = {
        'conv1_w': _he_conv(next(keys), 3, 3, cin, cout),
        'bn1_g': jnp.ones((cout,), jnp.float32), 'bn1_b': jnp.zeros((cout,), jnp.float32),
        'conv2_w': _he_conv(next(keys), 3, 3, cout, cout),
        'bn2_g': jnp.ones((cout,), jnp.float32), 'bn2_b': jnp.zeros((cout,), jnp.float32),
    }
    if stride != 1 or cin != cout:
        p['ds_w'] = _he_conv(next(keys), 1, 1, cin, cout)
        p['ds_bn_g'] = jnp.ones((cout,), jnp.float32)
        p['ds_bn_b'] = jnp.zeros((cout,), jnp.float32)
    return p


def _init_layer(keys, cin, cout, blocks, stride):
    ps = [_init_resblock(keys, cin, cout, stride)]
    for _ in range(blocks - 1):
        ps.append(_init_resblock(keys, cout, cout, 1))
    return ps


def _init_upconv(keys, cin, cout):
    std = (2.0 / cin) ** 0.5
    w = std * jax.random.normal(next(keys), (cin, 2, 2, cout))
    return {'w': w.reshape(cin, 4 * cout).astype(jnp.float32),
            'b': jnp.zeros((cout,), jnp.float32)}


def _init_basicblock(keys, cin, cout):
    return {
        'conv1_w': _he_conv(next(keys), 3, 3, cin, cout),
        'conv1_b': jnp.zeros((cout,), jnp.float32),
        'conv2_w': _he_conv(next(keys), 3, 3, cout, cout),
        'conv2_b': jnp.zeros((cout,), jnp.float32),
    }


def init_params(key, in_channels, out_channels):
    keys = iter(jax.random.split(key, 128))
    return {
        'conv1_w': _he_conv(next(keys), 7, 7, in_channels, 64),
        'conv1_b': jnp.zeros((64,), jnp.float32),
        'bn1_g': jnp.ones((64,), jnp.float32),
        'bn1_b': jnp.zeros((64,), jnp.float32),
        'layer1': _init_layer(keys, 64, 64, 3, 1),
        'layer2': _init_layer(keys, 64, 128, 4, 2),
        'layer3': _init_layer(keys, 128, 256, 6, 2),
        'layer4': _init_layer(keys, 256, 512, 3, 2),
        'bottleneck': _init_layer(keys, 512, 1024, 3, 2),
        'upconv4': _init_upconv(keys, 1024, 512),
        'decoder4': _init_basicblock(keys, 1024, 512),
        'upconv3': _init_upconv(keys, 512, 256),
        'decoder3': _init_basicblock(keys, 512, 256),
        'upconv2': _init_upconv(keys, 256, 128),
        'decoder2': _init_basicblock(keys, 256, 128),
        'upconv1': _init_upconv(keys, 128, 64),
        'decoder1': _init_basicblock(keys, 128, 64),
        'out_up1': _init_upconv(keys, 64, 64),
        'out_block1': _init_basicblock(keys, 64, 64),
        'out_up2': _init_upconv(keys, 64, 64),
        'out_block2': _init_basicblock(keys, 64, 64),
        'out_conv_w': _he_conv(next(keys), 1, 1, 64, out_channels),
        'out_conv_b': jnp.zeros((out_channels,), jnp.float32),
        'out_bn_g': jnp.ones((out_channels,), jnp.float32),
        'out_bn_b': jnp.zeros((out_channels,), jnp.float32),
    }


if __name__ == "__main__":
    # Spatial size must be divisible by 64 (6 stride-2 stages) so the U-Net skip
    # connections line up, exactly as in the torch module.
    in_channels, out_channels = 3, 2
    key = jax.random.PRNGKey(0)
    pkey, xkey = jax.random.split(key)
    params = init_params(pkey, in_channels, out_channels)
    x = jax.random.normal(xkey, (2, in_channels, 64, 64), jnp.float32)

    _fused3x3_enabled()                      # resolve fused-conv availability up front

    out = jax.jit(forward)(x, params)
    out = jax.block_until_ready(out)

    assert out.shape == (2, out_channels, 64, 64)
    assert bool(jnp.all(jnp.isfinite(out)))
    print("KERNEL_OK")
</pallas_src>

<mosaic_0001>
module attributes {stable_mosaic.version = 11 : i64} {
  func.func @_conv3x3_kernel(%arg0: i32, %arg1: i32, %arg2: memref<1x18x18x64xbf16, #tpu.memory_space<vmem>>, %arg3: memref<3x3x64x64xbf16, #tpu.memory_space<vmem>>, %arg4: memref<1x64xf32, #tpu.memory_space<vmem>>, %arg5: memref<1x16x16x64xbf16, #tpu.memory_space<vmem>>) attributes {dimension_semantics = [#tpu.dimension_semantics<parallel>, #tpu.dimension_semantics<parallel>], iteration_bounds = array<i64: 1, 1>, scalar_prefetch = 0 : i64, scratch_operands = 0 : i64, tpu.core_type = #tpu.core_type<tc>, window_params = [{transform_indices = @transform_0, window_bounds = array<i64: 1, 18, 18, 64>}, {transform_indices = @transform_1, window_bounds = array<i64: 3, 3, 64, 64>}, {transform_indices = @transform_2, window_bounds = array<i64: 1, 64>}, {transform_indices = @transform_3, window_bounds = array<i64: 1, 16, 16, 64>}]} {
    %c0 = arith.constant 0 : index
    %c0_0 = arith.constant 0 : index
    %c0_1 = arith.constant 0 : index
    %c0_2 = arith.constant 0 : index
    %0 = vector.load %arg2[%c0, %c0_0, %c0_1, %c0_2] : memref<1x18x18x64xbf16, #tpu.memory_space<vmem>>, vector<1x16x16x64xbf16>
    %1 = vector.shape_cast %0 : vector<1x16x16x64xbf16> to vector<16x16x64xbf16>
    %2 = vector.shape_cast %1 : vector<16x16x64xbf16> to vector<256x64xbf16>
    %c0_3 = arith.constant 0 : index
    %c0_4 = arith.constant 0 : index
    %c0_5 = arith.constant 0 : index
    %c0_6 = arith.constant 0 : index
    %3 = vector.load %arg3[%c0_3, %c0_4, %c0_5, %c0_6] : memref<3x3x64x64xbf16, #tpu.memory_space<vmem>>, vector<1x1x64x64xbf16>
    %4 = vector.shape_cast %3 : vector<1x1x64x64xbf16> to vector<64x64xbf16>
    %cst = arith.constant dense<0.000000e+00> : vector<256x64xf32>
    %5 = tpu.matmul %2, %4, %cst {dimension_numbers = #tpu.dot_dimension_numbers<[1], [0], [0], [1], [0, 0, 1, 1], [], []>} : vector<256x64xbf16>, vector<64x64xbf16>, vector<256x64xf32> -> vector<256x64xf32>
    %c0_7 = arith.constant 0 : index
    %c0_8 = arith.constant 0 : index
    %c1 = arith.constant 1 : index
    %c0_9 = arith.constant 0 : index
    %6 = vector.load %arg2[%c0_7, %c0_8, %c1, %c0_9] : memref<1x18x18x64xbf16, #tpu.memory_space<vmem>>, vector<1x16x16x64xbf16>
    %7 = vector.shape_cast %6 : vector<1x16x16x64xbf16> to vector<16x16x64xbf16>
    %8 = vector.shape_cast %7 : vector<16x16x64xbf16> to vector<256x64xbf16>
    %c0_10 = arith.constant 0 : index
    %c1_11 = arith.constant 1 : index
    %c0_12 = arith.constant 0 : index
    %c0_13 = arith.constant 0 : index
    %9 = vector.load %arg3[%c0_10, %c1_11, %c0_12, %c0_13] : memref<3x3x64x64xbf16, #tpu.memory_space<vmem>>, vector<1x1x64x64xbf16>
    %10 = vector.shape_cast %9 : vector<1x1x64x64xbf16> to vector<64x64xbf16>
    %cst_14 = arith.constant dense<0.000000e+00> : vector<256x64xf32>
    %11 = tpu.matmul %8, %10, %cst_14 {dimension_numbers = #tpu.dot_dimension_numbers<[1], [0], [0], [1], [0, 0, 1, 1], [], []>} : vector<256x64xbf16>, vector<64x64xbf16>, vector<256x64xf32> -> vector<256x64xf32>
    %12 = arith.addf %5, %11 : vector<256x64xf32>
    %c0_15 = arith.constant 0 : index
    %c0_16 = arith.constant 0 : index
    %c2 = arith.constant 2 : index
    %c0_17 = arith.constant 0 : index
    %13 = vector.load %arg2[%c0_15, %c0_16, %c2, %c0_17] : memref<1x18x18x64xbf16, #tpu.memory_space<vmem>>, vector<1x16x16x64xbf16>
    %14 = vector.shape_cast %13 : vector<1x16x16x64xbf16> to vector<16x16x64xbf16>
    %15 = vector.shape_cast %14 : vector<16x16x64xbf16> to vector<256x64xbf16>
    %c0_18 = arith.constant 0 : index
    %c2_19 = arith.constant 2 : index
    %c0_20 = arith.constant 0 : index
    %c0_21 = arith.constant 0 : index
    %16 = vector.load %arg3[%c0_18, %c2_19, %c0_20, %c0_21] : memref<3x3x64x64xbf16, #tpu.memory_space<vmem>>, vector<1x1x64x64xbf16>
    %17 = vector.shape_cast %16 : vector<1x1x64x64xbf16> to vector<64x64xbf16>
    %cst_22 = arith.constant dense<0.000000e+00> : vector<256x64xf32>
    %18 = tpu.matmul %15, %17, %cst_22 {dimension_numbers = #tpu.dot_dimension_numbers<[1], [0], [0], [1], [0, 0, 1, 1], [], []>} : vector<256x64xbf16>, vector<64x64xbf16>, vector<256x64xf32> -> vector<256x64xf32>
    %19 = arith.addf %12, %18 : vector<256x64xf32>
    %c0_23 = arith.constant 0 : index
    %c1_24 = arith.constant 1 : index
    %c0_25 = arith.constant 0 : index
    %c0_26 = arith.constant 0 : index
    %20 = vector.load %arg2[%c0_23, %c1_24, %c0_25, %c0_26] : memref<1x18x18x64xbf16, #tpu.memory_space<vmem>>, vector<1x16x16x64xbf16>
    %21 = vector.shape_cast %20 : vector<1x16x16x64xbf16> to vector<16x16x64xbf16>
    %22 = vector.shape_cast %21 : vector<16x16x64xbf16> to vector<256x64xbf16>
    %c1_27 = arith.constant 1 : index
    %c0_28 = arith.constant 0 : index
    %c0_29 = arith.constant 0 : index
    %c0_30 = arith.constant 0 : index
    %23 = vector.load %arg3[%c1_27, %c0_28, %c0_29, %c0_30] : memref<3x3x64x64xbf16, #tpu.memory_space<vmem>>, vector<1x1x64x64xbf16>
    %24 = vector.shape_cast %23 : vector<1x1x64x64xbf16> to vector<64x64xbf16>
    %cst_31 = arith.constant dense<0.000000e+00> : vector<256x64xf32>
    %25 = tpu.matmul %22, %24, %cst_31 {dimension_numbers = #tpu.dot_dimension_numbers<[1], [0], [0], [1], [0, 0, 1, 1], [], []>} : vector<256x64xbf16>, vector<64x64xbf16>, vector<256x64xf32> -> vector<256x64xf32>
    %26 = arith.addf %19, %25 : vector<256x64xf32>
    %c0_32 = arith.constant 0 : index
    %c1_33 = arith.constant 1 : index
    %c1_34 = arith.constant 1 : index
    %c0_35 = arith.constant 0 : index
    %27 = vector.load %arg2[%c0_32, %c1_33, %c1_34, %c0_35] : memref<1x18x18x64xbf16, #tpu.memory_space<vmem>>, vector<1x16x16x64xbf16>
    %28 = vector.shape_cast %27 : vector<1x16x16x64xbf16> to vector<16x16x64xbf16>
    %29 = vector.shape_cast %28 : vector<16x16x64xbf16> to vector<256x64xbf16>
    %c1_36 = arith.constant 1 : index
    %c1_37 = arith.constant 1 : index
    %c0_38 = arith.constant 0 : index
    %c0_39 = arith.constant 0 : index
    %30 = vector.load %arg3[%c1_36, %c1_37, %c0_38, %c0_39] : memref<3x3x64x64xbf16, #tpu.memory_space<vmem>>, vector<1x1x64x64xbf16>
    %31 = vector.shape_cast %30 : vector<1x1x64x64xbf16> to vector<64x64xbf16>
    %cst_40 = arith.constant dense<0.000000e+00> : vector<256x64xf32>
    %32 = tpu.matmul %29, %31, %cst_40 {dimension_numbers = #tpu.dot_dimension_numbers<[1], [0], [0], [1], [0, 0, 1, 1], [], []>} : vector<256x64xbf16>, vector<64x64xbf16>, vector<256x64xf32> -> vector<256x64xf32>
    %33 = arith.addf %26, %32 : vector<256x64xf32>
    %c0_41 = arith.constant 0 : index
    %c1_42 = arith.constant 1 : index
    %c2_43 = arith.constant 2 : index
    %c0_44 = arith.constant 0 : index
    %34 = vector.load %arg2[%c0_41, %c1_42, %c2_43, %c0_44] : memref<1x18x18x64xbf16, #tpu.memory_space<vmem>>, vector<1x16x16x64xbf16>
    %35 = vector.shape_cast %34 : vector<1x16x16x64xbf16> to vector<16x16x64xbf16>
    %36 = vector.shape_cast %35 : vector<16x16x64xbf16> to vector<256x64xbf16>
    %c1_45 = arith.constant 1 : index
    %c2_46 = arith.constant 2 : index
    %c0_47 = arith.constant 0 : index
    %c0_48 = arith.constant 0 : index
    %37 = vector.load %arg3[%c1_45, %c2_46, %c0_47, %c0_48] : memref<3x3x64x64xbf16, #tpu.memory_space<vmem>>, vector<1x1x64x64xbf16>
    %38 = vector.shape_cast %37 : vector<1x1x64x64xbf16> to vector<64x64xbf16>
    %cst_49 = arith.constant dense<0.000000e+00> : vector<256x64xf32>
    %39 = tpu.matmul %36, %38, %cst_49 {dimension_numbers = #tpu.dot_dimension_numbers<[1], [0], [0], [1], [0, 0, 1, 1], [], []>} : vector<256x64xbf16>, vector<64x64xbf16>, vector<256x64xf32> -> vector<256x64xf32>
    %40 = arith.addf %33, %39 : vector<256x64xf32>
    %c0_50 = arith.constant 0 : index
    %c2_51 = arith.constant 2 : index
    %c0_52 = arith.constant 0 : index
    %c0_53 = arith.constant 0 : index
    %41 = vector.load %arg2[%c0_50, %c2_51, %c0_52, %c0_53] : memref<1x18x18x64xbf16, #tpu.memory_space<vmem>>, vector<1x16x16x64xbf16>
    %42 = vector.shape_cast %41 : vector<1x16x16x64xbf16> to vector<16x16x64xbf16>
    %43 = vector.shape_cast %42 : vector<16x16x64xbf16> to vector<256x64xbf16>
    %c2_54 = arith.constant 2 : index
    %c0_55 = arith.constant 0 : index
    %c0_56 = arith.constant 0 : index
    %c0_57 = arith.constant 0 : index
    %44 = vector.load %arg3[%c2_54, %c0_55, %c0_56, %c0_57] : memref<3x3x64x64xbf16, #tpu.memory_space<vmem>>, vector<1x1x64x64xbf16>
    %45 = vector.shape_cast %44 : vector<1x1x64x64xbf16> to vector<64x64xbf16>
    %cst_58 = arith.constant dense<0.000000e+00> : vector<256x64xf32>
    %46 = tpu.matmul %43, %45, %cst_58 {dimension_numbers = #tpu.dot_dimension_numbers<[1], [0], [0], [1], [0, 0, 1, 1], [], []>} : vector<256x64xbf16>, vector<64x64xbf16>, vector<256x64xf32> -> vector<256x64xf32>
    %47 = arith.addf %40, %46 : vector<256x64xf32>
    %c0_59 = arith.constant 0 : index
    %c2_60 = arith.constant 2 : index
    %c1_61 = arith.constant 1 : index
    %c0_62 = arith.constant 0 : index
    %48 = vector.load %arg2[%c0_59, %c2_60, %c1_61, %c0_62] : memref<1x18x18x64xbf16, #tpu.memory_space<vmem>>, vector<1x16x16x64xbf16>
    %49 = vector.shape_cast %48 : vector<1x16x16x64xbf16> to vector<16x16x64xbf16>
    %50 = vector.shape_cast %49 : vector<16x16x64xbf16> to vector<256x64xbf16>
    %c2_63 = arith.constant 2 : index
    %c1_64 = arith.constant 1 : index
    %c0_65 = arith.constant 0 : index
    %c0_66 = arith.constant 0 : index
    %51 = vector.load %arg3[%c2_63, %c1_64, %c0_65, %c0_66] : memref<3x3x64x64xbf16, #tpu.memory_space<vmem>>, vector<1x1x64x64xbf16>
    %52 = vector.shape_cast %51 : vector<1x1x64x64xbf16> to vector<64x64xbf16>
    %cst_67 = arith.constant dense<0.000000e+00> : vector<256x64xf32>
    %53 = tpu.matmul %50, %52, %cst_67 {dimension_numbers = #tpu.dot_dimension_numbers<[1], [0], [0], [1], [0, 0, 1, 1], [], []>} : vector<256x64xbf16>, vector<64x64xbf16>, vector<256x64xf32> -> vector<256x64xf32>
    %54 = arith.addf %47, %53 : vector<256x64xf32>
    %c0_68 = arith.constant 0 : index
    %c2_69 = arith.constant 2 : index
    %c2_70 = arith.constant 2 : index
    %c0_71 = arith.constant 0 : index
    %55 = vector.load %arg2[%c0_68, %c2_69, %c2_70, %c0_71] : memref<1x18x18x64xbf16, #tpu.memory_space<vmem>>, vector<1x16x16x64xbf16>
    %56 = vector.shape_cast %55 : vector<1x16x16x64xbf16> to vector<16x16x64xbf16>
    %57 = vector.shape_cast %56 : vector<16x16x64xbf16> to vector<256x64xbf16>
    %c2_72 = arith.constant 2 : index
    %c2_73 = arith.constant 2 : index
    %c0_74 = arith.constant 0 : index
    %c0_75 = arith.constant 0 : index
    %58 = vector.load %arg3[%c2_72, %c2_73, %c0_74, %c0_75] : memref<3x3x64x64xbf16, #tpu.memory_space<vmem>>, vector<1x1x64x64xbf16>
    %59 = vector.shape_cast %58 : vector<1x1x64x64xbf16> to vector<64x64xbf16>
    %cst_76 = arith.constant dense<0.000000e+00> : vector<256x64xf32>
    %60 = tpu.matmul %57, %59, %cst_76 {dimension_numbers = #tpu.dot_dimension_numbers<[1], [0], [0], [1], [0, 0, 1, 1], [], []>} : vector<256x64xbf16>, vector<64x64xbf16>, vector<256x64xf32> -> vector<256x64xf32>
    %61 = arith.addf %54, %60 : vector<256x64xf32>
    %c0_77 = arith.constant 0 : index
    %c0_78 = arith.constant 0 : index
    %62 = vector.load %arg4[%c0_77, %c0_78] : memref<1x64xf32, #tpu.memory_space<vmem>>, vector<1x64xf32>
    %63 = vector.broadcast %62 : vector<1x64xf32> to vector<256x64xf32>
    %64 = arith.addf %61, %63 : vector<256x64xf32>
    %cst_79 = arith.constant 0.000000e+00 : f32
    %65 = vector.broadcast %cst_79 : f32 to vector<256x64xf32>
    %66 = arith.maximumf %64, %65 : vector<256x64xf32>
    %67 = vector.shape_cast %66 : vector<256x64xf32> to vector<16x16x64xf32>
    %68 = arith.truncf %67 : vector<16x16x64xf32> to vector<16x16x64xbf16>
    %c0_80 = arith.constant 0 : index
    %c0_81 = arith.constant 0 : index
    %c0_82 = arith.constant 0 : index
    %c0_83 = arith.constant 0 : index
    %69 = vector.load %arg5[%c0_80, %c0_81, %c0_82, %c0_83] : memref<1x16x16x64xbf16, #tpu.memory_space<vmem>>, vector<1x16x16x64xbf16>
    %70 = vector.shape_cast %69 : vector<1x16x16x64xbf16> to vector<16x16x64xbf16>
    %71 = vector.shape_cast %68 : vector<16x16x64xbf16> to vector<1x16x16x64xbf16>
    tpu.vector_store %arg5[%c0_80, %c0_81, %c0_82, %c0_83], %71 {strides = array<i32>} : memref<1x16x16x64xbf16, #tpu.memory_space<vmem>>, vector<1x16x16x64xbf16>,
    return
  }
  func.func @transform_0(%arg0: i32, %arg1: i32) -> (i32, i32, i32, i32) {
    %c0_i32 = arith.constant 0 : i32
    %c0_i32_0 = arith.constant 0 : i32
    %c0_i32_1 = arith.constant 0 : i32
    %c0_i32_2 = arith.constant 0 : i32
    return %arg0, %c0_i32, %c0_i32_0, %c0_i32_1 : i32, i32, i32, i32
  }
  func.func @transform_1(%arg0: i32, %arg1: i32) -> (i32, i32, i32, i32) {
    %c0_i32 = arith.constant 0 : i32
    %c0_i32_0 = arith.constant 0 : i32
    %c0_i32_1 = arith.constant 0 : i32
    %c0_i32_2 = arith.constant 0 : i32
    return %c0_i32, %c0_i32_0, %c0_i32_1, %arg1 : i32, i32, i32, i32
  }
  func.func @transform_2(%arg0: i32, %arg1: i32) -> (i32, i32) {
    %c0_i32 = arith.constant 0 : i32
    %c0_i32_0 = arith.constant 0 : i32
    return %c0_i32, %arg1 : i32, i32
  }
  func.func @transform_3(%arg0: i32, %arg1: i32) -> (i32, i32, i32, i32) {
    %c0_i32 = arith.constant 0 : i32
    %c0_i32_0 = arith.constant 0 : i32
    %c0_i32_1 = arith.constant 0 : i32
    return %arg0, %c0_i32, %c0_i32_0, %arg1 : i32, i32, i32, i32
  }
}

module attributes {stable_mosaic.version = 11 : i64} {
  func.func @_mm_kernel(%arg0: i32, %arg1: i32, %arg2: memref<1024x256xbf16, #tpu.memory_space<vmem>>, %arg3: memref<256x64xbf16, #tpu.memory_space<vmem>>, %arg4: memref<1x64xf32, #tpu.memory_space<vmem>>, %arg5: memref<1024x64xf32, #tpu.memory_space<vmem>>) attributes {dimension_semantics = [#tpu.dimension_semantics<parallel>, #tpu.dimension_semantics<parallel>], iteration_bounds = array<i64: 2, 1>, scalar_prefetch = 0 : i64, scratch_operands = 0 : i64, tpu.core_type = #tpu.core_type<tc>, window_params = [{transform_indices = @transform_0, window_bounds = array<i64: 1024, 256>}, {transform_indices = @transform_1, window_bounds = array<i64: 256, 64>}, {transform_indices = @transform_2, window_bounds = array<i64: 1, 64>}, {transform_indices = @transform_3, window_bounds = array<i64: 1024, 64>}]} {
    %c0 = arith.constant 0 : index
    %c0_0 = arith.constant 0 : index
    %0 = vector.load %arg2[%c0, %c0_0] : memref<1024x256xbf16, #tpu.memory_space<vmem>>, vector<1024x256xbf16>
    %c0_1 = arith.constant 0 : index
    %c0_2 = arith.constant 0 : index
    %1 = vector.load %arg3[%c0_1, %c0_2] : memref<256x64xbf16, #tpu.memory_space<vmem>>, vector<256x64xbf16>
    %cst = arith.constant dense<0.000000e+00> : vector<1024x64xf32>
    %2 = tpu.matmul %0, %1, %cst {dimension_numbers = #tpu.dot_dimension_numbers<[1], [0], [0], [1], [0, 0, 1, 1], [], []>} : vector<1024x256xbf16>, vector<256x64xbf16>, vector<1024x64xf32> -> vector<1024x64xf32>
    %c0_3 = arith.constant 0 : index
    %c0_4 = arith.constant 0 : index
    %3 = vector.load %arg4[%c0_3, %c0_4] : memref<1x64xf32, #tpu.memory_space<vmem>>, vector<1x64xf32>
    %4 = vector.broadcast %3 : vector<1x64xf32> to vector<1024x64xf32>
    %5 = arith.addf %2, %4 : vector<1024x64xf32>
    %c0_5 = arith.constant 0 : index
    %c0_6 = arith.constant 0 : index
    %6 = vector.load %arg5[%c0_5, %c0_6] : memref<1024x64xf32, #tpu.memory_space<vmem>>, vector<1024x64xf32>
    tpu.vector_store %arg5[%c0_5, %c0_6], %5 {strides = array<i32>} : memref<1024x64xf32, #tpu.memory_space<vmem>>, vector<1024x64xf32>,
    return
  }
  func.func @transform_0(%arg0: i32, %arg1: i32) -> (i32, i32) {
    %c0_i32 = arith.constant 0 : i32
    %c0_i32_0 = arith.constant 0 : i32
    return %arg0, %c0_i32 : i32, i32
  }
  func.func @transform_1(%arg0: i32, %arg1: i32) -> (i32, i32) {
    %c0_i32 = arith.constant 0 : i32
    %c0_i32_0 = arith.constant 0 : i32
    return %c0_i32, %arg1 : i32, i32
  }
  func.func @transform_2(%arg0: i32, %arg1: i32) -> (i32, i32) {
    %c0_i32 = arith.constant 0 : i32
    %c0_i32_0 = arith.constant 0 : i32
    return %c0_i32, %arg1 : i32, i32
  }
  func.func @transform_3(%arg0: i32, %arg1: i32) -> (i32, i32) {
    %c0_i32 = arith.constant 0 : i32
    return %arg0, %arg1 : i32, i32
  }
}

</mosaic_0001>

<bundles_post_ra>
// kernel: tpu_custom_call.1
= control target key start
LH: loop header
LB: loop body
LE: loop exit
PB: predicated region body
PF: predicated region fallthrough
CT: control target
= control target key end

     0   :  { %8 = vsyncpa [#allocation3], 0  ;;  %s8061_s0 = inlined_call_operand.hbm [shape: bf16[1,18,18,64], index: 0, kind: input, shape index: {}]   ;;  %s8062_s1 = inlined_call_operand.hbm [shape: bf16[3,3,64,64], index: 1, kind: input, shape index: {}]   ;;  %s8063_s2 = inlined_call_operand.vmem [shape: f32[1,64], index: 2, kind: input, shape index: {}]   ;;  %s8064_s3 = inlined_call_operand.hbm [shape: bf16[1,16,16,64], index: 3, kind: output, shape index: {}]  }
   0x1   :  { %9 = vsyncpa [#allocation6], 0 }
   0x2   :  { %10 = vsyncpa [#allocation4], 0  ;;  %s6572_s12 = smov [#allocation2]   ;;  %s6500_s16 = scalar_lea.hbm %s8061_s0, 3456 }
   0x3   :  { %s16_s13 = sshll.u32 %s6572_s12, 4  ;;  %p6501_p0 = scmp.ne.s32.totalorder %s8061_s0, %s6500_s16  ;;  %s17_s13 = int_to_ptr.vmem [resolvable:$true] %s16_s13 }
   0x4   :  { %p6504_p1 = scmp.lt.u32.totalorder %s6500_s16, %s8061_s0 }
   0x6   :  { %p6506_p2 = pnand %p6504_p1, %p6501_p0 }
   0x8   :  { %6509 = shalt.err (!%p6506_p2)
}
   0x9   :  { %s6510_s21 = scalar_lea.vmem %s17_s13, 3456  ;;  %p6515_p4 = scmp.lt.s32.totalorder %s17_s13, %s17_s13 }
   0xa   :  { %p6511_p3 = scmp.ne.s32.totalorder %s17_s13, %s6510_s21  ;;  %p6516_p5 = scmp.lt.s32.totalorder %s6510_s21, %s6510_s21 }
   0xc   :  { %p6517_p6 = por %p6516_p5, %p6515_p4 }
   0xe   :  { %p6518_p7 = pnand %p6517_p6, %p6511_p3 }
  0x10   :  { %6521 = shalt.err (!%p6518_p7)
}
  0x11   :  { %s6573_s22 = smov 64   ;;  %s6574_s23 = smov 4  }
  0x12   :  { %22 = dma.hbm_to_vmem [thread:$0]  %s8061_s0, 3456, %s17_s13, [#allocation3], %s6573_s22, %s6573_s22, %s6574_s23  }
  0x13   :  { %s6575_s26 = smov [#allocation5]   ;;  %s6522_s30 = scalar_lea.hbm %s8062_s1, 4608 }
  0x14   :  { %s28_s27 = sshll.u32 %s6575_s26, 4  ;;  %p6523_p8 = scmp.ne.s32.totalorder %s8062_s1, %s6522_s30  ;;  %s29_s27 = int_to_ptr.vmem [resolvable:$true] %s28_s27 }
  0x15   :  { %p6526_p9 = scmp.lt.u32.totalorder %s6522_s30, %s8062_s1 }
  0x17   :  { %p6528_p10 = pnand %p6526_p9, %p6523_p8 }
  0x19   :  { %6531 = shalt.err (!%p6528_p10)
}
  0x1a   :  { %s6532_s8 = scalar_lea.vmem %s29_s27, 4608  ;;  %p6537_p12 = scmp.lt.s32.totalorder %s29_s27, %s29_s27 }
  0x1b   :  { %p6533_p11 = scmp.ne.s32.totalorder %s29_s27, %s6532_s8  ;;  %p6538_p13 = scmp.lt.s32.totalorder %s6532_s8, %s6532_s8 }
  0x1d   :  { %p6539_p0 = por %p6538_p13, %p6537_p12 }
  0x1f   :  { %p6540_p1 = pnand %p6539_p0, %p6533_p11 }
  0x21   :  { %6543 = shalt.err (!%p6540_p1)
}
  0x22   :  { %34 = dma.hbm_to_vmem [thread:$0]  %s8062_s1, 4608, %s29_s27, [#allocation6], %s6573_s22, %s6573_s22, %s6574_s23  }
  0x23   :  { %6566 = dma.done.wait [#allocation3], 3456  }
  0x24   :  { %6567 = vsyncadd [#allocation3], 4294963840 }
  0x25   :  { %6568 = dma.done.wait [#allocation6], 4608  }
  0x26   :  { %6569 = vsyncadd [#allocation6], 4294962688  ;;  %v6350_v0 = vld [vmem:[#allocation5 + $0x20] sm:$0xff]   ;;  %v6352_v2 = vld [vmem:[#allocation5 + $0x28] sm:$0xff]   ;;  %vm100_vm0 = vsmask.f32 3328 }
  0x27   :  { %v6351_v1 = vld [vmem:[#allocation5 + $0x80] sm:$0xff]   ;;  %5721 = vmatprep.subr.bf16.mxu1 %v6350_v0  ;;  %v6353_v3 = vld [vmem:[#allocation5 + $0x88] sm:$0xff]   ;;  %vm101_vm1 = vsmask.f32 7440  ;;  %v6354_v4 = vld [vmem:[#allocation5 + $0x30] sm:$0xff]   ;;  %vm568_vm3 = vcmask 523264  }
  0x28   :  { %5881 = vmatprep.subr.bf16.mxu0 %v6351_v1  ;;  %5722 = vmatpush3.bf16.msra.mxu1 %v6350_v0  ;;  %v6355_v5 = vld [vmem:[#allocation5 + $0x90] sm:$0xff]   ;;  %v6356_v6 = vld [vmem:[#allocation5 + $0x38] sm:$0xff]   ;;  %v44_v8 = vld [vmem:[#allocation2] sm:$0xf]  ;;  %vm1139_vm4 = vcmask 1042432   ;;  %vm1140_vm5 = vcmask 1046532  }
  0x29   :  { %5882 = vmatpush3.bf16.msra.mxu0 %v6351_v1  ;;  %5723 = vmatprep.subr.bf16.mxu1 %v6352_v2  ;;  %v6357_v7 = vld [vmem:[#allocation5 + $0x98] sm:$0xff]   ;;  %v45_v9 = vld [vmem:[#allocation2 + $0x4] sm:$0xf]  ;;  %v84_v10 = vld [vmem:[#allocation2 + $0x8] sm:$0x1]  ;;  %v104_v11 = vshrl.u32 %v44_v8, 16 }
  0x2a   :  { %5883 = vmatprep.subr.bf16.mxu0 %v6353_v3  ;;  %v107_v12 = vshll.u32 %v44_v8, 16  ;;  %v113_v13 = vshll.u32 %v45_v9, 16  ;;  %v117_v14 = vshrl.u32 %v45_v9, 16  ;;  %v1963_v15 = vld [vmem:[#allocation2 + $0xc] sm:$0xf]  ;;  %v123_v16 = vshll.u32 %v84_v10, 16  ;;  %vm6636_vm2 = vmor %vm100_vm0, %vm101_vm1 }
  0x2b   :  { %v6627_v17 = vld [vmem:[#allocation2 + $0x10] sm:$0xf]  ;;  %v6629_v18 = vld [vmem:[#allocation2 + $0x14] sm:$0x1]  ;;  %v106_v19 = vrot.slane %v104_v11, 4  ;;  %v2012_v24 = vshrl.u32 %v1963_v15, 16  ;;  %vm6804_vm6 = vmor %vm1139_vm4, %vm1140_vm5 }
  0x2c   :  { %5724 = vmatpush3.bf16.msra.mxu1 %v6352_v2  ;;  %v109_v20 = vrot.slane %v107_v12, 5  ;;  %v115_v21 = vrot.slane %v113_v13, 5  ;;  %v119_v22 = vrot.slane %v117_v14, 4  ;;  %v125_v23 = vrot.slane %v123_v16, 5  ;;  %v46_v27 = vld [vmem:[#allocation2 + $0xc] sm:$0xf] }
  0x2d   :  { %5884 = vmatpush3.bf16.msra.mxu0 %v6353_v3  ;;  %5725 = vmatprep.subr.bf16.mxu1 %v6354_v4  ;;  %v2015_v25 = vshll.u32 %v1963_v15, 16  ;;  %v2021_v26 = vshll.u32 %v6627_v17, 16  ;;  %v2025_v30 = vshrl.u32 %v6627_v17, 16  ;;  %v2031_v31 = vshll.u32 %v6629_v18, 16  ;;  %v47_v32 = vld [vmem:[#allocation2 + $0x10] sm:$0xf] }
  0x2e   :  { %5885 = vmatprep.subr.bf16.mxu0 %v6355_v5  ;;  %v110_v28 = vor.u32 %v109_v20, %v106_v19  ;;  %v120_v29 = vor.u32 %v119_v22, %v115_v21  ;;  %v2014_v34 = vrot.slane %v2012_v24, 4  ;;  %v6640_v40 = vld [vmem:[#allocation5] sm:$0xff]   ;;  %v85_v44 = vld [vmem:[#allocation2 + $0x14] sm:$0x1]  ;;  %v128_v45 = vshrl.u32 %v46_v27, 16 }
  0x2f   :  { %v2017_v35 = vrot.slane %v2015_v25, 5  ;;  %v2023_v36 = vrot.slane %v2021_v26, 5  ;;  %v2027_v39 = vrot.slane %v2025_v30, 4  ;;  %v6642_v41 = vld [vmem:[#allocation5 + $0xa0] sm:$0xff]   ;;  %v2033_v43 = vrot.slane %v2031_v31, 5 }
  0x30   :  { %5726 = vmatpush3.bf16.msra.mxu1 %v6354_v4  ;;  %v111_v37 = vrot.slane %v110_v28, 4  ;;  %v121_v38 = vrot.slane %v120_v29, 4  ;;  %v131_v46 = vshll.u32 %v46_v27, 16  ;;  %v137_v50 = vshll.u32 %v47_v32, 16  ;;  %v1966_v51 = vld [vmem:[#allocation2 + $0x18] sm:$0xf] }
  0x31   :  { %5886 = vmatpush3.bf16.msra.mxu0 %v6355_v5  ;;  %5727 = vmatprep.subr.bf16.mxu1 %v6356_v6  ;;  %v2018_v42 = vor.u32 %v2017_v35, %v2014_v34  ;;  %v2028_v49 = vor.u32 %v2027_v39, %v2023_v36  ;;  %v6649_v52 = vld [vmem:[#allocation2 + $0x1c] sm:$0xf]  ;;  %v130_v55 = vrot.slane %v128_v45, 4  ;;  %v141_v59 = vshrl.u32 %v47_v32, 16  ;;  %v6657_v1 = vld [vmem:[#allocation2 + $0x20] sm:$0x1] }
  0x32   :  { %5887 = vmatprep.subr.bf16.mxu0 %v6357_v7  ;;  %v116_v47 = vsel %vm6636_vm2, %v111_v37, %v115_v21  ;;  %v126_v48 = vsel %vm6636_vm2, %v121_v38, %v125_v23  ;;  %v133_v56 = vrot.slane %v131_v46, 5  ;;  %v139_v58 = vrot.slane %v137_v50, 5  ;;  %v48_v14 = vld [vmem:[#allocation2 + $0x18] sm:$0xf]  ;;  %v49_v21 = vld [vmem:[#allocation2 + $0x1c] sm:$0xf] }
  0x33   :  { %v5104_v53 = vcombine.low %v116_v47, %v126_v48  ;;  %v2019_v54 = vrot.slane %v2018_v42, 4  ;;  %v2029_v57 = vrot.slane %v2028_v49, 4  ;;  %v147_v60 = vshll.u32 %v85_v44, 16  ;;  %v86_v28 = vld [vmem:[#allocation2 + $0x20] sm:$0x1] }
  0x34   :  { %5728 = vmatpush3.bf16.msra.mxu1 %v6356_v6  ;;  %v2783_v62 = vrot.slane %v6627_v17, 5  ;;  %v2786_v63 = vrot.slane %v6629_v18, 5  ;;  %v134_v0 = vor.u32 %v133_v56, %v130_v55  ;;  %v143_v3 = vrot.slane %v141_v59, 4  ;;  %v6361_v44 = vld [vmem:[#allocation5 + $0x8] sm:$0xff]   ;;  %v6677_v49 = vld [vmem:[#allocation2 + $0x2c] sm:$0x1] }
  0x35   :  { %5888 = vmatpush3.bf16.msra.mxu0 %v6357_v7  ;;  %5761 = vmatprep.subr.bf16.mxu1 %v6640_v40  ;;  %v2024_v61 = vsel %vm6636_vm2, %v2019_v54, %v2023_v36  ;;  %v2034_v2 = vsel %vm6636_vm2, %v2029_v57, %v2033_v43  ;;  %v149_v4 = vrot.slane %v147_v60, 5  ;;  %v2036_v5 = vshrl.u32 %v1966_v51, 16  ;;  %v1969_v36 = vld [vmem:[#allocation2 + $0x24] sm:$0xf]  ;;  %v6675_v43 = vld [vmem:[#allocation2 + $0x28] sm:$0xf] }
  0x36   :  { %5921 = vmatprep.subr.bf16.mxu0 %v6642_v41  ;;  %5729 = vmatprep.mubr.msk.bf16.mxu1 %vm568_vm3, %v5104_v53  ;;  %v5264_v6 = vcombine.low %v2024_v61, %v2034_v2  ;;  %v135_v7 = vrot.slane %v134_v0, 4  ;;  %v2039_v8 = vshll.u32 %v1966_v51, 16  ;;  %v2045_v9 = vshll.u32 %v6649_v52, 16  ;;  %v50_v59 = vld [vmem:[#allocation2 + $0x24] sm:$0xf] }
  0x37   :  { %v144_v10 = vor.u32 %v143_v3, %v139_v58  ;;  %v2038_v11 = vrot.slane %v2036_v5, 4  ;;  %v2049_v12 = vshrl.u32 %v6649_v52, 16  ;;  %v2055_v13 = vshll.u32 %v6657_v1, 16  ;;  %v6360_v60 = vld [vmem:[#allocation5 + $0xa8] sm:$0xff]   ;;  %v6364_v5 = vld [vmem:[#allocation5 + $0x10] sm:$0xff]  }
  0x38   :  { %5889 = vmatprep.mubr.msk.bf16.mxu0 %vm568_vm3, %v5264_v6  ;;  %v140_v15 = vsel %vm6636_vm2, %v135_v7, %v139_v58  ;;  %v2041_v16 = vrot.slane %v2039_v8, 5  ;;  %v2047_v19 = vrot.slane %v2045_v9, 5  ;;  %v2790_v20 = vrot.slane %v6649_v52, 5  ;;  %v6367_v52 = vld [vmem:[#allocation5 + $0xc8] sm:$0xff]  }
  0x39   :  { %v145_v22 = vrot.slane %v144_v10, 4  ;;  %v2051_v23 = vrot.slane %v2049_v12, 4  ;;  %v2057_v24 = vrot.slane %v2055_v13, 5  ;;  %v2793_v25 = vrot.slane %v6657_v1, 5 }
  0x3a   :  { %v2042_v26 = vor.u32 %v2041_v16, %v2038_v11  ;;  %v6671_v27 = vrot.slane %v2790_v20, 4  ;;  %v152_v29 = vshrl.u32 %v48_v14, 16  ;;  %v155_v30 = vshll.u32 %v48_v14, 16  ;;  %v87_v11 = vld [vmem:[#allocation2 + $0x2c] sm:$0x1] }
  0x3b   :  { %v150_v31 = vsel %vm6636_vm2, %v145_v22, %v149_v4  ;;  %v2052_v32 = vor.u32 %v2051_v23, %v2047_v19  ;;  %v161_v34 = vshll.u32 %v49_v21, 16  ;;  %v165_v35 = vshrl.u32 %v49_v21, 16  ;;  %v51_v4 = vld [vmem:[#allocation2 + $0x28] sm:$0xf]  ;;  %v1972_v21 = vld [vmem:[#allocation2 + $0x30] sm:$0xf] }
  0x3c   :  { %v5105_v37 = vcombine.low %v140_v15, %v150_v31  ;;  %v2043_v38 = vrot.slane %v2042_v26, 4  ;;  %v154_v39 = vrot.slane %v152_v29, 4  ;;  %v157_v42 = vrot.slane %v155_v30, 5  ;;  %v6362_v22 = vld [vmem:[#allocation5 + $0xb0] sm:$0xff]   ;;  %v6694_v29 = vld [vmem:[#allocation2 + $0x34] sm:$0xf] }
  0x3d   :  { %v2053_v45 = vrot.slane %v2052_v32, 4  ;;  %v163_v46 = vrot.slane %v161_v34, 5  ;;  %v167_v47 = vrot.slane %v165_v35, 4  ;;  %v171_v48 = vshll.u32 %v86_v28, 16  ;;  %v6366_v30 = vld [vmem:[#allocation5 + $0x18] sm:$0xff]  }
  0x3e   :  { %5730 = vmatmul.mubr.msk.bf16.vlgmr.msra.gmra.mrb[0].mxu1 %vm568_vm3, %v5105_v37  ;;  %v2048_v50 = vsel %vm6636_vm2, %v2043_v38, %v2047_v19  ;;  %v158_v51 = vor.u32 %v157_v42, %v154_v39  ;;  %v2060_v53 = vshrl.u32 %v1969_v36, 16  ;;  %v2063_v54 = vshll.u32 %v1969_v36, 16  ;;  %v6696_v35 = vld [vmem:[#allocation2 + $0x38] sm:$0x1] }
  0x3f   :  { %v2058_v55 = vsel %vm6636_vm2, %v2053_v45, %v2057_v24  ;;  %5762 = vmatpush3.bf16.msra.mxu1 %v6640_v40  ;;  %v168_v56 = vor.u32 %v167_v47, %v163_v46  ;;  %v173_v57 = vrot.slane %v171_v48, 5  ;;  %v2069_v58 = vshll.u32 %v6675_v43, 16  ;;  %v6363_v47 = vld [vmem:[#allocation5 + $0xb8] sm:$0xff]   ;;  %v6370_v48 = vld [vmem:[#allocation5 + $0x40] sm:$0xff]  }
  0x40   :  { %v5265_v61 = vcombine.low %v2048_v50, %v2058_v55  ;;  %v159_v0 = vrot.slane %v158_v51, 4  ;;  %v2062_v2 = vrot.slane %v2060_v53, 4  ;;  %v2065_v3 = vrot.slane %v2063_v54, 5  ;;  %5763 = vmatprep.subr.bf16.mxu1 %v6361_v44  ;;  %v52_v55 = vld [vmem:[#allocation2 + $0x30] sm:$0xf] }
  0x41   :  { %v169_v6 = vrot.slane %v168_v56, 4  ;;  %v2071_v7 = vrot.slane %v2069_v58, 5  ;;  %v2073_v8 = vshrl.u32 %v6675_v43, 16  ;;  %v2079_v9 = vshll.u32 %v6677_v49, 16 }
  0x42   :  { %5890 = vmatmul.mubr.msk.bf16.vlgmr.msra.gmra.mrb[0].mxu0 %vm568_vm3, %v5265_v61  ;;  %v164_v40 = vsel %vm6636_vm2, %v159_v0, %v163_v46  ;;  %v2066_v10 = vor.u32 %v2065_v3, %v2062_v2  ;;  %v176_v12 = vshrl.u32 %v50_v59, 16  ;;  %v179_v13 = vshll.u32 %v50_v59, 16  ;;  %v53_v61 = vld [vmem:[#allocation2 + $0x34] sm:$0xf] }
  0x43   :  { %5922 = vmatpush3.bf16.msra.mxu0 %v6642_v41  ;;  %v174_v14 = vsel %vm6636_vm2, %v169_v6, %v173_v57  ;;  %v2075_v15 = vrot.slane %v2073_v8, 4  ;;  %v2081_v16 = vrot.slane %v2079_v9, 5  ;;  %v185_v19 = vshll.u32 %v51_v4, 16  ;;  %5764 = vmatpush3.bf16.msra.mxu1 %v6361_v44 }
  0x44   :  { %v5106_v23 = vcombine.low %v164_v40, %v174_v14  ;;  %v2067_v24 = vrot.slane %v2066_v10, 4  ;;  %v178_v26 = vrot.slane %v176_v12, 4  ;;  %v181_v28 = vrot.slane %v179_v13, 5  ;;  %5923 = vmatprep.subr.bf16.mxu0 %v6360_v60  ;;  %5765 = vmatprep.subr.bf16.mxu1 %v6364_v5  ;;  %v1975_v12 = vld [vmem:[#allocation2 + $0x3c] sm:$0xf] }
  0x45   :  { %v2076_v31 = vor.u32 %v2075_v15, %v2071_v7  ;;  %v187_v41 = vrot.slane %v185_v19, 5  ;;  %v189_v32 = vshrl.u32 %v51_v4, 16  ;;  %v195_v34 = vshll.u32 %v87_v11, 16  ;;  %v88_v4 = vld [vmem:[#allocation2 + $0x38] sm:$0x1] }
  0x46   :  { %5733 = vmatprep.mubr.msk.bf16.mxu1 %vm568_vm3, %v5106_v23  ;;  %v2072_v36 = vsel %vm6636_vm2, %v2067_v24, %v2071_v7  ;;  %v182_v37 = vor.u32 %v181_v28, %v178_v26  ;;  %v2084_v38 = vshrl.u32 %v1972_v21, 16  ;;  %v2087_v39 = vshll.u32 %v1972_v21, 16  ;;  %v6709_v13 = vld [vmem:[#allocation5 + $0xc0] sm:$0xff]   ;;  %v6713_v21 = vld [vmem:[#allocation2 + $0x40] sm:$0xf] }
  0x47   :  { %v2077_v42 = vrot.slane %v2076_v31, 4  ;;  %v191_v44 = vrot.slane %v189_v32, 4  ;;  %v197_v45 = vrot.slane %v195_v34, 5  ;;  %v2093_v46 = vshll.u32 %v6694_v29, 16  ;;  %5924 = vmatpush3.bf16.msra.mxu0 %v6360_v60  ;;  %5766 = vmatpush3.bf16.msra.mxu1 %v6364_v5 }
  0x48   :  { %v183_v50 = vrot.slane %v182_v37, 4  ;;  %v2086_v51 = vrot.slane %v2084_v38, 4  ;;  %v2089_v53 = vrot.slane %v2087_v39, 5  ;;  %v2097_v54 = vshrl.u32 %v6694_v29, 16  ;;  %5925 = vmatprep.subr.bf16.mxu0 %v6362_v22  ;;  %5767 = vmatprep.subr.bf16.mxu1 %v6366_v30  ;;  %v54_v39 = vld [vmem:[#allocation2 + $0x3c] sm:$0xf] }
  0x49   :  { %v2082_v56 = vsel %vm6636_vm2, %v2077_v42, %v2081_v16  ;;  %v192_v57 = vor.u32 %v191_v44, %v187_v41  ;;  %v2095_v58 = vrot.slane %v2093_v46, 5  ;;  %v2103_v59 = vshll.u32 %v6696_v35, 16 }
  0x4a   :  { %v5266_v60 = vcombine.low %v2072_v36, %v2082_v56  ;;  %v188_v0 = vsel %vm6636_vm2, %v183_v50, %v187_v41  ;;  %v2090_v2 = vor.u32 %v2089_v53, %v2086_v51  ;;  %v2099_v3 = vrot.slane %v2097_v54, 4  ;;  %v6717_v41 = vld [vmem:[#allocation2 + $0x44] sm:$0x1] }
  0x4b   :  { %v193_v5 = vrot.slane %v192_v57, 4  ;;  %v2105_v6 = vrot.slane %v2103_v59, 5  ;;  %v200_v7 = vshrl.u32 %v52_v55, 16  ;;  %v203_v8 = vshll.u32 %v52_v55, 16  ;;  %5926 = vmatpush3.bf16.msra.mxu0 %v6362_v22  ;;  %5768 = vmatpush3.bf16.msra.mxu1 %v6366_v30  ;;  %v89_v54 = vld [vmem:[#allocation2 + $0x44] sm:$0x1] }
  0x4c   :  { %5893 = vmatprep.mubr.msk.bf16.mxu0 %vm568_vm3, %v5266_v60  ;;  %v2091_v9 = vrot.slane %v2090_v2, 4  ;;  %v2100_v40 = vor.u32 %v2099_v3, %v2095_v58  ;;  %v209_v10 = vshll.u32 %v53_v61, 16  ;;  %v213_v11 = vshrl.u32 %v53_v61, 16  ;;  %5927 = vmatprep.subr.bf16.mxu0 %v6363_v47  ;;  %v1978_v59 = vld [vmem:[#allocation2 + $0x48] sm:$0xf] }
  0x4d   :  { %v198_v14 = vsel %vm6636_vm2, %v193_v5, %v197_v45  ;;  %v202_v15 = vrot.slane %v200_v7, 4  ;;  %v205_v16 = vrot.slane %v203_v8, 5  ;;  %v219_v19 = vshll.u32 %v88_v4, 16  ;;  %5801 = vmatprep.subr.bf16.mxu1 %v6370_v48  ;;  %v55_v48 = vld [vmem:[#allocation2 + $0x40] sm:$0xf] }
  0x4e   :  { %v5107_v22 = vcombine.low %v188_v0, %v198_v14  ;;  %v2096_v23 = vsel %vm6636_vm2, %v2091_v9, %v2095_v58  ;;  %v2101_v24 = vrot.slane %v2100_v40, 4  ;;  %v211_v26 = vrot.slane %v209_v10, 5  ;;  %v6731_v7 = vld [vmem:[#allocation2 + $0x4c] sm:$0xf] }
  0x4f   :  { %v206_v28 = vor.u32 %v205_v16, %v202_v15  ;;  %v215_v30 = vrot.slane %v213_v11, 4  ;;  %v221_v31 = vrot.slane %v219_v19, 5  ;;  %v2108_v32 = vshrl.u32 %v1975_v12, 16  ;;  %5928 = vmatpush3.bf16.msra.mxu0 %v6363_v47 }
  0x50   :  { %5734 = vmatmul.mubr.msk.bf16.gmra.mrb[4].mxu1 %vm568_vm3, %v5107_v22  ;;  %v2106_v34 = vsel %vm6636_vm2, %v2101_v24, %v2105_v6  ;;  %v2111_v36 = vshll.u32 %v1975_v12, 16  ;;  %v2117_v37 = vshll.u32 %v6713_v21, 16  ;;  %v2121_v38 = vshrl.u32 %v6713_v21, 16  ;;  %5961 = vmatprep.subr.bf16.mxu0 %v6709_v13  ;;  %v6738_v22 = vld [vmem:[#allocation2 + $0x50] sm:$0x1] }
  0x51   :  { %v5267_v42 = vcombine.low %v2096_v23, %v2106_v34  ;;  %v207_v44 = vrot.slane %v206_v28, 4  ;;  %v216_v45 = vor.u32 %v215_v30, %v211_v26  ;;  %v2110_v46 = vrot.slane %v2108_v32, 4  ;;  %v57_v34 = vld [vmem:[#allocation2 + $0x4c] sm:$0xf] }
  0x52   :  { %v2113_v50 = vrot.slane %v2111_v36, 5  ;;  %v2119_v47 = vrot.slane %v2117_v37, 5  ;;  %v2123_v51 = vrot.slane %v2121_v38, 4  ;;  %v2127_v53 = vshll.u32 %v6717_v41, 16 }
  0x53   :  { %5894 = vmatmul.mubr.msk.bf16.gmra.mrb[4].mxu0 %vm568_vm3, %v5267_v42  ;;  %v212_v55 = vsel %vm6636_vm2, %v207_v44, %v211_v26  ;;  %v217_v56 = vrot.slane %v216_v45, 4  ;;  %v224_v57 = vshrl.u32 %v54_v39, 16  ;;  %v227_v58 = vshll.u32 %v54_v39, 16  ;;  %v56_v26 = vld [vmem:[#allocation2 + $0x48] sm:$0xf] }
  0x54   :  { %v2114_v61 = vor.u32 %v2113_v50, %v2110_v46  ;;  %v2124_v60 = vor.u32 %v2123_v51, %v2119_v47  ;;  %v2129_v0 = vrot.slane %v2127_v53, 5  ;;  %v233_v2 = vshll.u32 %v55_v48, 16  ;;  %v90_v42 = vld [vmem:[#allocation2 + $0x50] sm:$0x1] }
  0x55   :  { %v222_v3 = vsel %vm6636_vm2, %v217_v56, %v221_v31  ;;  %v226_v4 = vrot.slane %v224_v57, 4  ;;  %v229_v5 = vrot.slane %v227_v58, 5  ;;  %v237_v6 = vshrl.u32 %v55_v48, 16 }
  0x56   :  { %v5108_v8 = vcombine.low %v212_v55, %v222_v3  ;;  %v2115_v9 = vrot.slane %v2114_v61, 4  ;;  %v2125_v40 = vrot.slane %v2124_v60, 4  ;;  %v235_v10 = vrot.slane %v233_v2, 5  ;;  %v6748_v2 = vld [vmem:[#allocation2 + $0x58] sm:$0xf] }
  0x57   :  { %v230_v11 = vor.u32 %v229_v5, %v226_v4  ;;  %v239_v12 = vrot.slane %v237_v6, 4  ;;  %v243_v14 = vshll.u32 %v89_v54, 16  ;;  %v2132_v15 = vshrl.u32 %v1978_v59, 16  ;;  %v1981_v54 = vld [vmem:[#allocation2 + $0x54] sm:$0xf] }
  0x58   :  { %5737 = vmatprep.mubr.msk.bf16.mxu1 %vm568_vm3, %v5108_v8  ;;  %v2120_v16 = vsel %vm6636_vm2, %v2115_v9, %v2119_v47  ;;  %v2130_v19 = vsel %vm6636_vm2, %v2125_v40, %v2129_v0  ;;  %v2135_v23 = vshll.u32 %v1978_v59, 16  ;;  %v2141_v24 = vshll.u32 %v6731_v7, 16 }
  0x59   :  { %v5268_v28 = vcombine.low %v2120_v16, %v2130_v19  ;;  %v231_v30 = vrot.slane %v230_v11, 4  ;;  %v240_v31 = vor.u32 %v239_v12, %v235_v10  ;;  %v245_v32 = vrot.slane %v243_v14, 5  ;;  %v6756_v19 = vld [vmem:[#allocation2 + $0x54] sm:$0xf] }
  0x5a   :  { %v2134_v36 = vrot.slane %v2132_v15, 4  ;;  %v2137_v37 = vrot.slane %v2135_v23, 5  ;;  %v2143_v38 = vrot.slane %v2141_v24, 5  ;;  %v2145_v39 = vshrl.u32 %v6731_v7, 16 }
  0x5b   :  { %5897 = vmatprep.mubr.msk.bf16.mxu0 %vm568_vm3, %v5268_v28  ;;  %v236_v44 = vsel %vm6636_vm2, %v231_v30, %v235_v10  ;;  %v241_v45 = vrot.slane %v240_v31, 4  ;;  %v2151_v46 = vshll.u32 %v6738_v22, 16  ;;  %v248_v48 = vshrl.u32 %v56_v26, 16  ;;  %v6753_v10 = vld [vmem:[#allocation2 + $0x5c] sm:$0x1] }
  0x5c   :  { %v2138_v50 = vor.u32 %v2137_v37, %v2134_v36  ;;  %v2147_v47 = vrot.slane %v2145_v39, 4  ;;  %v251_v51 = vshll.u32 %v56_v26, 16  ;;  %v257_v53 = vshll.u32 %v57_v34, 16  ;;  %v6761_v30 = vld [vmem:[#allocation2 + $0x58] sm:$0xf] }
  0x5d   :  { %v246_v55 = vsel %vm6636_vm2, %v241_v45, %v245_v32  ;;  %v2153_v56 = vrot.slane %v2151_v46, 5  ;;  %v250_v57 = vrot.slane %v248_v48, 4  ;;  %v261_v58 = vshrl.u32 %v57_v34, 16 }
  0x5e   :  { %v5109_v59 = vcombine.low %v236_v44, %v246_v55  ;;  %v2139_v61 = vrot.slane %v2138_v50, 4  ;;  %v2148_v60 = vor.u32 %v2147_v47, %v2143_v38  ;;  %v253_v0 = vrot.slane %v251_v51, 5  ;;  %v1984_v47 = vld [vmem:[#allocation2 + $0x60] sm:$0xf] }
  0x5f   :  { %v259_v3 = vrot.slane %v257_v53, 5  ;;  %v263_v4 = vrot.slane %v261_v58, 4  ;;  %v267_v5 = vshll.u32 %v90_v42, 16  ;;  %v2156_v6 = vshrl.u32 %v1981_v54, 16  ;;  %v91_v42 = vld [vmem:[#allocation2 + $0x5c] sm:$0x1] }
  0x60   :  { %5738 = vmatmul.mubr.msk.bf16.gmra.mrb[8].mxu1 %vm568_vm3, %v5109_v59  ;;  %v2144_v8 = vsel %vm6636_vm2, %v2139_v61, %v2143_v38  ;;  %v2149_v9 = vrot.slane %v2148_v60, 4  ;;  %v254_v40 = vor.u32 %v253_v0, %v250_v57  ;;  %v2159_v11 = vshll.u32 %v1981_v54, 16  ;;  %v6775_v60 = vld [vmem:[#allocation2 + $0x68] sm:$0x1] }
  0x61   :  { %v264_v12 = vor.u32 %v263_v4, %v259_v3  ;;  %v269_v14 = vrot.slane %v267_v5, 5  ;;  %v2158_v15 = vrot.slane %v2156_v6, 4  ;;  %v2165_v16 = vshll.u32 %v6748_v2, 16  ;;  %v6780_v6 = vld [vmem:[#allocation2 + $0x60] sm:$0xf] }
  0x62   :  { %v2154_v23 = vsel %vm6636_vm2, %v2149_v9, %v2153_v56  ;;  %v255_v24 = vrot.slane %v254_v40, 4  ;;  %v2161_v26 = vrot.slane %v2159_v11, 5  ;;  %v2169_v28 = vshrl.u32 %v6748_v2, 16  ;;  %v6772_v56 = vld [vmem:[#allocation2 + $0x64] sm:$0xf] }
  0x63   :  { %v5269_v31 = vcombine.low %v2144_v8, %v2154_v23  ;;  %v265_v32 = vrot.slane %v264_v12, 4  ;;  %v2167_v34 = vrot.slane %v2165_v16, 5  ;;  %v2175_v36 = vshll.u32 %v6753_v10, 16  ;;  %v6783_v12 = vld [vmem:[#allocation2 + $0x64] sm:$0xf] }
  0x64   :  { %v260_v37 = vsel %vm6636_vm2, %v255_v24, %v259_v3  ;;  %v2162_v38 = vor.u32 %v2161_v26, %v2158_v15  ;;  %v2171_v39 = vrot.slane %v2169_v28, 4  ;;  %v272_v44 = vshrl.u32 %v6756_v19, 16 }
  0x65   :  { %5898 = vmatmul.mubr.msk.bf16.gmra.mrb[8].mxu0 %vm568_vm3, %v5269_v31  ;;  %v270_v45 = vsel %vm6636_vm2, %v265_v32, %v269_v14  ;;  %v2177_v46 = vrot.slane %v2175_v36, 5  ;;  %v275_v48 = vshll.u32 %v6756_v19, 16  ;;  %v281_v50 = vshll.u32 %v6761_v30, 16  ;;  %v92_v32 = vld [vmem:[#allocation2 + $0x68] sm:$0x1] }
  0x66   :  { %v5110_v51 = vcombine.low %v260_v37, %v270_v45  ;;  %v2163_v53 = vrot.slane %v2162_v38, 4  ;;  %v2172_v54 = vor.u32 %v2171_v39, %v2167_v34  ;;  %v274_v55 = vrot.slane %v272_v44, 4 }
  0x67   :  { %v277_v57 = vrot.slane %v275_v48, 5  ;;  %v283_v58 = vrot.slane %v281_v50, 5  ;;  %v285_v59 = vshrl.u32 %v6761_v30, 16  ;;  %v291_v61 = vshll.u32 %v91_v42, 16 }
  0x68   :  { %5741 = vmatprep.mubr.msk.bf16.mxu1 %vm568_vm3, %v5110_v51  ;;  %v2168_v0 = vsel %vm6636_vm2, %v2163_v53, %v2167_v34  ;;  %v2173_v3 = vrot.slane %v2172_v54, 4  ;;  %v2180_v4 = vshrl.u32 %v1984_v47, 16  ;;  %v2183_v5 = vshll.u32 %v1984_v47, 16  ;;  %v2717_v51 = vld [vmem:[#allocation2 + $0xc] sm:$0xe] }
  0x69   :  { %v278_v8 = vor.u32 %v277_v57, %v274_v55  ;;  %v287_v9 = vrot.slane %v285_v59, 4  ;;  %v293_v40 = vrot.slane %v291_v61, 5  ;;  %v2189_v11 = vshll.u32 %v6772_v56, 16  ;;  %v6798_v59 = vld [vmem:[#allocation2 + $0x6c] sm:$0xf] }
  0x6a   :  { %v2178_v14 = vsel %vm6636_vm2, %v2173_v3, %v2177_v46  ;;  %v2182_v15 = vrot.slane %v2180_v4, 4  ;;  %v2185_v16 = vrot.slane %v2183_v5, 5  ;;  %v2193_v23 = vshrl.u32 %v6772_v56, 16 }
  0x6b   :  { %v5270_v24 = vcombine.low %v2168_v0, %v2178_v14  ;;  %v279_v26 = vrot.slane %v278_v8, 4  ;;  %v288_v28 = vor.u32 %v287_v9, %v283_v58  ;;  %v2191_v31 = vrot.slane %v2189_v11, 5  ;;  %v6810_v11 = vld [vmem:[#allocation2 + $0x70] sm:$0xf] }
  0x6c   :  { %v2186_v34 = vor.u32 %v2185_v16, %v2182_v15  ;;  %v2195_v36 = vrot.slane %v2193_v23, 4  ;;  %v2199_v37 = vshll.u32 %v6775_v60, 16  ;;  %v296_v38 = vshrl.u32 %v6780_v6, 16 }
  0x6d   :  { %5901 = vmatprep.mubr.msk.bf16.mxu0 %vm568_vm3, %v5270_v24  ;;  %v284_v39 = vsel %vm6636_vm2, %v279_v26, %v283_v58  ;;  %v289_v42 = vrot.slane %v288_v28, 4  ;;  %v299_v44 = vshll.u32 %v6780_v6, 16  ;;  %v305_v45 = vshll.u32 %v6783_v12, 16 }
  0x6e   :  { %v2187_v46 = vrot.slane %v2186_v34, 4  ;;  %v2196_v48 = vor.u32 %v2195_v36, %v2191_v31  ;;  %v2201_v50 = vrot.slane %v2199_v37, 5  ;;  %v298_v47 = vrot.slane %v296_v38, 4  ;;  %v2718_v34 = vld [vmem:[#allocation2 + $0x18] sm:$0xe] }
  0x6f   :  { %v294_v53 = vsel %vm6636_vm2, %v289_v42, %v293_v40  ;;  %v301_v54 = vrot.slane %v299_v44, 5  ;;  %v307_v55 = vrot.slane %v305_v45, 5  ;;  %v309_v57 = vshrl.u32 %v6783_v12, 16  ;;  %v6826_v42 = vld [vmem:[#allocation2 + $0x78] sm:$0xf] }
  0x70   :  { %v5111_v58 = vcombine.low %v284_v39, %v294_v53  ;;  %v2192_v61 = vsel %vm6636_vm2, %v2187_v46, %v2191_v31  ;;  %v2197_v0 = vrot.slane %v2196_v48, 4  ;;  %v315_v3 = vshll.u32 %v92_v32, 16  ;;  %v93_v32 = vld [vmem:[#allocation2 + $0x74] sm:$0x1]  ;;  %v6832_v46 = vld [vmem:[#allocation2 + $0x7c] sm:$0xf] }
  0x71   :  { %v302_v5 = vor.u32 %v301_v54, %v298_v47  ;;  %v311_v8 = vrot.slane %v309_v57, 4  ;;  %v5300_v9 = vrot.slane %v2717_v51, 9  ;;  %v2785_v40 = vrot.slane %v2783_v62, 4  ;;  %v94_v54 = vld [vmem:[#allocation2 + $0x80] sm:$0x1] }
  0x72   :  { %5742 = vmatmul.mubr.msk.bf16.gmra.mrb[12].mxu1 %vm568_vm3, %v5111_v58  ;;  %v2202_v14 = vsel %vm6636_vm2, %v2197_v0, %v2201_v50  ;;  %v317_v15 = vrot.slane %v315_v3, 5  ;;  %v320_v16 = vshrl.u32 %v6798_v59, 16  ;;  %v323_v23 = vshll.u32 %v6798_v59, 16  ;;  %v2719_v3 = vld [vmem:[#allocation2 + $0x24] sm:$0xe] }
  0x73   :  { %v5271_v24 = vcombine.low %v2192_v61, %v2202_v14  ;;  %v303_v26 = vrot.slane %v302_v5, 4  ;;  %v312_v28 = vor.u32 %v311_v8, %v307_v55  ;;  %v2784_v31 = vsel %vm6804_vm6, %v5300_v9, %v2783_v62 }
  0x74   :  { %v2787_v36 = vsel %vm6804_vm6, %v2785_v40, %v2786_v63  ;;  %v322_v37 = vrot.slane %v320_v16, 4  ;;  %v325_v38 = vrot.slane %v323_v23, 5  ;;  %v329_v39 = vshll.u32 %v6810_v11, 16 }
  0x75   :  { %5902 = vmatmul.mubr.msk.bf16.gmra.mrb[12].mxu0 %vm568_vm3, %v5271_v24  ;;  %v308_v17 = vsel %vm6636_vm2, %v303_v26, %v307_v55  ;;  %v313_v44 = vrot.slane %v312_v28, 4  ;;  %v5316_v62 = vcombine.low %v2784_v31, %v2787_v36  ;;  %v333_v45 = vshrl.u32 %v6810_v11, 16  ;;  %v6854_v24 = vld [vmem:[#allocation2 + $0x84] sm:$0xf] }
  0x76   :  { %v326_v18 = vor.u32 %v325_v38, %v322_v37  ;;  %v331_v48 = vrot.slane %v329_v39, 5  ;;  %v339_v63 = vshll.u32 %v93_v32, 16  ;;  %v5301_v50 = vrot.slane %v2718_v34, 9  ;;  %v6857_v34 = vld [vmem:[#allocation2 + $0x88] sm:$0xf] }
  0x77   :  { %v318_v47 = vsel %vm6636_vm2, %v313_v44, %v317_v15  ;;  %5929 = vmatprep.mubr.msk.bf16.mxu0 %vm568_vm3, %v5316_v62  ;;  %v335_v51 = vrot.slane %v333_v45, 4  ;;  %v2794_v53 = vsel %vm6804_vm6, %v6671_v27, %v2793_v25  ;;  %v344_v55 = vshrl.u32 %v6826_v42, 16  ;;  %v95_v44 = vld [vmem:[#allocation2 + $0x8c] sm:$0x1] }
  0x78   :  { %v5112_v57 = vcombine.low %v308_v17, %v318_v47  ;;  %v327_v58 = vrot.slane %v326_v18, 4  ;;  %v341_v61 = vrot.slane %v339_v63, 5  ;;  %v2791_v0 = vsel %vm6804_vm6, %v5301_v50, %v2790_v20  ;;  %v2720_v50 = vld [vmem:[#allocation2 + $0x30] sm:$0xe]  ;;  %v6371_v47 = vld [vmem:[#allocation5 + $0xd0] sm:$0xff]  }
  0x79   :  { %v336_v5 = vor.u32 %v335_v51, %v331_v48  ;;  %v5317_v8 = vcombine.low %v2791_v0, %v2794_v53  ;;  %v346_v9 = vrot.slane %v344_v55, 4  ;;  %v347_v1 = vshll.u32 %v6826_v42, 16  ;;  %v6872_v55 = vld [vmem:[#allocation2 + $0x90] sm:$0xf] }
  0x7a   :  { %5745 = vmatprep.mubr.msk.bf16.mxu1 %vm568_vm3, %v5112_v57  ;;  %v332_v25 = vsel %vm6636_vm2, %v327_v58, %v331_v48  ;;  %v353_v27 = vshll.u32 %v6832_v46, 16  ;;  %v357_v40 = vshrl.u32 %v6832_v46, 16  ;;  %v363_v14 = vshll.u32 %v94_v54, 16 }
  0x7b   :  { %v337_v15 = vrot.slane %v336_v5, 4  ;;  %v349_v16 = vrot.slane %v347_v1, 5  ;;  %v5302_v20 = vrot.slane %v2719_v3, 9  ;;  %v2797_v23 = vrot.slane %v6675_v43, 5  ;;  %v6377_v3 = vld [vmem:[#allocation5 + $0xd8] sm:$0xff]  }
  0x7c   :  { %v355_v26 = vrot.slane %v353_v27, 5  ;;  %v359_v28 = vrot.slane %v357_v40, 4  ;;  %v365_v31 = vrot.slane %v363_v14, 5  ;;  %v2800_v32 = vrot.slane %v6677_v49, 5 }
  0x7d   :  { %v342_v36 = vsel %vm6636_vm2, %v337_v15, %v341_v61  ;;  %5930 = vmatmul.mubr.msk.bf16.vlgmr.msra.gmra.mrb[0].mxu0 %vm568_vm3, %v5317_v8  ;;  %v350_v37 = vor.u32 %v349_v16, %v346_v9  ;;  %v2798_v38 = vsel %vm6804_vm6, %v5302_v20, %v2797_v23  ;;  %v2799_v39 = vrot.slane %v2797_v23, 4  ;;  %v96_v16 = vld [vmem:[#allocation2 + $0x98] sm:$0x1]  ;;  %v2721_v20 = vld [vmem:[#allocation2 + $0x3c] sm:$0xe] }
  0x7e   :  { %v5113_v43 = vcombine.low %v332_v25, %v342_v36  ;;  %5962 = vmatpush3.bf16.msra.mxu0 %v6709_v13  ;;  %v360_v17 = vor.u32 %v359_v28, %v355_v26  ;;  %v368_v62 = vshrl.u32 %v6854_v24, 16  ;;  %v371_v49 = vshll.u32 %v6854_v24, 16  ;;  %v6880_v25 = vld [vmem:[#allocation2 + $0x94] sm:$0xf] }
  0x7f   :  { %v351_v45 = vrot.slane %v350_v37, 4  ;;  %v2801_v18 = vsel %vm6804_vm6, %v2799_v39, %v2800_v32  ;;  %v377_v48 = vshll.u32 %v6857_v34, 16  ;;  %v381_v63 = vshrl.u32 %v6857_v34, 16  ;;  %5963 = vmatprep.subr.bf16.mxu0 %v6367_v52 }
  0x80   :  { %5746 = vmatmul.mubr.msk.bf16.gmra.mrb[16].mxu1 %vm568_vm3, %v5113_v43  ;;  %v361_v13 = vrot.slane %v360_v17, 4  ;;  %v5318_v51 = vcombine.low %v2798_v38, %v2801_v18  ;;  %v370_v53 = vrot.slane %v368_v62, 4  ;;  %v373_v54 = vrot.slane %v371_v49, 5  ;;  %v6894_v43 = vld [vmem:[#allocation2 + $0x9c] sm:$0xf] }
  0x81   :  { %v356_v57 = vsel %vm6636_vm2, %v351_v45, %v355_v26  ;;  %v379_v58 = vrot.slane %v377_v48, 5  ;;  %v383_v61 = vrot.slane %v381_v63, 4  ;;  %v387_v0 = vshll.u32 %v95_v44, 16  ;;  %v6898_v45 = vld [vmem:[#allocation2 + $0xa0] sm:$0xf]  ;;  %v6900_v18 = vld [vmem:[#allocation5 + $0xe0] sm:$0xff]  }
  0x82   :  { %v366_v5 = vsel %vm6636_vm2, %v361_v13, %v365_v31  ;;  %5933 = vmatprep.mubr.msk.bf16.mxu0 %vm568_vm3, %v5318_v51  ;;  %v374_v8 = vor.u32 %v373_v54, %v370_v53  ;;  %v5303_v9 = vrot.slane %v2720_v50, 9  ;;  %v2804_v1 = vrot.slane %v6694_v29, 5  ;;  %5964 = vmatpush3.bf16.msra.mxu0 %v6367_v52  ;;  %v97_v51 = vld [vmem:[#allocation2 + $0xa4] sm:$0x1] }
  0x83   :  { %v5114_v27 = vcombine.low %v356_v57, %v366_v5  ;;  %v384_v40 = vor.u32 %v383_v61, %v379_v58  ;;  %v389_v14 = vrot.slane %v387_v0, 5  ;;  %v2807_v15 = vrot.slane %v6696_v35, 5  ;;  %5965 = vmatprep.subr.bf16.mxu0 %v6371_v47 }
  0x84   :  { %v375_v23 = vrot.slane %v374_v8, 4  ;;  %v2805_v26 = vsel %vm6804_vm6, %v5303_v9, %v2804_v1  ;;  %v2806_v28 = vrot.slane %v2804_v1, 4  ;;  %v392_v31 = vshrl.u32 %v6872_v55, 16 }
  0x85   :  { %5749 = vmatprep.mubr.msk.bf16.mxu1 %vm568_vm3, %v5114_v27  ;;  %v385_v29 = vrot.slane %v384_v40, 4  ;;  %v395_v52 = vshll.u32 %v6872_v55, 16  ;;  %v401_v32 = vshll.u32 %v6880_v25, 16  ;;  %v405_v36 = vshrl.u32 %v6880_v25, 16 }
  0x86   :  { %v380_v35 = vsel %vm6636_vm2, %v375_v23, %v379_v58  ;;  %v2808_v37 = vsel %vm6804_vm6, %v2806_v28, %v2807_v15  ;;  %v394_v38 = vrot.slane %v392_v31, 4  ;;  %v411_v39 = vshll.u32 %v96_v16, 16  ;;  %5966 = vmatpush3.bf16.msra.mxu0 %v6371_v47  ;;  %v2722_v58 = vld [vmem:[#allocation2 + $0x48] sm:$0xe] }
  0x87   :  { %v390_v17 = vsel %vm6636_vm2, %v385_v29, %v389_v14  ;;  %v5319_v44 = vcombine.low %v2805_v26, %v2808_v37  ;;  %v397_v62 = vrot.slane %v395_v52, 5  ;;  %v403_v49 = vrot.slane %v401_v32, 5  ;;  %5967 = vmatprep.subr.bf16.mxu0 %v6377_v3 }
  0x88   :  { %v5115_v48 = vcombine.low %v380_v35, %v390_v17  ;;  %v407_v63 = vrot.slane %v405_v36, 4  ;;  %v413_v50 = vrot.slane %v411_v39, 5  ;;  %v5304_v13 = vrot.slane %v2721_v20, 9  ;;  %v6915_v20 = vld [vmem:[#allocation2 + $0xac] sm:$0xf] }
  0x89   :  { %5934 = vmatmul.mubr.msk.bf16.gmra.mrb[4].mxu0 %vm568_vm3, %v5319_v44  ;;  %v398_v53 = vor.u32 %v397_v62, %v394_v38  ;;  %v2811_v47 = vrot.slane %v6713_v21, 5  ;;  %v2814_v54 = vrot.slane %v6717_v41, 5  ;;  %v416_v57 = vshrl.u32 %v6894_v43, 16  ;;  %v6912_v41 = vld [vmem:[#allocation2 + $0xa8] sm:$0xf] }
  0x8a   :  { %5750 = vmatmul.mubr.msk.bf16.gmra.mrb[20].mxu1 %vm568_vm3, %v5115_v48  ;;  %v408_v61 = vor.u32 %v407_v63, %v403_v49  ;;  %v419_v0 = vshll.u32 %v6894_v43, 16  ;;  %v425_v5 = vshll.u32 %v6898_v45, 16  ;;  %v429_v8 = vshrl.u32 %v6898_v45, 16  ;;  %5968 = vmatpush3.bf16.msra.mxu0 %v6377_v3  ;;  %v98_v39 = vld [vmem:[#allocation2 + $0xb0] sm:$0x1] }
  0x8b   :  { %v399_v9 = vrot.slane %v398_v53, 4  ;;  %v2812_v1 = vsel %vm6804_vm6, %v5304_v13, %v2811_v47  ;;  %v2813_v21 = vrot.slane %v2811_v47, 4  ;;  %v418_v27 = vrot.slane %v416_v57, 4  ;;  %6001 = vmatprep.subr.bf16.mxu0 %v6900_v18  ;;  %v2723_v17 = vld [vmem:[#allocation2 + $0x54] sm:$0xe] }
  0x8c   :  { %v409_v40 = vrot.slane %v408_v61, 4  ;;  %v421_v14 = vrot.slane %v419_v0, 5  ;;  %v427_v15 = vrot.slane %v425_v5, 5  ;;  %v431_v16 = vrot.slane %v429_v8, 4  ;;  %v6928_v63 = vld [vmem:[#allocation2 + $0xb4] sm:$0xf] }
  0x8d   :  { %v404_v23 = vsel %vm6636_vm2, %v399_v9, %v403_v49  ;;  %v2815_v3 = vsel %vm6804_vm6, %v2813_v21, %v2814_v54  ;;  %v435_v26 = vshll.u32 %v97_v51, 16  ;;  %v5305_v28 = vrot.slane %v2722_v58, 9  ;;  %v6935_v51 = vld [vmem:[#allocation2 + $0xb8] sm:$0xf] }
  0x8e   :  { %v414_v31 = vsel %vm6636_vm2, %v409_v40, %v413_v50  ;;  %v5320_v29 = vcombine.low %v2812_v1, %v2815_v3  ;;  %v422_v52 = vor.u32 %v421_v14, %v418_v27  ;;  %v432_v32 = vor.u32 %v431_v16, %v427_v15  ;;  %v99_v27 = vld [vmem:[#allocation2 + $0xbc] sm:$0x1]  ;;  %v2724_v40 = vld [vmem:[#allocation2 + $0x60] sm:$0xe] }
  0x8f   :  { %v5116_v36 = vcombine.low %v404_v23, %v414_v31  ;;  %v437_v35 = vrot.slane %v435_v26, 5  ;;  %v2818_v37 = vrot.slane %v6731_v7, 5  ;;  %v2821_v38 = vrot.slane %v6738_v22, 5 }
  0x90   :  { %5937 = vmatprep.mubr.msk.bf16.mxu0 %vm568_vm3, %v5320_v29  ;;  %v423_v44 = vrot.slane %v422_v52, 4  ;;  %v433_v62 = vrot.slane %v432_v32, 4  ;;  %v440_v49 = vshrl.u32 %v6912_v41, 16  ;;  %v443_v48 = vshll.u32 %v6912_v41, 16  ;;  %v2725_v29 = vld [vmem:[#allocation2 + $0x6c] sm:$0xe] }
  0x91   :  { %5753 = vmatprep.mubr.msk.bf16.mxu1 %vm568_vm3, %v5116_v36  ;;  %v2819_v50 = vsel %vm6804_vm6, %v5305_v28, %v2818_v37  ;;  %v2820_v7 = vrot.slane %v2818_v37, 4  ;;  %v449_v22 = vshll.u32 %v6915_v20, 16  ;;  %v453_v13 = vshrl.u32 %v6915_v20, 16  ;;  %v1989_v37 = vld [vmem:[#allocation2 + $0x74] sm:$0x1] }
  0x92   :  { %v428_v53 = vsel %vm6636_vm2, %v423_v44, %v427_v15  ;;  %v438_v47 = vsel %vm6636_vm2, %v433_v62, %v437_v35  ;;  %v442_v54 = vrot.slane %v440_v49, 4  ;;  %v445_v57 = vrot.slane %v443_v48, 5 }
  0x93   :  { %v5117_v58 = vcombine.low %v428_v53, %v438_v47  ;;  %v2822_v61 = vsel %vm6804_vm6, %v2820_v7, %v2821_v38  ;;  %v451_v0 = vrot.slane %v449_v22, 5  ;;  %v455_v5 = vrot.slane %v453_v13, 4 }
  0x94   :  { %v5321_v8 = vcombine.low %v2819_v50, %v2822_v61  ;;  %v446_v9 = vor.u32 %v445_v57, %v442_v54  ;;  %v459_v1 = vshll.u32 %v98_v39, 16  ;;  %v5306_v21 = vrot.slane %v2723_v17, 9 }
  0x95   :  { %5754 = vmatmul.mubr.msk.bf16.gmra.mrb[24].mxu1 %vm568_vm3, %v5117_v58  ;;  %v456_v14 = vor.u32 %v455_v5, %v451_v0  ;;  %v2825_v15 = vrot.slane %v6748_v2, 5  ;;  %v2828_v16 = vrot.slane %v6753_v10, 5  ;;  %v464_v23 = vshrl.u32 %v6928_v63, 16  ;;  %v1988_v2 = vld [vmem:[#allocation2 + $0x70] sm:$0xf] }
  0x96   :  { %5938 = vmatmul.mubr.msk.bf16.gmra.mrb[8].mxu0 %vm568_vm3, %v5321_v8  ;;  %v447_v3 = vrot.slane %v446_v9, 4  ;;  %v461_v26 = vrot.slane %v459_v1, 5  ;;  %v467_v28 = vshll.u32 %v6928_v63, 16  ;;  %v473_v31 = vshll.u32 %v6935_v51, 16  ;;  %v6965_v1 = vld [vmem:[#allocation2 + $0x7c] sm:$0xf] }
  0x97   :  { %v457_v52 = vrot.slane %v456_v14, 4  ;;  %v2826_v32 = vsel %vm6804_vm6, %v5306_v21, %v2825_v15  ;;  %v2827_v36 = vrot.slane %v2825_v15, 4  ;;  %v466_v35 = vrot.slane %v464_v23, 4  ;;  %v6967_v21 = vld [vmem:[#allocation2 + $0x80] sm:$0x1] }
  0x98   :  { %v452_v10 = vsel %vm6636_vm2, %v447_v3, %v451_v0  ;;  %v469_v38 = vrot.slane %v467_v28, 5  ;;  %v475_v39 = vrot.slane %v473_v31, 5  ;;  %v477_v17 = vshrl.u32 %v6935_v51, 16  ;;  %v1994_v15 = vld [vmem:[#allocation2 + $0x88] sm:$0xf] }
  0x99   :  { %v462_v44 = vsel %vm6636_vm2, %v457_v52, %v461_v26  ;;  %v2829_v62 = vsel %vm6804_vm6, %v2827_v36, %v2828_v16  ;;  %v483_v49 = vshll.u32 %v99_v27, 16  ;;  %v5307_v48 = vrot.slane %v2724_v40, 9  ;;  %v6434_v23 = vld [vmem:[#allocation2] sm:$0xf]  ;;  %v6975_v3 = vld [vmem:[#allocation2 + $0x4] sm:$0xf] }
  0x9a   :  { %v5118_v50 = vcombine.low %v452_v10, %v462_v44  ;;  %v5322_v7 = vcombine.low %v2826_v32, %v2829_v62  ;;  %v470_v22 = vor.u32 %v469_v38, %v466_v35  ;;  %v479_v13 = vrot.slane %v477_v17, 4  ;;  %v1995_v28 = vld [vmem:[#allocation2 + $0x8c] sm:$0x1]  ;;  %v2727_v31 = vld [vmem:[#allocation2 + $0x84] sm:$0xe] }
  0x9b   :  { %v485_v53 = vrot.slane %v483_v49, 5  ;;  %v2832_v47 = vrot.slane %v6772_v56, 5  ;;  %v2835_v54 = vrot.slane %v6775_v60, 5  ;;  %v5308_v57 = vrot.slane %v2725_v29, 9  ;;  %v2726_v56 = vld [vmem:[#allocation2 + $0x78] sm:$0xe] }
  0x9c   :  { %5757 = vmatprep.mubr.msk.bf16.mxu1 %vm568_vm3, %v5118_v50  ;;  %5941 = vmatprep.mubr.msk.bf16.mxu0 %vm568_vm3, %v5322_v7  ;;  %v471_v58 = vrot.slane %v470_v22, 4  ;;  %v480_v61 = vor.u32 %v479_v13, %v475_v39  ;;  %v2839_v0 = vrot.slane %v1988_v2, 5  ;;  %v2842_v5 = vrot.slane %v1989_v37, 5  ;;  %v1997_v37 = vld [vmem:[#allocation2 + $0x94] sm:$0xf] }
  0x9d   :  { %v2833_v8 = vsel %vm6804_vm6, %v5307_v48, %v2832_v47  ;;  %v2834_v9 = vrot.slane %v2832_v47, 4  ;;  %v5140_v26 = vcombine.low %v6434_v23, %v6975_v3  ;;  %v5309_v36 = vrot.slane %v2726_v56, 9  ;;  %v1998_v10 = vld [vmem:[#allocation2 + $0x98] sm:$0x1]  ;;  %v2728_v49 = vld [vmem:[#allocation2 + $0x90] sm:$0xe] }
  0x9e   :  { %v476_v60 = vsel %vm6636_vm2, %v471_v58, %v475_v39  ;;  %v481_v27 = vrot.slane %v480_v61, 4  ;;  %v2840_v40 = vsel %vm6804_vm6, %v5308_v57, %v2839_v0  ;;  %v2841_v14 = vrot.slane %v2839_v0, 4  ;;  %v2000_v22 = vld [vmem:[#allocation2 + $0xa0] sm:$0xf]  ;;  %v2001_v47 = vld [vmem:[#allocation2 + $0xa4] sm:$0x1] }
  0x9f   :  { %v2836_v16 = vsel %vm6804_vm6, %v2834_v9, %v2835_v54  ;;  %v2846_v38 = vrot.slane %v6965_v1, 5  ;;  %v2849_v39 = vrot.slane %v6967_v21, 5  ;;  %v5310_v17 = vrot.slane %v2727_v31, 9  ;;  %v2729_v54 = vld [vmem:[#allocation2 + $0x9c] sm:$0xe] }
  0xa0   :  { %v486_v29 = vsel %vm6636_vm2, %v481_v27, %v485_v53  ;;  %v5323_v52 = vcombine.low %v2833_v8, %v2836_v16  ;;  %v2843_v32 = vsel %vm6804_vm6, %v2841_v14, %v2842_v5  ;;  %v2853_v44 = vrot.slane %v1994_v15, 5  ;;  %v6436_v57 = vld [vmem:[#allocation2 + $0xc] sm:$0xf]  ;;  %v6992_v58 = vld [vmem:[#allocation2 + $0x10] sm:$0xf] }
  0xa1   :  { %v5119_v35 = vcombine.low %v476_v60, %v486_v29  ;;  %v5324_v2 = vcombine.low %v2840_v40, %v2843_v32  ;;  %v2856_v62 = vrot.slane %v1995_v28, 5  ;;  %v2847_v48 = vsel %vm6804_vm6, %v5309_v36, %v2846_v38  ;;  %v2003_v9 = vld [vmem:[#allocation2 + $0xac] sm:$0xf]  ;;  %v2006_v14 = vld [vmem:[#allocation2 + $0xb8] sm:$0xf] }
  0xa2   :  { %5942 = vmatmul.mubr.msk.bf16.gmra.mrb[12].mxu0 %vm568_vm3, %v5323_v52  ;;  %v2848_v50 = vrot.slane %v2846_v38, 4  ;;  %v2860_v7 = vrot.slane %v1997_v37, 5  ;;  %v2854_v13 = vsel %vm6804_vm6, %v5310_v17, %v2853_v44  ;;  %v2855_v53 = vrot.slane %v2853_v44, 4  ;;  %v6438_v15 = vld [vmem:[#allocation2 + $0x18] sm:$0xf]  ;;  %v6376_v52 = vld [vmem:[#allocation5 + $0x48] sm:$0xff]  }
  0xa3   :  { %5758 = vmatmul.mubr.msk.bf16.gmra.mrb[28].mxu1 %vm568_vm3, %v5119_v35  ;;  %5945 = vmatprep.mubr.msk.bf16.mxu0 %vm568_vm3, %v5324_v2  ;;  %v5141_v61 = vcombine.low %v6436_v57, %v6992_v58  ;;  %v5311_v5 = vrot.slane %v2728_v49, 9  ;;  %v2863_v8 = vrot.slane %v1998_v10, 5  ;;  %v2867_v40 = vrot.slane %v2000_v22, 5  ;;  %v6999_v16 = vld [vmem:[#allocation2 + $0x1c] sm:$0xf]  ;;  %v6383_v49 = vld [vmem:[#allocation5 + $0x50] sm:$0xff]  }
  0xa4   :  { %5769 = vmatprep.mubr.msk.bf16.mxu1 %vm568_vm3, %v5140_v26  ;;  %v2850_v0 = vsel %vm6804_vm6, %v2848_v50, %v2849_v39  ;;  %v2857_v60 = vsel %vm6804_vm6, %v2855_v53, %v2856_v62  ;;  %v2862_v27 = vrot.slane %v2860_v7, 4  ;;  %v5142_v23 = vcombine.low %v6438_v15, %v6999_v16  ;;  %v2004_v32 = vld [vmem:[#allocation2 + $0xb0] sm:$0x1]  ;;  %v2730_v2 = vld [vmem:[#allocation2 + $0xa8] sm:$0xe]  ;;  %v6440_v10 = vld [vmem:[#allocation5 + $0x40] sm:$0xff]  }
  0xa5   :  { %v5325_v56 = vcombine.low %v2847_v48, %v2850_v0  ;;  %v5326_v26 = vcombine.low %v2854_v13, %v2857_v60  ;;  %v5312_v28 = vrot.slane %v2729_v54, 9  ;;  %v2870_v31 = vrot.slane %v2001_v47, 5  ;;  %v2731_v17 = vld [vmem:[#allocation2 + $0xb4] sm:$0xe]  ;;  %v2007_v62 = vld [vmem:[#allocation2 + $0xbc] sm:$0x1] }
  0xa6   :  { %v2869_v29 = vrot.slane %v2867_v40, 4  ;;  %v2861_v36 = vsel %vm6804_vm6, %v5311_v5, %v2860_v7  ;;  %v2864_v35 = vsel %vm6804_vm6, %v2862_v27, %v2863_v8  ;;  %v2874_v37 = vrot.slane %v2003_v9, 5  ;;  %v6441_v48 = vld [vmem:[#allocation2 + $0x24] sm:$0xf]  ;;  %v7014_v50 = vld [vmem:[#allocation2 + $0x28] sm:$0xf] }
  0xa7   :  { %v2868_v38 = vsel %vm6804_vm6, %v5312_v28, %v2867_v40  ;;  %v2881_v44 = vrot.slane %v2006_v14, 5  ;;  %v5143_v7 = vcombine.low %v6441_v48, %v7014_v50  ;;  %v5327_v22 = vcombine.low %v2861_v36, %v2864_v35  ;;  %v6443_v0 = vld [vmem:[#allocation2 + $0x30] sm:$0xf]  ;;  %v7017_v5 = vld [vmem:[#allocation2 + $0x34] sm:$0xf] }
  0xa8   :  { %v2871_v39 = vsel %vm6804_vm6, %v2869_v29, %v2870_v31  ;;  %v5313_v13 = vrot.slane %v2730_v2, 9  ;;  %v2876_v47 = vrot.slane %v2874_v37, 4  ;;  %v2877_v54 = vrot.slane %v2004_v32, 5  ;;  %v6393_v60 = vld [vmem:[#allocation5 + $0x58] sm:$0xff]   ;;  %v2732_v28 = vld [vmem:[#allocation2 + $0xc0] sm:$0xe] }
  0xa9   :  { %v5328_v53 = vcombine.low %v2868_v38, %v2871_v39  ;;  %v5314_v57 = vrot.slane %v2731_v17, 9  ;;  %v5144_v8 = vcombine.low %v6443_v0, %v7017_v5  ;;  %v2883_v9 = vrot.slane %v2881_v44, 4  ;;  %v7032_v31 = vld [vmem:[#allocation5 + $0x60] sm:$0xff]   ;;  %v6447_v38 = vld [vmem:[#allocation2 + $0x48] sm:$0xf] }
  0xaa   :  { %5946 = vmatmul.mubr.msk.bf16.gmra.mrb[16].mxu0 %vm568_vm3, %v5325_v56  ;;  %v2884_v56 = vrot.slane %v2007_v62, 5  ;;  %v2875_v27 = vsel %vm6804_vm6, %v5313_v13, %v2874_v37  ;;  %v2878_v40 = vsel %vm6804_vm6, %v2876_v47, %v2877_v54  ;;  %v6445_v29 = vld [vmem:[#allocation2 + $0x3c] sm:$0xf]  ;;  %v5315_v2 = vrot.slane %v2732_v28, 9  ;;  %v7037_v39 = vld [vmem:[#allocation2 + $0x4c] sm:$0xf] }
  0xab   :  { %5770 = vmatmul.mubr.msk.bf16.vlgmr.msra.gmra.mrb[0].mxu1 %vm568_vm3, %v5141_v61  ;;  %5949 = vmatprep.mubr.msk.bf16.mxu0 %vm568_vm3, %v5326_v26  ;;  %v2009_v61 = vld [vmem:[#allocation2 + $0xc4] sm:$0xf]  ;;  %v2882_v15 = vsel %vm6804_vm6, %v5314_v57, %v2881_v44  ;;  %v2010_v26 = vld [vmem:[#allocation2 + $0xc8] sm:$0x1]  ;;  %v5329_v36 = vcombine.low %v2875_v27, %v2878_v40  ;;  %v5146_v17 = vcombine.low %v6447_v38, %v7037_v39  ;;  %v2241_v48 = vshrl.u32 %v6965_v1, 16  ;;  %v6381_v13 = vld [vmem:[#allocation2 + $0x18] sm:$0xff]  }
  0xac   :  { %5802 = vmatpush3.bf16.msra.mxu1 %v6440_v10  ;;  %5773 = vmatprep.mubr.msk.bf16.mxu1 %vm568_vm3, %v5142_v23  ;;  %v2888_v14 = vrot.slane %v2009_v61, 5  ;;  %v2885_v23 = vsel %vm6804_vm6, %v2883_v9, %v2884_v56  ;;  %v2891_v10 = vrot.slane %v2010_v26, 5  ;;  %v5148_v47 = vcombine.low %v6780_v6, %v6783_v12  ;;  %v1092_v61 = vld [vmem:[#allocation2 + $0xc] sm:$0xe]  ;;  %v1093_v12 = vld [vmem:[#allocation2 + $0x18] sm:$0xe] }
  0xad   :  { %5803 = vmatprep.subr.bf16.mxu1 %v6376_v52  ;;  %v5330_v35 = vcombine.low %v2882_v15, %v2885_v23  ;;  %v7058_v57 = vrot.slane %v2241_v48, 4  ;;  %v6450_v9 = vld [vmem:[#allocation2 + $0x8] sm:$0x1]  ;;  %v2247_v27 = vshll.u32 %v6967_v21, 16  ;;  %v1094_v40 = vld [vmem:[#allocation2 + $0x24] sm:$0xe]  ;;  %v5150_v23 = vcombine.low %v6826_v42, %v6832_v46 }
  0xae   :  { %v2890_v37 = vrot.slane %v2888_v14, 4  ;;  %v2889_v44 = vsel %vm6804_vm6, %v5315_v2, %v2888_v14  ;;  %v1147_v56 = vrot.slane %v6450_v9, 5  ;;  %v1165_v14 = vrot.slane %v7014_v50, 5  ;;  %v6384_v15 = vld [vmem:[#allocation2 + $0x24] sm:$0xff]   ;;  %v6451_v21 = vld [vmem:[#allocation2 + $0x20] sm:$0x1] }
  0xaf   :  { %v5152_v28 = vcombine.low %v6872_v55, %v6880_v25  ;;  %v5179_v42 = vrot.slane %v1094_v40, 9  ;;  %v5153_v46 = vcombine.low %v6894_v43, %v6898_v45  ;;  %v6395_v2 = vld [vmem:[#allocation5 + $0xe8] sm:$0xff]   ;;  %v6399_v43 = vld [vmem:[#allocation2 + $0x6c] sm:$0xff]   ;;  %vm5053_vm7 = vcmask 519168  }
  0xb0   :  { %5804 = vmatpush3.bf16.msra.mxu1 %v6376_v52  ;;  %v7034_v52 = vld [vmem:[#allocation2 + $0x40] sm:$0xf]  ;;  %v2892_v62 = vsel %vm6804_vm6, %v2890_v37, %v2891_v10  ;;  %v1167_v37 = vrot.slane %v1165_v14, 4  ;;  %v6452_v10 = vld [vmem:[#allocation2 + $0x2c] sm:$0x1] }
  0xb1   :  { %5805 = vmatprep.subr.bf16.mxu1 %v6383_v49  ;;  %v5145_v32 = vcombine.low %v6445_v29, %v7034_v52  ;;  %v1168_v38 = vrot.slane %v6452_v10, 5 }
  0xb2   :  { %5950 = vmatmul.mubr.msk.bf16.gmra.mrb[20].mxu0 %vm568_vm3, %v5327_v22  ;;  %v5147_v22 = vcombine.low %v6756_v19, %v6761_v30  ;;  %v1144_v19 = vrot.slane %v6975_v3, 5  ;;  %v6449_v30 = vld [vmem:[#allocation2 + $0x14] sm:$0x1]  ;;  %v5149_v3 = vcombine.low %v6798_v59, %v6810_v11 }
  0xb3   :  { %5774 = vmatmul.mubr.msk.bf16.gmra.mrb[4].mxu1 %vm568_vm3, %v5143_v7  ;;  %5953 = vmatprep.mubr.msk.bf16.mxu0 %vm568_vm3, %v5328_v53  ;;  %v5331_v7 = vcombine.low %v2889_v44, %v2892_v62  ;;  %v1151_v53 = vrot.slane %v6992_v58, 5  ;;  %v1154_v0 = vrot.slane %v6449_v30, 5  ;;  %v5177_v58 = vrot.slane %v1092_v61, 9 }
  0xb4   :  { %5777 = vmatprep.mubr.msk.bf16.mxu1 %vm568_vm3, %v5144_v8  ;;  %5806 = vmatpush3.bf16.msra.mxu1 %v6383_v49  ;;  %v2237_v49 = vshll.u32 %v6965_v1, 16  ;;  %v1091_v1 = vld [vmem:[#allocation2] sm:$0xe]  ;;  %v1158_v8 = vrot.slane %v6999_v16, 5  ;;  %v5151_v16 = vcombine.low %v6854_v24, %v6857_v34  ;;  %v1146_v29 = vrot.slane %v1144_v19, 4 }
  0xb5   :  { %5807 = vmatprep.subr.bf16.mxu1 %v6393_v60  ;;  %v1153_v6 = vrot.slane %v1151_v53, 4  ;;  %v5176_v26 = vrot.slane %v1091_v1, 9  ;;  %v7080_v50 = vsel %vm6804_vm6, %v5177_v58, %v1151_v53  ;;  %v1172_v44 = vrot.slane %v7017_v5, 5  ;;  %v1097_v1 = vld [vmem:[#allocation2 + $0x48] sm:$0xe] }
  0xb6   :  { %v7056_v54 = vrot.slane %v2237_v49, 5  ;;  %v1160_v11 = vrot.slane %v1158_v8, 4  ;;  %v7105_v5 = vsel %vm6804_vm6, %v1146_v29, %v1147_v56  ;;  %v1098_v58 = vld [vmem:[#allocation2 + $0x54] sm:$0xe]  ;;  %v6453_v56 = vld [vmem:[#allocation2 + $0x38] sm:$0x1] }
  0xb7   :  { %v7084_v59 = vsel %vm6804_vm6, %v1153_v6, %v1154_v0  ;;  %v7096_v48 = vsel %vm6804_vm6, %v5176_v26, %v1144_v19  ;;  %v7121_v19 = vsel %vm6804_vm6, %v5179_v42, %v1165_v14  ;;  %v1186_v0 = vrot.slane %v7037_v39, 5  ;;  %v3602_v6 = vld [vmem:[#allocation2 + $0x18] sm:$0xf]  ;;  %v6455_v29 = vld [vmem:[#allocation2 + $0x50] sm:$0x1] }
  0xb8   :  { %5808 = vmatpush3.bf16.msra.mxu1 %v6393_v60  ;;  %v1174_v9 = vrot.slane %v1172_v44, 4  ;;  %v5182_v26 = vrot.slane %v1097_v1, 9  ;;  %v1099_v39 = vld [vmem:[#allocation2 + $0x60] sm:$0xe]  ;;  %v6409_v1 = vld [vmem:[#allocation5 + $0xf8] sm:$0xff]  }
  0xb9   :  { %5841 = vmatprep.subr.bf16.mxu1 %v7032_v31  ;;  %v1188_v42 = vrot.slane %v1186_v0, 4  ;;  %v3607_v49 = vld [vmem:[#allocation2 + $0x2c] sm:$0x1] }
  0xba   :  { %5954 = vmatmul.mubr.msk.bf16.gmra.mrb[24].mxu0 %vm568_vm3, %v5329_v36  ;;  %v1161_v36 = vrot.slane %v6451_v21, 5 }
  0xbb   :  { %5778 = vmatmul.mubr.msk.bf16.gmra.mrb[8].mxu1 %vm568_vm3, %v5145_v32  ;;  %5957 = vmatprep.mubr.msk.bf16.mxu0 %vm568_vm3, %v5330_v35  ;;  %v5178_v32 = vrot.slane %v1093_v12, 9  ;;  %v6387_v35 = vld [vmem:[#allocation2 + $0x30] sm:$0xff]   ;;  %v6391_v12 = vld [vmem:[#allocation2 + $0x48] sm:$0xff]  }
  0xbc   :  { %5781 = vmatprep.mubr.msk.bf16.mxu1 %vm568_vm3, %v5146_v17  ;;  %v1095_v17 = vld [vmem:[#allocation2 + $0x30] sm:$0xe] }
  0xbd   :  { %v7111_v61 = vsel %vm6804_vm6, %v5178_v32, %v1158_v8  ;;  %v5180_v30 = vrot.slane %v1095_v17, 9  ;;  %v7126_v8 = vsel %vm6804_vm6, %v1167_v37, %v1168_v38  ;;  %v1189_v32 = vrot.slane %v6455_v29, 5  ;;  %v3606_v29 = vld [vmem:[#allocation2 + $0x28] sm:$0xf] }
  0xbe   :  { %v5183_v37 = vrot.slane %v1098_v58, 9  ;;  %v3684_v60 = vshll.u32 %v3606_v29, 16 }
  0xbf   :  { %v7168_v24 = vsel %vm6804_vm6, %v1188_v42, %v1189_v32  ;;  %v3688_v32 = vshrl.u32 %v3606_v29, 16  ;;  %v6397_v42 = vld [vmem:[#allocation2 + $0x60] sm:$0xff]  }
  0xc2   :  { %5958 = vmatmul.mubr.msk.bf16.gmra.mrb[28].mxu0 %vm568_vm3, %v5331_v7  ;;  %v1096_v7 = vld [vmem:[#allocation2 + $0x3c] sm:$0xe] }
  0xc3   :  { %5782 = vmatmul.mubr.msk.bf16.gmra.mrb[12].mxu1 %vm568_vm3, %v5147_v22  ;;  %5969 = vmatprep.mubr.msk.bf16.mxu0 %vm568_vm3, %v6381_v13  ;;  %v1179_v22 = vrot.slane %v7034_v52, 5  ;;  %v7099_v13 = vrot.slane %v2247_v27, 5  ;;  %v6389_v52 = vld [vmem:[#allocation2 + $0x3c] sm:$0xff]   ;;  %v1175_v27 = vrot.slane %v6453_v56, 5  ;;  %v5181_v40 = vrot.slane %v1096_v7, 9 }
  0xc4   :  { %5785 = vmatprep.mubr.msk.bf16.mxu1 %vm568_vm3, %v5148_v47  ;;  %v6403_v47 = vld [vmem:[#allocation5 + $0xf0] sm:$0xff]   ;;  %v7136_v7 = vsel %vm6804_vm6, %v5180_v30, %v1172_v44  ;;  %v6456_v56 = vld [vmem:[#allocation2 + $0x58] sm:$0xf]  ;;  %v7153_v44 = vsel %vm6804_vm6, %v5182_v26, %v1186_v0  ;;  %v6457_v30 = vld [vmem:[#allocation2 + $0x64] sm:$0xf] }
  0xc5   :  { %8078 = vst [vmem:[#allocation11_spill] sm:$0xff] %v7099_v13  ;;  %v7145_v58 = vsel %vm6804_vm6, %v5181_v40, %v1179_v22  ;;  %v5184_v40 = vrot.slane %v1099_v39, 9  ;;  %v3608_v0 = vld [vmem:[#allocation2 + $0x30] sm:$0xf]  ;;  %v6394_v26 = vld [vmem:[#allocation2 + $0x54] sm:$0xff]  }
  0xc6   :  { %v1100_v39 = vld [vmem:[#allocation2 + $0x6c] sm:$0xe] }
  0xca   :  { %5970 = vmatmul.mubr.msk.bf16.vlgmr.msra.gmra.mrb[0].mxu0 %vm568_vm3, %v6384_v15  ;;  %v1181_v15 = vrot.slane %v1179_v22, 4  ;;  %v6458_v22 = vld [vmem:[#allocation2 + $0x5c] sm:$0x1] }
  0xcb   :  { %5786 = vmatmul.mubr.msk.bf16.gmra.mrb[16].mxu1 %vm568_vm3, %v5149_v3  ;;  %6002 = vmatpush3.bf16.msra.mxu0 %v6900_v18  ;;  %v7117_v18 = vsel %vm6804_vm6, %v1160_v11, %v1161_v36  ;;  %v3603_v3 = vld [vmem:[#allocation2 + $0x1c] sm:$0xf]  ;;  %v3654_v11 = vshll.u32 %v3602_v6, 16  ;;  %v3702_v36 = vshll.u32 %v3608_v0, 16 }
  0xcc   :  { %5789 = vmatprep.mubr.msk.bf16.mxu1 %vm568_vm3, %v5150_v23  ;;  %5973 = vmatprep.mubr.msk.bf16.mxu0 %vm568_vm3, %v6387_v35  ;;  %v6454_v23 = vld [vmem:[#allocation2 + $0x44] sm:$0x1]  ;;  %v3651_v35 = vshrl.u32 %v3602_v6, 16  ;;  %v3660_v10 = vshll.u32 %v3603_v3, 16  ;;  %v3664_v38 = vshrl.u32 %v3603_v3, 16 }
  0xcd   :  { %6003 = vmatprep.subr.bf16.mxu0 %v6395_v2  ;;  %v1182_v14 = vrot.slane %v6454_v23, 5  ;;  %v1193_v23 = vrot.slane %v6456_v56, 5  ;;  %v3604_v6 = vld [vmem:[#allocation2 + $0x20] sm:$0x1]  ;;  %v7160_v56 = vld [vmem:[#allocation5 + $0x100] sm:$0xff]  }
  0xcf   :  { %6004 = vmatpush3.bf16.msra.mxu0 %v6395_v2  ;;  %v7140_v2 = vsel %vm6804_vm6, %v1174_v9, %v1175_v27  ;;  %v7149_v3 = vsel %vm6804_vm6, %v1181_v15, %v1182_v14  ;;  %v1200_v9 = vrot.slane %v6457_v30, 5  ;;  %v3605_v27 = vld [vmem:[#allocation2 + $0x24] sm:$0xf]  ;;  %v3653_v15 = vrot.slane %v3651_v35, 4 }
  0xd0   :  { %6005 = vmatprep.subr.bf16.mxu0 %v6403_v47  ;;  %v3656_v14 = vrot.slane %v3654_v11, 5  ;;  %v7172_v34 = vsel %vm6804_vm6, %v5183_v37, %v1193_v23  ;;  %v1195_v35 = vrot.slane %v1193_v23, 4  ;;  %v3670_v11 = vshll.u32 %v3604_v6, 16 }
  0xd1   :  { %v3675_v55 = vshrl.u32 %v3605_v27, 16  ;;  %v3678_v25 = vshll.u32 %v3605_v27, 16  ;;  %v1202_v30 = vrot.slane %v1200_v9, 4  ;;  %v7178_v37 = vsel %vm6804_vm6, %v5184_v40, %v1200_v9 }
  0xd2   :  { %5974 = vmatmul.mubr.msk.bf16.gmra.mrb[4].mxu0 %vm568_vm3, %v6389_v52  ;;  %v1196_v52 = vrot.slane %v6458_v22, 5  ;;  %v3657_v23 = vor.u32 %v3656_v14, %v3653_v15  ;;  %v7181_v21 = vrot.slane %v3670_v11, 5  ;;  %v7193_v40 = vrot.slane %v3684_v60, 5 }
  0xd3   :  { %5790 = vmatmul.mubr.msk.bf16.gmra.mrb[20].mxu1 %vm568_vm3, %v5151_v16  ;;  %5977 = vmatprep.mubr.msk.bf16.mxu0 %vm568_vm3, %v6391_v12  ;;  %v7174_v16 = vrot.slane %v3660_v10, 5  ;;  %v3666_v12 = vrot.slane %v3664_v38, 4  ;;  %v6460_v10 = vld [vmem:[#allocation2 + $0x70] sm:$0xf]  ;;  %v3699_v38 = vshrl.u32 %v3608_v0, 16  ;;  %v3677_v29 = vrot.slane %v3675_v55, 4 }
  0xd4   :  { %5793 = vmatprep.mubr.msk.bf16.mxu1 %vm568_vm3, %v5152_v28  ;;  %6006 = vmatpush3.bf16.msra.mxu0 %v6403_v47  ;;  %v3609_v28 = vld [vmem:[#allocation2 + $0x34] sm:$0xf]  ;;  %v6459_v47 = vld [vmem:[#allocation2 + $0x68] sm:$0x1]  ;;  %v1207_v17 = vrot.slane %v6460_v10, 5  ;;  %v3680_v62 = vrot.slane %v3678_v25, 5  ;;  %v7187_v9 = vsel %vm6804_vm6, %v1195_v35, %v1196_v52 }
  0xd5   :  { %6007 = vmatprep.subr.bf16.mxu0 %v6409_v1  ;;  %v1203_v22 = vrot.slane %v6459_v47, 5  ;;  %v3667_v6 = vor.u32 %v3666_v12, %v7174_v16  ;;  %v3708_v27 = vshll.u32 %v3609_v28, 16  ;;  %v3712_v53 = vshrl.u32 %v3609_v28, 16  ;;  %v6461_v0 = vld [vmem:[#allocation2 + $0x74] sm:$0x1] }
  0xd6   :  { %v5185_v47 = vrot.slane %v1100_v39, 9  ;;  %v3690_v15 = vrot.slane %v3688_v32, 4  ;;  %v1209_v14 = vrot.slane %v1207_v17, 4  ;;  %v3701_v12 = vrot.slane %v3699_v38, 4  ;;  %v6462_v32 = vld [vmem:[#allocation2 + $0x7c] sm:$0xf] }
  0xd7   :  { %v3704_v52 = vrot.slane %v3702_v36, 5  ;;  %v8079_v39 = vcombine.low %v6912_v41, %v6915_v20  ;;  %v3658_v60 = vrot.slane %v3657_v23, 4  ;;  %v3668_v35 = vrot.slane %v3667_v6, 4  ;;  %v3610_v36 = vld [vmem:[#allocation2 + $0x38] sm:$0x1] }
  0xd8   :  { %6008 = vmatpush3.bf16.msra.mxu0 %v6409_v1  ;;  %v7191_v1 = vsel %vm6804_vm6, %v1202_v30, %v1203_v22  ;;  %v7204_v11 = vrot.slane %v3708_v27, 5  ;;  %v3714_v55 = vrot.slane %v3712_v53, 4  ;;  %v3681_v25 = vor.u32 %v3680_v62, %v3677_v29  ;;  %v6400_v30 = vld [vmem:[#allocation2 + $0x78] sm:$0xff]   ;;  %v6464_v10 = vld [vmem:[#allocation2 + $0x80] sm:$0x1] }
  0xd9   :  { %6041 = vmatprep.subr.bf16.mxu0 %v7160_v56  ;;  %v3694_v28 = vshll.u32 %v3607_v49, 16  ;;  %v3691_v22 = vor.u32 %v3690_v15, %v7193_v40  ;;  %v1101_v53 = vld [vmem:[#allocation2 + $0x78] sm:$0xe]  ;;  %v7219_v62 = vsel %vm6804_vm6, %v5185_v47, %v1207_v17  ;;  %v3705_v38 = vor.u32 %v3704_v52, %v3701_v12  ;;  %v3611_v23 = vld [vmem:[#allocation2 + $0x3c] sm:$0xf] }
  0xda   :  { %5978 = vmatmul.mubr.msk.bf16.gmra.mrb[8].mxu0 %vm568_vm3, %v6394_v26  ;;  %v1210_v26 = vrot.slane %v6461_v0, 5  ;;  %v3663_v6 = vsel %vm6636_vm2, %v3658_v60, %v7174_v16  ;;  %v3673_v27 = vsel %vm6636_vm2, %v3668_v35, %v7181_v21  ;;  %v3715_v29 = vor.u32 %v3714_v55, %v7204_v11  ;;  %v1102_v0 = vld [vmem:[#allocation2 + $0x84] sm:$0xe]  ;;  %v3612_v17 = vld [vmem:[#allocation2 + $0x40] sm:$0xf] }
  0xdb   :  { %5794 = vmatmul.mubr.msk.bf16.gmra.mrb[24].mxu1 %vm568_vm3, %v5153_v46  ;;  %5981 = vmatprep.mubr.msk.bf16.mxu0 %vm568_vm3, %v6397_v42  ;;  %v1214_v42 = vrot.slane %v6462_v32, 5  ;;  %v3718_v15 = vshll.u32 %v3610_v36, 16  ;;  %v3682_v47 = vrot.slane %v3681_v25, 4  ;;  %v5186_v32 = vrot.slane %v1101_v53, 9  ;;  %v3613_v25 = vld [vmem:[#allocation2 + $0x44] sm:$0x1] }
  0xdc   :  { %5797 = vmatprep.mubr.msk.bf16.mxu1 %vm568_vm3, %v8079_v39  ;;  %v7223_v49 = vsel %vm6804_vm6, %v1209_v14, %v1210_v26  ;;  %v3696_v39 = vrot.slane %v3694_v28, 5  ;;  %v6463_v14 = vld [vmem:[#allocation2 + $0x88] sm:$0xf]  ;;  %v3692_v12 = vrot.slane %v3691_v22, 4  ;;  %v1217_v16 = vrot.slane %v6464_v10, 5  ;;  %v6414_v46 = vld [vmem:[#allocation5 + $0x78] sm:$0xff]  }
  0xdd   :  { %v1221_v26 = vrot.slane %v6463_v14, 5  ;;  %v1216_v52 = vrot.slane %v1214_v42, 4  ;;  %v3723_v60 = vshrl.u32 %v3611_v23, 16  ;;  %v8080_v21 = vcombine.low %v6928_v63, %v6935_v51  ;;  %v3614_v10 = vld [vmem:[#allocation2 + $0x48] sm:$0xf] }
  0xde   :  { %v3706_v35 = vrot.slane %v3705_v38, 4  ;;  %v5187_v55 = vrot.slane %v1102_v0, 9  ;;  %v3726_v28 = vshll.u32 %v3611_v23, 16  ;;  %v3732_v36 = vshll.u32 %v3612_v17, 16  ;;  %v7246_v14 = vld [vmem:[#allocation2 + $0x4c] sm:$0xf] }
  0xdf   :  { %v7242_v22 = vcombine.low %v3663_v6, %v3673_v27  ;;  %v3716_v63 = vrot.slane %v3715_v29, 4  ;;  %v3720_v51 = vrot.slane %v3718_v15, 5  ;;  %v7250_v38 = vsel %vm6804_vm6, %v5186_v32, %v1214_v42  ;;  %v6465_v0 = vld [vmem:[#allocation2 + $0x8c] sm:$0x1]  ;;  %v7252_v6 = vld [vmem:[#allocation2 + $0x58] sm:$0xf] }
  0xe0   :  { %v1223_v23 = vrot.slane %v1221_v26, 4  ;;  %8082 = vst [vmem:[#allocation12_spill] sm:$0xff] %v7252_v6  ;;  %v6404_v27 = vld [vmem:[#allocation2 + $0x90] sm:$0xff]   ;;  %v3687_v29 = vsel %vm6636_vm2, %v3682_v47, %v7193_v40  ;;  %v3697_v15 = vsel %vm6636_vm2, %v3692_v12, %v3696_v39  ;;  %v3725_v42 = vrot.slane %v3723_v60, 4 }
  0xe1   :  { %v7268_v32 = vsel %vm6804_vm6, %v5187_v55, %v1221_v26  ;;  %v7270_v53 = vrot.slane %v3732_v36, 5  ;;  %v3721_v40 = vsel %vm6636_vm2, %v3716_v63, %v3720_v51  ;;  %v3742_v47 = vshll.u32 %v3613_v25, 16  ;;  %v7274_v39 = vld [vmem:[#allocation2 + $0x90] sm:$0xe]  ;;  %v3620_v63 = vld [vmem:[#allocation2 + $0x60] sm:$0xf] }
  0xe2   :  { %5982 = vmatmul.mubr.msk.bf16.gmra.mrb[12].mxu0 %vm568_vm3, %v6399_v43  ;;  %v8081_v43 = vcombine.low %v7096_v48, %v7105_v5  ;;  %v1224_v48 = vrot.slane %v6465_v0, 5  ;;  %v3736_v5 = vshrl.u32 %v3612_v17, 16  ;;  %v3711_v17 = vsel %vm6636_vm2, %v3706_v35, %v7204_v11 }
  0xe3   :  { %5798 = vmatmul.mubr.msk.bf16.gmra.mrb[28].mxu1 %vm568_vm3, %v8080_v21  ;;  %5985 = vmatprep.mubr.msk.bf16.mxu0 %vm568_vm3, %v6400_v30  ;;  %v6402_v30 = vld [vmem:[#allocation2 + $0x84] sm:$0xff]   ;;  %v3617_v21 = vld [vmem:[#allocation2 + $0x54] sm:$0xf]  ;;  %v3728_v0 = vrot.slane %v3726_v28, 5  ;;  %v3747_v12 = vshrl.u32 %v3614_v10, 16  ;;  %v3756_v26 = vshll.u32 %v7246_v14, 16  ;;  %v8083_v51 = vcombine.low %v7080_v50, %v7084_v59 }
  0xe4   :  { %5809 = vmatprep.mubr.msk.bf16.mxu1 %vm568_vm3, %v8081_v43  ;;  %v7261_v43 = vsel %vm6804_vm6, %v1216_v52, %v1217_v16  ;;  %v3750_v52 = vshll.u32 %v3614_v10, 16  ;;  %v6407_v16 = vld [vmem:[#allocation5 + $0x68] sm:$0xff]   ;;  %v7278_v60 = vsel %vm6804_vm6, %v1223_v23, %v1224_v48  ;;  %v3738_v11 = vrot.slane %v3736_v5, 4  ;;  %v7297_v5 = vld [vmem:[#allocation2 + $0x50] sm:$0x1] }
  0xe5   :  { %v3760_v35 = vshrl.u32 %v7246_v14, 16  ;;  %v3771_v55 = vshrl.u32 %v3617_v21, 16  ;;  %v3774_v28 = vshll.u32 %v3617_v21, 16  ;;  %v3780_v25 = vshll.u32 %v7252_v6, 16  ;;  %8084 = vst [vmem:[#allocation13_spill] sm:$0xff] %v7297_v5  ;;  %v6405_v59 = vld [vmem:[#allocation2 + $0x9c] sm:$0xff]  }
  0xe6   :  { %v3784_v36 = vshrl.u32 %v7252_v6, 16  ;;  %v7290_v10 = vcombine.low %v3687_v29, %v3697_v15  ;;  %v5188_v48 = vrot.slane %v7274_v39, 9  ;;  %v7299_v21 = vld [vmem:[#allocation2 + $0x64] sm:$0xf]  ;;  %v8086_v50 = vcombine.low %v7111_v61, %v7117_v18  ;;  %v7313_v61 = vld [vmem:[#allocation2 + $0x5c] sm:$0x1] }
  0xe7   :  { %8085 = vst [vmem:[#allocation14_spill] sm:$0xff] %v7299_v21  ;;  %v3729_v29 = vor.u32 %v3728_v0, %v3725_v42  ;;  %v7306_v15 = vrot.slane %v3742_v47, 5  ;;  %v3739_v23 = vor.u32 %v3738_v11, %v7270_v53  ;;  %v3762_v20 = vrot.slane %v3760_v35, 4  ;;  %8087 = vst [vmem:[#allocation15_spill] sm:$0xff] %v7313_v61  ;;  %v6466_v0 = vld [vmem:[#allocation2 + $0x94] sm:$0xf] }
  0xe8   :  { %v3773_v18 = vrot.slane %v3771_v55, 4  ;;  %v7315_v41 = vrot.slane %v3780_v25, 5  ;;  %v3786_v42 = vrot.slane %v3784_v36, 4  ;;  %v1228_v47 = vrot.slane %v6466_v0, 5  ;;  %v1104_v36 = vld [vmem:[#allocation2 + $0x9c] sm:$0xe] }
  0xe9   :  { %v3795_v45 = vshrl.u32 %v3620_v63, 16  ;;  %v3798_v13 = vshll.u32 %v3620_v63, 16  ;;  %v7317_v39 = vrot.slane %v3729_v29, 4  ;;  %v3766_v11 = vshll.u32 %v7297_v5, 16  ;;  %v6468_v0 = vld [vmem:[#allocation2 + $0xa0] sm:$0xf] }
  0xea   :  { %5986 = vmatmul.mubr.msk.bf16.gmra.mrb[16].mxu0 %vm568_vm3, %v6402_v30  ;;  %v7294_v30 = vcombine.low %v3711_v17, %v3721_v40  ;;  %v3749_v17 = vrot.slane %v3747_v12, 4  ;;  %v3752_v40 = vrot.slane %v3750_v52, 5  ;;  %v6467_v12 = vld [vmem:[#allocation2 + $0x98] sm:$0x1]  ;;  %v3808_v35 = vshrl.u32 %v7299_v21, 16 }
  0xeb   :  { %5810 = vmatmul.mubr.msk.bf16.vlgmr.msra.gmra.mrb[0].mxu1 %vm568_vm3, %v8083_v51  ;;  %5989 = vmatprep.mubr.msk.bf16.mxu0 %vm568_vm3, %v6404_v27  ;;  %v6412_v27 = vld [vmem:[#allocation5 + $0x70] sm:$0xff]   ;;  %v1231_v52 = vrot.slane %v6467_v12, 5  ;;  %v7322_v55 = vrot.slane %v3739_v23, 4  ;;  %v1235_v12 = vrot.slane %v6468_v0, 5  ;;  %v3787_v29 = vor.u32 %v3786_v42, %v7315_v41 }
  0xec   :  { %5842 = vmatpush3.bf16.msra.mxu1 %v7032_v31  ;;  %5813 = vmatprep.mubr.msk.bf16.mxu1 %vm568_vm3, %v8086_v50  ;;  %v6406_v51 = vld [vmem:[#allocation2 + $0xa8] sm:$0xff]   ;;  %v7311_v31 = vrot.slane %v3756_v26, 5  ;;  %v3776_v50 = vrot.slane %v3774_v28, 5  ;;  %v3804_v26 = vshll.u32 %v7299_v21, 16  ;;  %v3753_v28 = vor.u32 %v3752_v40, %v3749_v17 }
  0xed   :  { %5843 = vmatprep.subr.bf16.mxu1 %v6407_v16  ;;  %v3790_v21 = vshll.u32 %v7313_v61, 16  ;;  %v1105_v6 = vld [vmem:[#allocation2 + $0xa8] sm:$0xe]  ;;  %v8088_v23 = vcombine.low %v7121_v19, %v7126_v8  ;;  %v6469_v17 = vld [vmem:[#allocation2 + $0xac] sm:$0xf]  ;;  %v3797_v40 = vrot.slane %v3795_v45, 4 }
  0xee   :  { %v3763_v25 = vor.u32 %v3762_v20, %v7311_v31  ;;  %v3777_v63 = vor.u32 %v3776_v50, %v3773_v18  ;;  %v1230_v20 = vrot.slane %v1228_v47, 4  ;;  %v3800_v0 = vrot.slane %v3798_v13, 5  ;;  %v6408_v13 = vld [vmem:[#allocation2 + $0xb4] sm:$0xff]  }
  0xef   :  { %v3768_v18 = vrot.slane %v3766_v11, 5  ;;  %v5189_v50 = vrot.slane %v1104_v36, 9  ;;  %v7341_v42 = vrot.slane %v3804_v26, 5  ;;  %v3810_v19 = vrot.slane %v3808_v35, 4  ;;  %v6471_v26 = vld [vmem:[#allocation2 + $0xb0] sm:$0x1] }
  0xf0   :  { %5844 = vmatpush3.bf16.msra.mxu1 %v6407_v16  ;;  %v7328_v16 = vsel %vm6804_vm6, %v5188_v48, %v1228_v47  ;;  %v8089_v48 = vcombine.low %v7136_v7, %v7140_v2  ;;  %v3754_v8 = vrot.slane %v3753_v28, 4  ;;  %v1237_v61 = vrot.slane %v1235_v12, 4 }
  0xf1   :  { %5845 = vmatprep.subr.bf16.mxu1 %v6412_v27  ;;  %v3778_v45 = vrot.slane %v3777_v63, 4  ;;  %v3788_v5 = vrot.slane %v3787_v29, 4  ;;  %v3792_v7 = vrot.slane %v3790_v21, 5  ;;  %v5190_v2 = vrot.slane %v1105_v6, 9 }
  0xf2   :  { %5990 = vmatmul.mubr.msk.bf16.gmra.mrb[20].mxu0 %vm568_vm3, %v6405_v59  ;;  %v1242_v59 = vrot.slane %v6469_v17, 5  ;;  %v7343_v17 = vld [vmem:[#allocation2 + $0x68] sm:$0x1]  ;;  %v1245_v35 = vrot.slane %v6471_v26, 5  ;;  %v3801_v28 = vor.u32 %v3800_v0, %v3797_v40  ;;  %v3745_v36 = vsel %vm6636_vm2, %v7322_v55, %v7306_v15  ;;  %v6473_v0 = vld [vmem:[#allocation2 + $0xb8] sm:$0xf] }
  0xf3   :  { %5814 = vmatmul.mubr.msk.bf16.gmra.mrb[4].mxu1 %vm568_vm3, %v8088_v23  ;;  %5993 = vmatprep.mubr.msk.bf16.mxu0 %vm568_vm3, %v6406_v51  ;;  %v3764_v23 = vrot.slane %v3763_v25, 4  ;;  %v6470_v51 = vld [vmem:[#allocation2 + $0xa4] sm:$0x1]  ;;  %v1106_v25 = vld [vmem:[#allocation2 + $0xb4] sm:$0xe]  ;;  %v7355_v21 = vsel %vm6804_vm6, %v1230_v20, %v1231_v52  ;;  %v3811_v6 = vor.u32 %v3810_v19, %v7341_v42  ;;  %v3814_v63 = vshll.u32 %v7343_v17, 16 }
  0xf4   :  { %5817 = vmatprep.mubr.msk.bf16.mxu1 %vm568_vm3, %v8089_v48  ;;  %5846 = vmatpush3.bf16.msra.mxu1 %v6412_v27  ;;  %v1238_v47 = vrot.slane %v6470_v51, 5  ;;  %v6410_v48 = vld [vmem:[#allocation2 + $0xc0] sm:$0xff]   ;;  %v3735_v27 = vsel %vm6636_vm2, %v7317_v39, %v7270_v53  ;;  %v1244_v11 = vrot.slane %v1242_v59, 4  ;;  %v3623_v53 = vld [vmem:[#allocation2 + $0x6c] sm:$0xf]  ;;  %v3759_v39 = vsel %vm6636_vm2, %v3754_v8, %v7311_v31 }
  0xf5   :  { %5847 = vmatprep.subr.bf16.mxu1 %v6414_v46  ;;  %v3769_v29 = vsel %vm6636_vm2, %v3764_v23, %v3768_v18  ;;  %v7366_v15 = vsel %vm6804_vm6, %v5189_v50, %v1235_v12  ;;  %v3783_v31 = vsel %vm6636_vm2, %v3778_v45, %v7315_v41  ;;  %v3793_v55 = vsel %vm6636_vm2, %v3788_v5, %v3792_v7  ;;  %v7394_v5 = vld [vmem:[#allocation2 + $0x70] sm:$0xf]  ;;  %v3626_v7 = vld [vmem:[#allocation2 + $0x78] sm:$0xf]  ;;  %v3629_v26 = vld [vmem:[#allocation2 + $0x84] sm:$0xf] }
  0xf6   :  { %v7370_v52 = vsel %vm6804_vm6, %v1237_v61, %v1238_v47  ;;  %v7383_v12 = vsel %vm6804_vm6, %v5190_v2, %v1242_v59  ;;  %v5191_v20 = vrot.slane %v1106_v25, 9  ;;  %v8091_v61 = vcombine.low %v7145_v58, %v7149_v3  ;;  %v6411_v23 = vld [vmem:[#allocation2 + $0xcc] sm:$0xff]  }
  0xf7   :  { %v7392_v40 = vsel %vm6804_vm6, %v1244_v11, %v1245_v35  ;;  %v3802_v41 = vrot.slane %v3801_v28, 4  ;;  %v1249_v18 = vrot.slane %v6473_v0, 5  ;;  %v3819_v50 = vshrl.u32 %v3623_v53, 16  ;;  %v7422_v35 = vld [vmem:[#allocation2 + $0x88] sm:$0xf] }
  0xf8   :  { %5848 = vmatpush3.bf16.msra.mxu1 %v6414_v46  ;;  %v7372_v46 = vld [vmem:[#allocation5 + $0x80] sm:$0xff]   ;;  %v8092_v59 = vcombine.low %v7153_v44, %v7168_v24  ;;  %v7400_v58 = vcombine.low %v3735_v27, %v3745_v36  ;;  %v3812_v3 = vrot.slane %v3811_v6, 4  ;;  %v3816_v19 = vrot.slane %v3814_v63, 5  ;;  %8094 = vst [vmem:[#allocation18_spill] sm:$0xff] %v7422_v35  ;;  %v3632_v63 = vld [vmem:[#allocation2 + $0x90] sm:$0xf] }
  0xf9   :  { %8090 = vst [vmem:[#allocation16_spill] sm:$0xff] %v7372_v46  ;;  %6081 = vmatprep.subr.bf16.mxu1 %v7372_v46  ;;  %v3822_v8 = vshll.u32 %v3623_v53, 16  ;;  %v7404_v47 = vcombine.low %v3759_v39, %v3769_v29  ;;  %v7408_v45 = vcombine.low %v3783_v31, %v3793_v55  ;;  %v7410_v44 = vld [vmem:[#allocation2 + $0x7c] sm:$0xf]  ;;  %v7416_v2 = vsel %vm6804_vm6, %v5191_v20, %v1249_v18  ;;  %v7436_v55 = vld [vmem:[#allocation2 + $0x94] sm:$0xf] }
  0xfa   :  { %5994 = vmatmul.mubr.msk.bf16.gmra.mrb[24].mxu0 %vm568_vm3, %v6408_v13  ;;  %8093 = vst [vmem:[#allocation17_spill] sm:$0xff] %v7410_v44  ;;  %v3828_v11 = vshll.u32 %v7394_v5, 16  ;;  %v3807_v28 = vsel %vm6636_vm2, %v3802_v41, %v7341_v42  ;;  %v7427_v25 = vrot.slane %v1249_v18, 4  ;;  %v7429_v36 = vrot.slane %v3819_v50, 4  ;;  %8095 = vst [vmem:[#allocation19_spill] sm:$0xff] %v7436_v55 }
  0xfb   :  { %5818 = vmatmul.mubr.msk.bf16.gmra.mrb[8].mxu1 %vm568_vm3, %v8091_v61  ;;  %5997 = vmatprep.mubr.msk.bf16.mxu0 %vm568_vm3, %v6410_v48  ;;  %v7418_v48 = vld [vmem:[#allocation2 + $0xbc] sm:$0x1]  ;;  %v3832_v6 = vshrl.u32 %v7394_v5, 16  ;;  %v3817_v53 = vsel %vm6636_vm2, %v3812_v3, %v3816_v19  ;;  %v7434_v39 = vrot.slane %v3822_v8, 5  ;;  %v3843_v29 = vshrl.u32 %v3626_v7, 16 }
  0xfc   :  { %5821 = vmatprep.mubr.msk.bf16.mxu1 %vm568_vm3, %v8092_v59  ;;  %v3846_v31 = vshll.u32 %v3626_v7, 16  ;;  %v7438_v20 = vld [vmem:[#allocation2 + $0x74] sm:$0x1]  ;;  %v3852_v42 = vshll.u32 %v7410_v44, 16  ;;  %v3856_v61 = vshrl.u32 %v7410_v44, 16  ;;  %v3867_v41 = vshrl.u32 %v3629_v26, 16 }
  0xfd   :  { %v3870_v0 = vshll.u32 %v3629_v26, 16  ;;  %v3876_v18 = vshll.u32 %v7422_v35, 16  ;;  %v3880_v50 = vshrl.u32 %v7422_v35, 16  ;;  %v3891_v59 = vshrl.u32 %v3632_v63, 16  ;;  %v7455_v26 = vld [vmem:[#allocation2 + $0x80] sm:$0x1] }
  0xfe   :  { %v3894_v3 = vshll.u32 %v3632_v63, 16  ;;  %v8096_v19 = vcombine.low %v7172_v34, %v7187_v9  ;;  %v7451_v8 = vcombine.low %v3807_v28, %v3817_v53  ;;  %v7453_v7 = vrot.slane %v3828_v11, 5  ;;  %v3635_v28 = vld [vmem:[#allocation2 + $0x9c] sm:$0xf]  ;;  %v7466_v13 = vld [vmem:[#allocation2 + $0x8c] sm:$0x1] }
  0xff   :  { %v3904_v24 = vshrl.u32 %v7436_v55, 16  ;;  %v8097_v63 = vcombine.low %v7178_v37, %v7191_v1  ;;  %v3834_v34 = vrot.slane %v3832_v6, 4  ;;  %v3838_v9 = vshll.u32 %v7438_v20, 16  ;;  %v7470_v1 = vld [vmem:[#allocation2 + $0xa0] sm:$0xf] }
 0x100   :  { %v7464_v53 = vrot.slane %v3852_v42, 5  ;;  %v3858_v11 = vrot.slane %v3856_v61, 4  ;;  %v3869_v51 = vrot.slane %v3867_v41, 4  ;;  %v3872_v27 = vrot.slane %v3870_v0, 5  ;;  %8098 = vst [vmem:[#allocation20_spill] sm:$0xff] %v7470_v1 }
 0x101   :  { %v7468_v46 = vrot.slane %v3876_v18, 5  ;;  %v3893_v35 = vrot.slane %v3891_v59, 4  ;;  %v3896_v37 = vrot.slane %v3894_v3, 5  ;;  %v7472_v6 = vld [vmem:[#allocation2 + $0x98] sm:$0x1]  ;;  %v3918_v42 = vshll.u32 %v3635_v28, 16 }
 0x102   :  { %5998 = vmatmul.mubr.msk.bf16.gmra.mrb[28].mxu0 %vm568_vm3, %v6411_v23  ;;  %v3900_v23 = vshll.u32 %v7436_v55, 16  ;;  %v3882_v55 = vrot.slane %v3880_v50, 4  ;;  %v3825_v61 = vor.u32 %v7434_v39, %v7429_v36  ;;  %v3835_v41 = vor.u32 %v3834_v34, %v7453_v7  ;;  %v6415_v50 = vld [vmem:[#allocation5 + $0x108] sm:$0xff]  }
 0x103   :  { %5822 = vmatmul.mubr.msk.bf16.gmra.mrb[12].mxu1 %vm568_vm3, %v8096_v19  ;;  %6009 = vmatprep.mubr.msk.bf16.mxu0 %vm568_vm3, %v7242_v22  ;;  %v3845_v19 = vrot.slane %v3843_v29, 4  ;;  %v3848_v22 = vrot.slane %v3846_v31, 5  ;;  %v3906_v29 = vrot.slane %v3904_v24, 4  ;;  %v3915_v31 = vshrl.u32 %v3635_v28, 16 }
 0x104   :  { %5825 = vmatprep.mubr.msk.bf16.mxu1 %vm568_vm3, %v8097_v63  ;;  %v7474_v63 = vrot.slane %v3900_v23, 5  ;;  %v3862_v18 = vshll.u32 %v7455_v26, 16  ;;  %v3859_v59 = vor.u32 %v3858_v11, %v7464_v53  ;;  %v3873_v3 = vor.u32 %v3872_v27, %v3869_v51  ;;  %v6418_v27 = vld [vmem:[#allocation5 + $0x110] sm:$0xff]  }
 0x105   :  { %v3849_v0 = vor.u32 %v3848_v22, %v3845_v19  ;;  %v3924_v44 = vshll.u32 %v7470_v1, 16  ;;  %v3928_v23 = vshrl.u32 %v7470_v1, 16  ;;  %v3883_v24 = vor.u32 %v3882_v55, %v7468_v46 }
 0x106   :  { %v3886_v36 = vshll.u32 %v7466_v13, 16  ;;  %v3897_v39 = vor.u32 %v3896_v37, %v3893_v35  ;;  %v3910_v34 = vshll.u32 %v7472_v6, 16  ;;  %v8099_v19 = vcombine.low %v7219_v62, %v7223_v49  ;;  %v3638_v37 = vld [vmem:[#allocation2 + $0xa8] sm:$0xf] }
 0x107   :  { %v3840_v51 = vrot.slane %v3838_v9, 5  ;;  %v3907_v22 = vor.u32 %v3906_v29, %v7474_v63  ;;  %v3917_v28 = vrot.slane %v3915_v31, 4  ;;  %v8100_v55 = vcombine.low %v7250_v38, %v7261_v43  ;;  %v7502_v43 = vld [vmem:[#allocation2 + $0xa4] sm:$0x1] }
 0x108   :  { %v3826_v35 = vrot.slane %v3825_v61, 4  ;;  %v3836_v62 = vrot.slane %v3835_v41, 4  ;;  %v3850_v49 = vrot.slane %v3849_v0, 4  ;;  %v3864_v11 = vrot.slane %v3862_v18, 5  ;;  %v7504_v61 = vld [vmem:[#allocation2 + $0xac] sm:$0xf] }
 0x109   :  { %v3874_v9 = vrot.slane %v3873_v3, 4  ;;  %v3930_v29 = vrot.slane %v3928_v23, 4  ;;  %v3884_v31 = vrot.slane %v3883_v24, 4  ;;  %v3898_v1 = vrot.slane %v3897_v39, 4 }
 0x10a   :  { %6010 = vmatmul.mubr.msk.bf16.vlgmr.msra.gmra.mrb[0].mxu0 %vm568_vm3, %v7290_v10  ;;  %v3920_v10 = vrot.slane %v3918_v42, 5  ;;  %v3888_v42 = vrot.slane %v3886_v36, 5  ;;  %v3912_v38 = vrot.slane %v3910_v34, 5  ;;  %v3939_v41 = vshrl.u32 %v3638_v37, 16 }
 0x10b   :  { %5826 = vmatmul.mubr.msk.bf16.gmra.mrb[16].mxu1 %vm568_vm3, %v8099_v19  ;;  %6042 = vmatpush3.bf16.msra.mxu0 %v7160_v56  ;;  %v3860_v56 = vrot.slane %v3859_v59, 4  ;;  %v7500_v19 = vrot.slane %v3924_v44, 5  ;;  %v3942_v0 = vshll.u32 %v3638_v37, 16  ;;  %v8101_v18 = vrot.slane %v7418_v48, 5 }
 0x10c   :  { %5829 = vmatprep.mubr.msk.bf16.mxu1 %vm568_vm3, %v8100_v55  ;;  %6013 = vmatprep.mubr.msk.bf16.mxu0 %vm568_vm3, %v7294_v30  ;;  %v3908_v55 = vrot.slane %v3907_v22, 4  ;;  %v3921_v30 = vor.u32 %v3920_v10, %v3917_v28  ;;  %v3831_v59 = vsel %vm6636_vm2, %v3826_v35, %v7453_v7  ;;  %v3855_v3 = vsel %vm6636_vm2, %v3850_v49, %v7464_v53  ;;  %v6423_v7 = vld [vmem:[#allocation5 + $0x118] sm:$0xff]  }
 0x10d   :  { %6043 = vmatprep.subr.bf16.mxu0 %v6415_v50  ;;  %v7511_v44 = vsel %vm6804_vm6, %v7427_v25, %v8101_v18  ;;  %v3865_v48 = vsel %vm6636_vm2, %v3860_v56, %v3864_v11  ;;  %v3879_v25 = vsel %vm6636_vm2, %v3874_v9, %v7468_v46  ;;  %v3931_v23 = vor.u32 %v3930_v29, %v7500_v19  ;;  %v4360_v46 = vld [vmem:[#allocation2 + $0x48] sm:$0xe]  ;;  %v7547_v28 = vld [vmem:[#allocation2 + $0xb0] sm:$0x1]  ;;  %v3641_v49 = vld [vmem:[#allocation2 + $0xb4] sm:$0xf] }
 0x10e   :  { %v3934_v24 = vshll.u32 %v7502_v43, 16  ;;  %v3889_v36 = vsel %vm6636_vm2, %v3884_v31, %v3888_v42  ;;  %v3903_v53 = vsel %vm6636_vm2, %v3898_v1, %v7474_v63  ;;  %v3948_v39 = vshll.u32 %v7504_v61, 16  ;;  %v4361_v9 = vld [vmem:[#allocation2 + $0x54] sm:$0xe] }
 0x10f   :  { %6044 = vmatpush3.bf16.msra.mxu0 %v6415_v50  ;;  %v3841_v50 = vsel %vm6636_vm2, %v3836_v62, %v3840_v51  ;;  %v3952_v34 = vshrl.u32 %v7504_v61, 16  ;;  %v8102_v51 = vcombine.low %v7268_v32, %v7278_v60  ;;  %v7545_v22 = vrot.slane %v3921_v30, 4 }
 0x110   :  { %6045 = vmatprep.subr.bf16.mxu0 %v6418_v27  ;;  %v3941_v1 = vrot.slane %v3939_v41, 4  ;;  %v3944_v63 = vrot.slane %v3942_v0, 5  ;;  %v8103_v10 = vor.u32 %v7058_v57, %v7056_v54  ;;  %v8104_v32 = vcombine.low %v7328_v16, %v7355_v21  ;;  %v4362_v41 = vld [vmem:[#allocation2 + $0x60] sm:$0xe] }
 0x111   :  { %v5207_v60 = vcombine.low %v7416_v2, %v7511_v44  ;;  %v7562_v62 = vcombine.low %v3855_v3, %v3865_v48  ;;  %v7564_v11 = vcombine.low %v3879_v25, %v3889_v36  ;;  %v3932_v37 = vrot.slane %v3931_v23, 4  ;;  %v8107_v3 = vld [vmem:[#allocation15_spill] sm:$0xff]  ;;  %v4363_v25 = vld [vmem:[#allocation2 + $0x6c] sm:$0xe] }
 0x112   :  { %6014 = vmatmul.mubr.msk.bf16.gmra.mrb[4].mxu0 %vm568_vm3, %v7400_v58  ;;  %v3913_v58 = vsel %vm6636_vm2, %v3908_v55, %v3912_v38  ;;  %v7552_v35 = vrot.slane %v8103_v10, 4  ;;  %v3936_v57 = vrot.slane %v3934_v24, 5  ;;  %v5428_v56 = vrot.slane %v4360_v46, 9  ;;  %v8105_v55 = vld [vmem:[#allocation13_spill] sm:$0xff]  ;;  %v7588_v36 = vld [vmem:[#allocation2 + $0xb8] sm:$0xf] }
 0x113   :  { %5830 = vmatmul.mubr.msk.bf16.gmra.mrb[20].mxu1 %vm568_vm3, %v8102_v51  ;;  %6017 = vmatprep.mubr.msk.bf16.mxu0 %vm568_vm3, %v7404_v47  ;;  %v7560_v47 = vcombine.low %v3831_v59, %v3841_v50  ;;  %v7566_v29 = vcombine.low %v3903_v53, %v3913_v58  ;;  %v7568_v16 = vrot.slane %v3948_v39, 5  ;;  %v3954_v21 = vrot.slane %v3952_v34, 4  ;;  %v8106_v59 = vld [vmem:[#allocation12_spill] sm:$0xff]  ;;  %v8109_v51 = vld [vmem:[#allocation14_spill] sm:$0xff] }
 0x114   :  { %5833 = vmatprep.mubr.msk.bf16.mxu1 %vm568_vm3, %v8104_v32  ;;  %6046 = vmatpush3.bf16.msra.mxu0 %v6418_v27  ;;  %v3958_v31 = vshll.u32 %v7547_v28, 16  ;;  %v3927_v27 = vsel %vm6636_vm2, %v7545_v22, %v7500_v19  ;;  %v3945_v42 = vor.u32 %v3944_v63, %v3941_v1  ;;  %v4450_v38 = vrot.slane %v7246_v14, 5 }
 0x115   :  { %6047 = vmatprep.subr.bf16.mxu0 %v6423_v7  ;;  %v4453_v30 = vrot.slane %v8105_v55, 5  ;;  %v3963_v0 = vshrl.u32 %v3641_v49, 16  ;;  %v5429_v18 = vrot.slane %v4361_v9, 9  ;;  %v4457_v50 = vrot.slane %v8106_v59, 5  ;;  %v7646_v59 = vld [vmem:[#allocation2 + $0xc4] sm:$0xf] }
 0x116   :  { %v4460_v48 = vrot.slane %v8107_v3, 5  ;;  %v3937_v23 = vsel %vm6636_vm2, %v3932_v37, %v3936_v57  ;;  %v3966_v24 = vshll.u32 %v3641_v49, 16  ;;  %v7583_v19 = vsel %vm6804_vm6, %v5428_v56, %v4450_v38  ;;  %v4364_v56 = vld [vmem:[#allocation2 + $0x78] sm:$0xe] }
 0x117   :  { %v4452_v14 = vrot.slane %v4450_v38, 4  ;;  %v7592_v53 = vsel %vm6804_vm6, %v5429_v18, %v4457_v50  ;;  %v4459_v39 = vrot.slane %v4457_v50, 4  ;;  %v5430_v34 = vrot.slane %v4362_v41, 9 }
 0x118   :  { %6048 = vmatpush3.bf16.msra.mxu0 %v6423_v7  ;;  %v3955_v7 = vor.u32 %v3954_v21, %v7568_v16  ;;  %v8108_v46 = vcombine.low %v7366_v15, %v7370_v52  ;;  %v4464_v58 = vrot.slane %v8109_v51, 5  ;;  %v4467_v22 = vrot.slane %v7343_v17, 5  ;;  %v3644_v17 = vld [vmem:[#allocation2 + $0xc0] sm:$0xf] }
 0x119   :  { %v5431_v1 = vrot.slane %v4363_v25, 9  ;;  %v8110_v63 = vcombine.low %v7383_v12, %v7392_v40  ;;  %v7614_v52 = vsel %vm6804_vm6, %v4459_v39, %v4460_v48  ;;  %v4474_v10 = vrot.slane %v7438_v20, 5  ;;  %v4365_v25 = vld [vmem:[#allocation2 + $0x84] sm:$0xe] }
 0x11a   :  { %6018 = vmatmul.mubr.msk.bf16.gmra.mrb[8].mxu0 %vm568_vm3, %v7408_v45  ;;  %v7602_v45 = vsel %vm6804_vm6, %v4452_v14, %v4453_v30  ;;  %v3972_v32 = vshll.u32 %v7588_v36, 16  ;;  %v5445_v49 = vcombine.low %v7592_v53, %v7614_v52  ;;  %v7623_v12 = vsel %vm6804_vm6, %v5430_v34, %v4464_v58  ;;  %v6416_v30 = vld [vmem:[#allocation2 + $0xc] sm:$0xff]  }
 0x11b   :  { %5834 = vmatmul.mubr.msk.bf16.gmra.mrb[24].mxu1 %vm568_vm3, %v8108_v46  ;;  %6021 = vmatprep.mubr.msk.bf16.mxu0 %vm568_vm3, %v7451_v8  ;;  %v5444_v15 = vcombine.low %v7583_v19, %v7602_v45  ;;  %v4471_v8 = vrot.slane %v7394_v5, 5  ;;  %v4466_v40 = vrot.slane %v4464_v58, 4  ;;  %v7625_v37 = vrot.slane %v3958_v31, 5  ;;  %v1990_v31 = vld [vmem:[#allocation2 + $0x78] sm:$0xf]  ;;  %v8111_v14 = vld [vmem:[#allocation17_spill] sm:$0xff] }
 0x11c   :  { %5837 = vmatprep.mubr.msk.bf16.mxu1 %vm568_vm3, %v8110_v63  ;;  %v3976_v57 = vshrl.u32 %v7588_v36, 16  ;;  %v7632_v9 = vcombine.low %v3927_v27, %v3937_v23  ;;  %v7634_v21 = vrot.slane %v3945_v42, 4  ;;  %v7636_v38 = vrot.slane %v3963_v0, 4  ;;  %v7660_v23 = vld [vmem:[#allocation2 + $0xbc] sm:$0x1]  ;;  %v6432_v45 = vld [vmem:[#allocation2 + $0xb4] sm:$0xff]  }
 0x11d   :  { %v7630_v5 = vsel %vm6804_vm6, %v5431_v1, %v4471_v8  ;;  %v4473_v20 = vrot.slane %v4471_v8, 4  ;;  %v7640_v55 = vsel %vm6804_vm6, %v4466_v40, %v4467_v22  ;;  %v7642_v41 = vrot.slane %v3955_v7, 4  ;;  %v8112_v58 = vld [vmem:[#allocation11_spill] sm:$0xff]  ;;  %v8113_v8 = vld [vmem:[#allocation18_spill] sm:$0xff] }
 0x11e   :  { %v7644_v18 = vrot.slane %v3966_v24, 5  ;;  %v5446_v27 = vcombine.low %v7623_v12, %v7640_v55  ;;  %v7654_v0 = vrot.slane %v3972_v32, 5  ;;  %v3987_v50 = vshrl.u32 %v3644_v17, 16  ;;  %v1999_v19 = vld [vmem:[#allocation2 + $0x9c] sm:$0xf] }
 0x11f   :  { %v7652_v42 = vsel %vm6804_vm6, %v4473_v20, %v4474_v10  ;;  %v5432_v48 = vrot.slane %v4364_v56, 9  ;;  %v3990_v24 = vshll.u32 %v3644_v17, 16  ;;  %v4478_v7 = vrot.slane %v8111_v14, 5  ;;  %v3647_v17 = vld [vmem:[#allocation2 + $0xcc] sm:$0xf]  ;;  %v6417_v20 = vld [vmem:[#allocation2 + $0x18] sm:$0xff]  }
 0x120   :  { %v5447_v3 = vcombine.low %v7630_v5, %v7652_v42  ;;  %v4481_v39 = vrot.slane %v7455_v26, 5  ;;  %v2228_v34 = vshrl.u32 %v1990_v31, 16  ;;  %v3996_v46 = vshll.u32 %v7646_v59, 16  ;;  %v6419_v14 = vld [vmem:[#allocation2 + $0x24] sm:$0xff]   ;;  %v6494_v5 = vld [vmem:[#allocation2 + $0xac] sm:$0xf] }
 0x121   :  { %v2231_v51 = vshll.u32 %v1990_v31, 16  ;;  %v2250_v22 = vsel %vm6636_vm2, %v7552_v35, %v8112_v58  ;;  %v7679_v2 = vsel %vm6804_vm6, %v5432_v48, %v4478_v7  ;;  %v4480_v26 = vrot.slane %v4478_v7, 4  ;;  %v8114_v58 = vld [vmem:[#allocation19_spill] sm:$0xff] }
 0x122   :  { %6022 = vmatmul.mubr.msk.bf16.gmra.mrb[12].mxu0 %vm568_vm3, %v7560_v47  ;;  %v4000_v47 = vshrl.u32 %v7646_v59, 16  ;;  %v2230_v44 = vrot.slane %v2228_v34, 4  ;;  %v3982_v1 = vshll.u32 %v7660_v23, 16  ;;  %v4485_v10 = vrot.slane %v8113_v8, 5 }
 0x123   :  { %5838 = vmatmul.mubr.msk.bf16.gmra.mrb[28].mxu1 %vm568_vm3, %v5207_v60  ;;  %6025 = vmatprep.mubr.msk.bf16.mxu0 %vm568_vm3, %v7562_v62  ;;  %v5433_v60 = vrot.slane %v4365_v25, 9  ;;  %v3978_v62 = vrot.slane %v3976_v57, 4  ;;  %v2233_v63 = vrot.slane %v2231_v51, 5  ;;  %v3951_v35 = vsel %vm6636_vm2, %v7634_v21, %v7568_v16  ;;  %v4366_v25 = vld [vmem:[#allocation2 + $0x90] sm:$0xe] }
 0x124   :  { %5849 = vmatprep.mubr.msk.bf16.mxu1 %vm568_vm3, %v6416_v30  ;;  %v3969_v32 = vor.u32 %v7644_v18, %v7636_v38  ;;  %v7691_v40 = vsel %vm6804_vm6, %v4480_v26, %v4481_v39  ;;  %v4488_v57 = vrot.slane %v7466_v13, 5  ;;  %v3989_v56 = vrot.slane %v3987_v50, 4  ;;  %v7698_v38 = vld [vmem:[#allocation2 + $0xd0] sm:$0xf] }
 0x125   :  { %v3992_v31 = vrot.slane %v3990_v24, 5  ;;  %v5448_v30 = vcombine.low %v7679_v2, %v7691_v40  ;;  %v2234_v48 = vor.u32 %v2233_v63, %v2230_v44  ;;  %v7696_v16 = vrot.slane %v3996_v46, 5  ;;  %v7709_v24 = vld [vmem:[#allocation2 + $0xc8] sm:$0x1] }
 0x126   :  { %v4002_v21 = vrot.slane %v4000_v47, 4  ;;  %v7702_v18 = vsel %vm6804_vm6, %v5433_v60, %v4485_v10  ;;  %v4487_v7 = vrot.slane %v4485_v10, 4  ;;  %v3961_v13 = vsel %vm6636_vm2, %v7642_v41, %v7625_v37  ;;  %v8115_v60 = vld [vmem:[#allocation16_spill] sm:$0xff] }
 0x127   :  { %v3979_v50 = vor.u32 %v3978_v62, %v7654_v0  ;;  %v4011_v39 = vshrl.u32 %v3647_v17, 16  ;;  %v2235_v34 = vrot.slane %v2234_v48, 4  ;;  %v4014_v46 = vshll.u32 %v3647_v17, 16  ;;  %v6475_v10 = vld [vmem:[#allocation5 + $0x88] sm:$0xff]  }
 0x128   :  { %v7715_v47 = vsel %vm6804_vm6, %v4487_v7, %v4488_v57  ;;  %v5434_v51 = vrot.slane %v4366_v25, 9  ;;  %v4492_v26 = vrot.slane %v8114_v58, 5  ;;  %v4020_v37 = vshll.u32 %v7698_v38, 16  ;;  %v7739_v7 = vld [vmem:[#allocation2 + $0xd4] sm:$0x1] }
 0x129   :  { %v4024_v41 = vshrl.u32 %v7698_v38, 16  ;;  %v5449_v44 = vcombine.low %v7702_v18, %v7715_v47  ;;  %v3993_v62 = vor.u32 %v3992_v31, %v3989_v56  ;;  %v4003_v63 = vor.u32 %v4002_v21, %v7696_v16  ;;  %v4367_v31 = vld [vmem:[#allocation2 + $0x9c] sm:$0xe]  ;;  %v6420_v21 = vld [vmem:[#allocation2 + $0x30] sm:$0xff]  }
 0x12a   :  { %6026 = vmatmul.mubr.msk.bf16.gmra.mrb[16].mxu0 %vm568_vm3, %v7564_v11  ;;  %v2240_v11 = vsel %vm6636_vm2, %v2235_v34, %v7056_v54  ;;  %v3984_v17 = vrot.slane %v3982_v1, 5  ;;  %v7736_v54 = vsel %vm6804_vm6, %v5434_v51, %v4492_v26  ;;  %v4494_v57 = vrot.slane %v4492_v26, 4  ;;  %v6421_v51 = vld [vmem:[#allocation2 + $0x3c] sm:$0xff]  }
 0x12b   :  { %5850 = vmatmul.mubr.msk.bf16.vlgmr.msra.gmra.mrb[0].mxu1 %vm568_vm3, %v6417_v20  ;;  %6029 = vmatprep.mubr.msk.bf16.mxu0 %vm568_vm3, %v7566_v29  ;;  %v4006_v29 = vshll.u32 %v7709_v24, 16  ;;  %v7732_v8 = vcombine.low %v2240_v11, %v2250_v22  ;;  %v4495_v20 = vrot.slane %v7472_v6, 5  ;;  %v5400_v48 = vcombine.low %v3951_v35, %v3961_v13  ;;  %v6476_v13 = vld [vmem:[#allocation5 + $0x90] sm:$0xff]  }
 0x12c   :  { %6085 = vmatpush3.bf16.msra.mxu1 %v8115_v60  ;;  %5853 = vmatprep.mubr.msk.bf16.mxu1 %vm568_vm3, %v6419_v14  ;;  %v3970_v25 = vrot.slane %v3969_v32, 4  ;;  %v3980_v14 = vrot.slane %v3979_v50, 4  ;;  %v4013_v56 = vrot.slane %v4011_v39, 4  ;;  %v4016_v22 = vrot.slane %v4014_v46, 5  ;;  %v8116_v39 = vld [vmem:[#allocation20_spill] sm:$0xff] }
 0x12d   :  { %6082 = vmatprep.subr.bf16.mxu1 %v6475_v10  ;;  %v7741_v34 = vrot.slane %v4020_v37, 5  ;;  %v4026_v58 = vrot.slane %v4024_v41, 4  ;;  %v7745_v1 = vsel %vm6804_vm6, %v4494_v57, %v4495_v20  ;;  %v3994_v26 = vrot.slane %v3993_v62, 4  ;;  %v6478_v20 = vld [vmem:[#allocation5 + $0x98] sm:$0xff]  }
 0x12e   :  { %v4004_v6 = vrot.slane %v4003_v63, 4  ;;  %v4008_v35 = vrot.slane %v4006_v29, 5  ;;  %v5450_v32 = vcombine.low %v7736_v54, %v7745_v1  ;;  %v5435_v50 = vrot.slane %v4367_v31, 9  ;;  %v4356_v29 = vld [vmem:[#allocation2 + $0x18] sm:$0xe] }
 0x12f   :  { %v4499_v46 = vrot.slane %v8116_v39, 5  ;;  %v3975_v37 = vsel %vm6636_vm2, %v3970_v25, %v7654_v0  ;;  %v3985_v41 = vsel %vm6636_vm2, %v3980_v14, %v3984_v17  ;;  %v4030_v11 = vshll.u32 %v7739_v7, 16  ;;  %v6477_v17 = vld [vmem:[#allocation2 + $0x1c] sm:$0xf]  ;;  %v4368_v25 = vld [vmem:[#allocation2 + $0xa8] sm:$0xe] }
 0x130   :  { %6086 = vmatpush3.bf16.msra.mxu1 %v6475_v10  ;;  %v4502_v60 = vrot.slane %v7502_v43, 5  ;;  %v4017_v62 = vor.u32 %v4016_v22, %v4013_v56  ;;  %v4027_v63 = vor.u32 %v4026_v58, %v7741_v34  ;;  %v3999_v10 = vsel %vm6636_vm2, %v3994_v26, %v7696_v16  ;;  %v6422_v16 = vld [vmem:[#allocation2 + $0x48] sm:$0xff]   ;;  %v6479_v26 = vld [vmem:[#allocation2 + $0x20] sm:$0x1] }
 0x131   :  { %6083 = vmatprep.subr.bf16.mxu1 %v6476_v13  ;;  %v4501_v0 = vrot.slane %v4499_v46, 4  ;;  %v4009_v43 = vsel %vm6636_vm2, %v4004_v6, %v4008_v35  ;;  %v4422_v57 = vrot.slane %v6477_v17, 5  ;;  %v5401_v14 = vcombine.low %v3975_v37, %v3985_v41  ;;  %v6424_v35 = vld [vmem:[#allocation2 + $0x54] sm:$0xff]  }
 0x132   :  { %6030 = vmatmul.mubr.msk.bf16.gmra.mrb[20].mxu0 %vm568_vm3, %v7632_v9  ;;  %v7764_v9 = vsel %vm6804_vm6, %v5435_v50, %v4499_v46  ;;  %v4032_v56 = vrot.slane %v4030_v11, 5  ;;  %v5424_v31 = vrot.slane %v4356_v29, 9  ;;  %v5402_v22 = vcombine.low %v3999_v10, %v4009_v43  ;;  %v4369_v37 = vld [vmem:[#allocation2 + $0xb4] sm:$0xe] }
 0x133   :  { %5854 = vmatmul.mubr.msk.bf16.gmra.mrb[4].mxu1 %vm568_vm3, %v6420_v21  ;;  %6033 = vmatprep.mubr.msk.bf16.mxu0 %vm568_vm3, %v5400_v48  ;;  %v7774_v48 = vsel %vm6804_vm6, %v4501_v0, %v4502_v60  ;;  %v4018_v58 = vrot.slane %v4017_v62, 4  ;;  %v4425_v6 = vrot.slane %v6479_v26, 5  ;;  %v5436_v50 = vrot.slane %v4368_v25, 9  ;;  %v4357_v62 = vld [vmem:[#allocation2 + $0x24] sm:$0xe] }
 0x134   :  { %5857 = vmatprep.mubr.msk.bf16.mxu1 %vm568_vm3, %v6421_v51  ;;  %6087 = vmatpush3.bf16.msra.mxu1 %v6476_v13  ;;  %v5451_v21 = vcombine.low %v7764_v9, %v7774_v48  ;;  %v4028_v51 = vrot.slane %v4027_v63, 4  ;;  %v4424_v13 = vrot.slane %v4422_v57, 4  ;;  %v4506_v39 = vrot.slane %v7504_v61, 5  ;;  %v6480_v63 = vld [vmem:[#allocation2 + $0x28] sm:$0xf] }
 0x135   :  { %6084 = vmatprep.subr.bf16.mxu1 %v6478_v20  ;;  %v4509_v46 = vrot.slane %v7547_v28, 5  ;;  %v4023_v60 = vsel %vm6636_vm2, %v4018_v58, %v7741_v34  ;;  %v4423_v28 = vsel %vm6804_vm6, %v5424_v31, %v4422_v57  ;;  %v4429_v29 = vrot.slane %v6480_v63, 5  ;;  %v6481_v10 = vld [vmem:[#allocation2 + $0x34] sm:$0xf]  ;;  %v6482_v31 = vld [vmem:[#allocation2 + $0x2c] sm:$0x1] }
 0x136   :  { %v7783_v41 = vsel %vm6804_vm6, %v5436_v50, %v4506_v39  ;;  %v4508_v11 = vrot.slane %v4506_v39, 4  ;;  %v4033_v61 = vsel %vm6636_vm2, %v4028_v51, %v4032_v56  ;;  %v4426_v0 = vsel %vm6804_vm6, %v4424_v13, %v4425_v6  ;;  %v6425_v58 = vld [vmem:[#allocation2 + $0x60] sm:$0xff]   ;;  %v6426_v13 = vld [vmem:[#allocation2 + $0x6c] sm:$0xff]   ;;  %v6499_v9 = vld [vmem:[#allocation2 + $0xc8] sm:$0x1] }
 0x137   :  { %v4436_v43 = vrot.slane %v6481_v10, 5  ;;  %v5437_v34 = vrot.slane %v4369_v37, 9  ;;  %v4513_v57 = vrot.slane %v7588_v36, 5  ;;  %v5425_v56 = vrot.slane %v4357_v62, 9  ;;  %v4370_v36 = vld [vmem:[#allocation2 + $0xc0] sm:$0xe] }
 0x138   :  { %6088 = vmatpush3.bf16.msra.mxu1 %v6478_v20  ;;  %v7799_v17 = vsel %vm6804_vm6, %v4508_v11, %v4509_v46  ;;  %v4358_v20 = vld [vmem:[#allocation2 + $0x30] sm:$0xe]  ;;  %v5440_v51 = vcombine.low %v4423_v28, %v4426_v0  ;;  %v4431_v26 = vrot.slane %v4429_v29, 4  ;;  %v6483_v46 = vld [vmem:[#allocation2 + $0x38] sm:$0x1]  ;;  %v5438_v63 = vrot.slane %v4370_v36, 9 }
 0x139   :  { %v5452_v25 = vcombine.low %v7783_v41, %v7799_v17  ;;  %v7807_v6 = vsel %vm6804_vm6, %v5437_v34, %v4513_v57  ;;  %v5426_v50 = vrot.slane %v4358_v20, 9  ;;  %v4438_v39 = vrot.slane %v4436_v43, 4  ;;  %v6484_v28 = vld [vmem:[#allocation2 + $0x40] sm:$0xf]  ;;  %v4359_v34 = vld [vmem:[#allocation2 + $0x3c] sm:$0xe] }
 0x13a   :  { %6034 = vmatmul.mubr.msk.bf16.gmra.mrb[24].mxu0 %vm568_vm3, %v5401_v14  ;;  %v5403_v14 = vcombine.low %v4023_v60, %v4033_v61  ;;  %v4439_v37 = vrot.slane %v6483_v46, 5  ;;  %v4430_v60 = vsel %vm6804_vm6, %v5425_v56, %v4429_v29  ;;  %v4443_v62 = vrot.slane %v6484_v28, 5  ;;  %v4371_v29 = vld [vmem:[#allocation2 + $0xcc] sm:$0xe]  ;;  %v6486_v28 = vld [vmem:[#allocation2 + $0x70] sm:$0xf] }
 0x13b   :  { %5858 = vmatmul.mubr.msk.bf16.gmra.mrb[8].mxu1 %vm568_vm3, %v6422_v16  ;;  %6037 = vmatprep.mubr.msk.bf16.mxu0 %vm568_vm3, %v5402_v22  ;;  %v4432_v16 = vrot.slane %v6482_v31, 5  ;;  %v4516_v22 = vrot.slane %v7660_v23, 5  ;;  %v4437_v0 = vsel %vm6804_vm6, %v5426_v50, %v4436_v43  ;;  %v4520_v20 = vrot.slane %v7646_v59, 5  ;;  %v1987_v56 = vld [vmem:[#allocation2 + $0x6c] sm:$0xf] }
 0x13c   :  { %5861 = vmatprep.mubr.msk.bf16.mxu1 %vm568_vm3, %v6424_v35  ;;  %v4515_v35 = vrot.slane %v4513_v57, 4  ;;  %v4440_v10 = vsel %vm6804_vm6, %v4438_v39, %v4439_v37  ;;  %v4523_v57 = vrot.slane %v7709_v24, 5  ;;  %v4445_v43 = vrot.slane %v4443_v62, 4 }
 0x13d   :  { %v4433_v61 = vsel %vm6804_vm6, %v4431_v26, %v4432_v16  ;;  %v7831_v31 = vsel %vm6804_vm6, %v5438_v63, %v4520_v20  ;;  %v4522_v16 = vrot.slane %v4520_v20, 4  ;;  %v6485_v26 = vld [vmem:[#allocation2 + $0x44] sm:$0x1]  ;;  %v5439_v24 = vrot.slane %v4371_v29, 9 }
 0x13e   :  { %v7811_v11 = vsel %vm6804_vm6, %v4515_v35, %v4516_v22  ;;  %v6427_v22 = vld [vmem:[#allocation2 + $0x78] sm:$0xff]   ;;  %v4446_v35 = vrot.slane %v6485_v26, 5  ;;  %v2204_v50 = vshrl.u32 %v1987_v56, 16  ;;  %v2207_v39 = vshll.u32 %v1987_v56, 16 }
 0x13f   :  { %v5453_v23 = vcombine.low %v7807_v6, %v7811_v11  ;;  %v7835_v59 = vsel %vm6804_vm6, %v4522_v16, %v4523_v57  ;;  %v4527_v37 = vrot.slane %v7698_v38, 5  ;;  %v4530_v36 = vrot.slane %v7739_v7, 5  ;;  %v6430_v16 = vld [vmem:[#allocation2 + $0x9c] sm:$0xff]  }
 0x140   :  { %v5454_v46 = vcombine.low %v7831_v31, %v7835_v59  ;;  %v2213_v63 = vshll.u32 %v6486_v28, 16  ;;  %v2333_v42 = vshll.u32 %v6494_v5, 16  ;;  %v2391_v48 = vshll.u32 %v6499_v9, 16 }
 0x141   :  { %v7851_v38 = vsel %vm6804_vm6, %v5439_v24, %v4527_v37  ;;  %v4529_v7 = vrot.slane %v4527_v37, 4  ;;  %v1996_v37 = vld [vmem:[#allocation2 + $0x90] sm:$0xf] }
 0x142   :  { %6038 = vmatmul.mubr.msk.bf16.gmra.mrb[28].mxu0 %vm568_vm3, %v5403_v14  ;;  %v5441_v14 = vcombine.low %v4430_v60, %v4433_v61  ;;  %v4447_v61 = vsel %vm6804_vm6, %v4445_v43, %v4446_v35  ;;  %v2215_v29 = vrot.slane %v2213_v63, 5 }
 0x143   :  { %5862 = vmatmul.mubr.msk.bf16.gmra.mrb[12].mxu1 %vm568_vm3, %v6425_v58  ;;  %6049 = vmatprep.mubr.msk.bf16.mxu0 %vm568_vm3, %v5440_v51  ;;  %v5442_v58 = vcombine.low %v4437_v0, %v4440_v10  ;;  %v5427_v51 = vrot.slane %v4359_v34, 9  ;;  %v2217_v0 = vshrl.u32 %v6486_v28, 16  ;;  %v2206_v10 = vrot.slane %v2204_v50, 4 }
 0x144   :  { %5865 = vmatprep.mubr.msk.bf16.mxu1 %vm568_vm3, %v6426_v13  ;;  %v6428_v13 = vld [vmem:[#allocation2 + $0x84] sm:$0xff]   ;;  %v2209_v34 = vrot.slane %v2207_v39, 5  ;;  %v7855_v57 = vsel %vm6804_vm6, %v4529_v7, %v4530_v36  ;;  %v2276_v7 = vshrl.u32 %v1996_v37, 16 }
 0x145   :  { %v4444_v60 = vsel %vm6804_vm6, %v5427_v51, %v4443_v62  ;;  %v6429_v62 = vld [vmem:[#allocation2 + $0x90] sm:$0xff]   ;;  %v5455_v56 = vcombine.low %v7851_v38, %v7855_v57  ;;  %v6431_v36 = vld [vmem:[#allocation2 + $0xa8] sm:$0xff]  }
 0x146   :  { %v5443_v20 = vcombine.low %v4444_v60, %v4447_v61  ;;  %v6487_v51 = vld [vmem:[#allocation2 + $0x74] sm:$0x1] }
 0x147   :  { %v2223_v43 = vshll.u32 %v6487_v51, 16  ;;  %v6491_v51 = vld [vmem:[#allocation2 + $0x8c] sm:$0x1] }
 0x149   :  { %v2225_v61 = vrot.slane %v2223_v43, 5  ;;  %v2271_v43 = vshll.u32 %v6491_v51, 16 }
 0x14a   :  { %6050 = vmatmul.mubr.msk.bf16.vlgmr.msra.gmra.mrb[0].mxu0 %vm568_vm3, %v5441_v14  ;;  %v2219_v14 = vrot.slane %v2217_v0, 4 }
 0x14b   :  { %5866 = vmatmul.mubr.msk.bf16.gmra.mrb[16].mxu1 %vm568_vm3, %v6427_v22  ;;  %6053 = vmatprep.mubr.msk.bf16.mxu0 %vm568_vm3, %v5442_v58  ;;  %v1993_v22 = vld [vmem:[#allocation2 + $0x84] sm:$0xf]  ;;  %v2210_v58 = vor.u32 %v2209_v34, %v2206_v10  ;;  %v2279_v10 = vshll.u32 %v1996_v37, 16 }
 0x14c   :  { %5869 = vmatprep.mubr.msk.bf16.mxu1 %vm568_vm3, %v6428_v13  ;;  %v2220_v4 = vor.u32 %v2219_v14, %v2215_v29  ;;  %v2252_v26 = vshrl.u32 %v1993_v22, 16  ;;  %v2255_v35 = vshll.u32 %v1993_v22, 16  ;;  %v6488_v13 = vld [vmem:[#allocation2 + $0x88] sm:$0xf]  ;;  %v2303_v22 = vshll.u32 %v1999_v19, 16 }
 0x14d   :  { %v2261_v24 = vshll.u32 %v6488_v13, 16  ;;  %v2265_v50 = vshrl.u32 %v6488_v13, 16  ;;  %v2211_v39 = vrot.slane %v2210_v58, 4 }
 0x14e   :  { %v2221_v60 = vrot.slane %v2220_v4, 4  ;;  %v2254_v28 = vrot.slane %v2252_v26, 4  ;;  %v2257_v63 = vrot.slane %v2255_v35, 5  ;;  %v6490_v4 = vld [vmem:[#allocation2 + $0xa0] sm:$0xf]  ;;  %v2278_v26 = vrot.slane %v2276_v7, 4 }
 0x14f   :  { %v2267_v0 = vrot.slane %v2265_v50, 4  ;;  %v2216_v34 = vsel %vm6636_vm2, %v2211_v39, %v2215_v29  ;;  %v2309_v53 = vshll.u32 %v6490_v4, 16  ;;  %v2313_v52 = vshrl.u32 %v6490_v4, 16 }
 0x150   :  { %v2226_v29 = vsel %vm6636_vm2, %v2221_v60, %v2225_v61  ;;  %v2258_v58 = vor.u32 %v2257_v63, %v2254_v28  ;;  %v2281_v35 = vrot.slane %v2279_v10, 5  ;;  %v2002_v60 = vld [vmem:[#allocation2 + $0xa8] sm:$0xf]  ;;  %v2273_v28 = vrot.slane %v2271_v43, 5  ;;  %v6493_v10 = vld [vmem:[#allocation2 + $0xa4] sm:$0x1] }
 0x151   :  { %v5272_v50 = vcombine.low %v2216_v34, %v2226_v29  ;;  %v7885_v37 = vrot.slane %v2309_v53, 5  ;;  %v2319_v34 = vshll.u32 %v6493_v10, 16 }
 0x152   :  { %6054 = vmatmul.mubr.msk.bf16.gmra.mrb[4].mxu0 %vm568_vm3, %v5443_v20  ;;  %v6489_v20 = vld [vmem:[#allocation2 + $0x94] sm:$0xf]  ;;  %v2259_v39 = vrot.slane %v2258_v58, 4  ;;  %v2282_v63 = vor.u32 %v2281_v35, %v2278_v26 }
 0x153   :  { %5870 = vmatmul.mubr.msk.bf16.gmra.mrb[20].mxu1 %vm568_vm3, %v6429_v62  ;;  %6057 = vmatprep.mubr.msk.bf16.mxu0 %vm568_vm3, %v5444_v15  ;;  %v7866_v15 = vrot.slane %v2261_v24, 5  ;;  %v2285_v62 = vshll.u32 %v6489_v20, 16  ;;  %v2289_v14 = vshrl.u32 %v6489_v20, 16  ;;  %v6433_v24 = vld [vmem:[#allocation2 + $0xc0] sm:$0xff]   ;;  %v2324_v20 = vshrl.u32 %v2002_v60, 16 }
 0x154   :  { %5873 = vmatprep.mubr.msk.bf16.mxu1 %vm568_vm3, %v6430_v16  ;;  %v2300_v16 = vshrl.u32 %v1999_v19, 16  ;;  %v6492_v19 = vld [vmem:[#allocation2 + $0x98] sm:$0x1]  ;;  %v2283_v58 = vrot.slane %v2282_v63, 4  ;;  %v2321_v43 = vrot.slane %v2319_v34, 5 }
 0x155   :  { %v7883_v13 = vrot.slane %v2285_v62, 5  ;;  %v2291_v12 = vrot.slane %v2289_v14, 4  ;;  %v2005_v62 = vld [vmem:[#allocation2 + $0xb4] sm:$0xf]  ;;  %v2326_v26 = vrot.slane %v2324_v20, 4 }
 0x156   :  { %v2302_v55 = vrot.slane %v2300_v16, 4  ;;  %v2327_v16 = vshll.u32 %v2002_v60, 16  ;;  %v2348_v2 = vshrl.u32 %v2005_v62, 16  ;;  %v2351_v40 = vshll.u32 %v2005_v62, 16  ;;  %v2008_v60 = vld [vmem:[#allocation2 + $0xc0] sm:$0xf] }
 0x157   :  { %v6498_v20 = vld [vmem:[#allocation2 + $0xbc] sm:$0x1] }
 0x158   :  { %v2367_v54 = vshll.u32 %v6498_v20, 16 }
 0x15a   :  { %6058 = vmatmul.mubr.msk.bf16.gmra.mrb[8].mxu0 %vm568_vm3, %v5445_v49  ;;  %v2268_v49 = vor.u32 %v2267_v0, %v7866_v15  ;;  %v2292_v0 = vor.u32 %v2291_v12, %v7883_v13  ;;  %v2329_v12 = vrot.slane %v2327_v16, 5 }
 0x15b   :  { %5874 = vmatmul.mubr.msk.bf16.gmra.mrb[24].mxu1 %vm568_vm3, %v6431_v36  ;;  %6061 = vmatprep.mubr.msk.bf16.mxu0 %vm568_vm3, %v5446_v27  ;;  %v2305_v27 = vrot.slane %v2303_v22, 5  ;;  %v2315_v36 = vrot.slane %v2313_v52, 4  ;;  %v2264_v22 = vsel %vm6636_vm2, %v2259_v39, %v7866_v15  ;;  %v2350_v15 = vrot.slane %v2348_v2, 4 }
 0x15c   :  { %5877 = vmatprep.mubr.msk.bf16.mxu1 %vm568_vm3, %v6432_v45  ;;  %v2269_v61 = vrot.slane %v2268_v49, 4  ;;  %v2295_v45 = vshll.u32 %v6492_v19, 16  ;;  %v2293_v49 = vrot.slane %v2292_v0, 4  ;;  %v2330_v47 = vor.u32 %v2329_v12, %v2326_v26 }
 0x15d   :  { %v2306_v7 = vor.u32 %v2305_v27, %v2302_v55  ;;  %v2316_v14 = vor.u32 %v2315_v36, %v7885_v37  ;;  %v2335_v55 = vrot.slane %v2333_v42, 5  ;;  %v2375_v0 = vshll.u32 %v2008_v60, 16 }
 0x15e   :  { %v2274_v29 = vsel %vm6636_vm2, %v2269_v61, %v2273_v28  ;;  %v2297_v4 = vrot.slane %v2295_v45, 5  ;;  %v2288_v61 = vsel %vm6636_vm2, %v2283_v58, %v7883_v13  ;;  %v6496_v13 = vld [vmem:[#allocation2 + $0xb0] sm:$0x1]  ;;  %v2372_v45 = vshrl.u32 %v2008_v60, 16 }
 0x15f   :  { %v2307_v51 = vrot.slane %v2306_v7, 4  ;;  %v2317_v35 = vrot.slane %v2316_v14, 4  ;;  %v2343_v19 = vshll.u32 %v6496_v13, 16  ;;  %v2331_v62 = vrot.slane %v2330_v47, 4 }
 0x160   :  { %v2298_v28 = vsel %vm6636_vm2, %v2293_v49, %v2297_v4  ;;  %v2377_v42 = vrot.slane %v2375_v0, 5  ;;  %v2369_v4 = vrot.slane %v2367_v54, 5 }
 0x161   :  { %v2312_v63 = vsel %vm6636_vm2, %v2307_v51, %v7885_v37  ;;  %v2322_v18 = vsel %vm6636_vm2, %v2317_v35, %v2321_v43  ;;  %v6497_v37 = vld [vmem:[#allocation2 + $0xc4] sm:$0xf]  ;;  %v5275_v1 = vcombine.low %v2288_v61, %v2298_v28  ;;  %v2345_v16 = vrot.slane %v2343_v19, 5 }
 0x162   :  { %6062 = vmatmul.mubr.msk.bf16.gmra.mrb[12].mxu0 %vm568_vm3, %v5447_v3  ;;  %v2337_v3 = vshrl.u32 %v6494_v5, 16  ;;  %v2381_v7 = vshll.u32 %v6497_v37, 16  ;;  %v2385_v10 = vshrl.u32 %v6497_v37, 16  ;;  %v2374_v5 = vrot.slane %v2372_v45, 4 }
 0x163   :  { %5878 = vmatmul.mubr.msk.bf16.gmra.mrb[28].mxu1 %vm568_vm3, %v6433_v24  ;;  %6065 = vmatprep.mubr.msk.bf16.mxu0 %vm568_vm3, %v5448_v30  ;;  %v6495_v30 = vld [vmem:[#allocation2 + $0xb8] sm:$0xf]  ;;  %v5274_v24 = vcombine.low %v2264_v22, %v2274_v29  ;;  %v2336_v2 = vsel %vm6636_vm2, %v2331_v62, %v2335_v55  ;;  %v2393_v51 = vrot.slane %v2391_v48, 5 }
 0x164   :  { %5905 = vmatprep.mubr.msk.bf16.mxu1 %vm568_vm3, %v5272_v50  ;;  %v2357_v53 = vshll.u32 %v6495_v30, 16  ;;  %v2361_v52 = vshrl.u32 %v6495_v30, 16  ;;  %v2339_v27 = vrot.slane %v2337_v3, 4  ;;  %v2353_v50 = vrot.slane %v2351_v40, 5 }
 0x165   :  { %v2383_v3 = vrot.slane %v2381_v7, 5  ;;  %v2387_v22 = vrot.slane %v2385_v10, 4  ;;  %v2378_v30 = vor.u32 %v2377_v42, %v2374_v5 }
 0x166   :  { %v2359_v39 = vrot.slane %v2357_v53, 5  ;;  %v2363_v36 = vrot.slane %v2361_v52, 4 }
 0x167   :  { %v2388_v53 = vor.u32 %v2387_v22, %v2383_v3  ;;  %v2379_v52 = vrot.slane %v2378_v30, 4 }
 0x168   :  { %v2364_v34 = vor.u32 %v2363_v36, %v2359_v39  ;;  %v7975_v36 = vld [vmem:[%s8063_s2] ss:$0 sm:$0xff]  ;;  %s6576_s2 = smov [#allocation7]  }
 0x169   :  { %v2389_v49 = vrot.slane %v2388_v53, 4  ;;  %v2384_v43 = vsel %vm6636_vm2, %v2379_v52, %v2383_v3  ;;  %s5091_s11 = sshll.u32 %s6576_s2, 4  ;;  %s5092_s11 = int_to_ptr.vmem [resolvable:$true] %s5091_s11 }
 0x16a   :  { %6066 = vmatmul.mubr.msk.bf16.gmra.mrb[16].mxu0 %vm568_vm3, %v5449_v44  ;;  %v2340_v44 = vor.u32 %v2339_v27, %v2335_v55  ;;  %v2365_v58 = vrot.slane %v2364_v34, 4  ;;  %s6544_s12 = scalar_lea.vmem %s5092_s11, 2048  ;;  %p6549_p3 = scmp.lt.s32.totalorder %s5092_s11, %s5092_s11 }
 0x16b   :  { %5906 = vmatmul.mubr.msk.bf16.vlgmr.msra.gmra.mrb[16].mxu1 %vm568_vm3, %v7732_v8  ;;  %6069 = vmatprep.mubr.msk.bf16.mxu0 %vm568_vm3, %v5450_v32  ;;  %v2354_v8 = vor.u32 %v2353_v50, %v2350_v15  ;;  %v5276_v32 = vcombine.low %v2312_v63, %v2322_v18  ;;  %v2394_v26 = vsel %vm6636_vm2, %v2389_v49, %v2393_v51  ;;  %p6545_p2 = scmp.ne.s32.totalorder %s5092_s11, %s6544_s12  ;;  %p6550_p4 = scmp.lt.s32.totalorder %s6544_s12, %s6544_s12 }
 0x16c   :  { %5909 = vmatprep.mubr.msk.bf16.mxu1 %vm568_vm3, %v5274_v24  ;;  %v2341_v14 = vrot.slane %v2340_v44, 4  ;;  %v2370_v41 = vsel %vm6636_vm2, %v2365_v58, %v2369_v4  ;;  %v5279_v35 = vcombine.low %v2384_v43, %v2394_v26 }
 0x16d   :  { %v2355_v29 = vrot.slane %v2354_v8, 4  ;;  %p6551_p5 = por %p6550_p4, %p6549_p3 }
 0x16e   :  { %v2346_v40 = vsel %vm6636_vm2, %v2341_v14, %v2345_v16 }
 0x16f   :  { %v5277_v17 = vcombine.low %v2336_v2, %v2346_v40  ;;  %p6552_p6 = pnand %p6551_p5, %p6545_p2 }
 0x172   :  { %6070 = vmatmul.mubr.msk.bf16.gmra.mrb[20].mxu0 %vm568_vm3, %v5451_v21  ;;  %v2360_v21 = vsel %vm6636_vm2, %v2355_v29, %v2359_v39 }
 0x173   :  { %5910 = vmatmul.mubr.msk.bf16.gmra.mrb[20].mxu1 %vm568_vm3, %v5275_v1  ;;  %6073 = vmatprep.mubr.msk.bf16.mxu0 %vm568_vm3, %v5452_v25  ;;  %v5278_v25 = vcombine.low %v2360_v21, %v2370_v41 }
 0x174   :  { %5913 = vmatprep.mubr.msk.bf16.mxu1 %vm568_vm3, %v5276_v32 }
 0x17a   :  { %6074 = vmatmul.mubr.msk.bf16.gmra.mrb[24].mxu0 %vm568_vm3, %v5453_v23 }
 0x17b   :  { %5914 = vmatmul.mubr.msk.bf16.gmra.mrb[24].mxu1 %vm568_vm3, %v5277_v17  ;;  %6077 = vmatprep.mubr.msk.bf16.mxu0 %vm568_vm3, %v5454_v46 }
 0x17c   :  { %5917 = vmatprep.mubr.msk.bf16.mxu1 %vm568_vm3, %v5278_v25 }
 0x182   :  { %6078 = vmatmul.mubr.msk.bf16.gmra.mrb[28].mxu0 %vm568_vm3, %v5455_v56 }
 0x183   :  { %5918 = vmatmul.mubr.msk.bf16.gmra.mrb[28].mxu1 %vm568_vm3, %v5279_v35 }
 0x1fe   :  { %v5851_v6 = vpop.f32.mrb[0].mxu1 }
 0x1ff   :  { %v1804_v11 = vpop.f32.mrb[1].mxu1 }
 0x200   :  { %v5852_v23 = vpop.f32.mrb[2].mxu1 }
 0x201   :  { %v1807_v31 = vpop.f32.mrb[3].mxu1 }
 0x206   :  { %v5855_v59 = vpop.f32.mrb[4].mxu1 }
 0x207   :  { %v1820_v46 = vpop.f32.mrb[5].mxu1 }
 0x208   :  { %v5856_v12 = vpop.f32.mrb[6].mxu1 }
 0x209   :  { %v1823_v55 = vpop.f32.mrb[7].mxu1 }
 0x20e   :  { %v5859_v27 = vpop.f32.mrb[8].mxu1 }
 0x20f   :  { %v1836_v24 = vpop.f32.mrb[9].mxu1 }
 0x210   :  { %v5860_v33 = vpop.f32.mrb[10].mxu1 }
 0x211   :  { %v7962_v15 = vpop.f32.mrb[11].mxu1 }
 0x216   :  { %v7964_v50 = vpop.f32.mrb[12].mxu1 }
 0x217   :  { %v7966_v38 = vpop.f32.mrb[13].mxu1 }
 0x218   :  { %v7968_v57 = vpop.f32.mrb[14].mxu1 }
 0x219   :  { %v7970_v56 = vpop.f32.mrb[15].mxu1 }
 0x21d   :  { %v6051_v39 = vpop.f32.mrb[0].mxu0 }
 0x21e   :  { %v6089_v60 = vadd.f32 %v6051_v39, %v5851_v6  ;;  %v4695_v61 = vpop.f32.mrb[1].mxu0 }
 0x21f   :  { %v6090_v28 = vadd.f32 %v4695_v61, %v1804_v11  ;;  %v6052_v63 = vpop.f32.mrb[2].mxu0 }
 0x220   :  { %v4863_v18 = vadd.f32 %v6089_v60, %v7975_v36  ;;  %v6091_v47 = vadd.f32 %v6052_v63, %v5852_v23  ;;  %v4698_v44 = vpop.f32.mrb[3].mxu0 }
 0x221   :  { %v4861_v13 = vadd.f32 %v6090_v28, %v7975_v36  ;;  %v6092_v19 = vadd.f32 %v4698_v44, %v1807_v31 }
 0x222   :  { %v4895_v45 = vmax.f32 %v4863_v18, 0.0  ;;  %v4864_v0 = vadd.f32 %v6091_v47, %v7975_v36 }
 0x223   :  { %v4893_v37 = vmax.f32 %v4861_v13, 0.0  ;;  %v4862_v7 = vadd.f32 %v6092_v19, %v7975_v36 }
 0x224   :  { %v5511_v10 = vpack.c.bf16 %v4895_v45, %v4895_v45  ;;  %v4896_v8 = vmax.f32 %v4864_v0, 0.0 }
 0x225   :  { %v5509_v34 = vpack.c.bf16 %v4893_v37, %v4893_v37  ;;  %v4894_v20 = vmax.f32 %v4862_v7, 0.0  ;;  %v6055_v54 = vpop.f32.mrb[4].mxu0 }
 0x226   :  { %5056 = vst.msk [vmem:[#allocation7 + $0x8] sm:$0xf] %vm5053_vm7, %v5511_v10  ;;  %v5512_v1 = vpack.c.bf16 %v4896_v8, %v4896_v8  ;;  %v6093_v32 = vadd.f32 %v6055_v54, %v5855_v59  ;;  %v4711_v62 = vpop.f32.mrb[5].mxu0 }
 0x227   :  { %5054 = vst.msk [vmem:[#allocation7] sm:$0xf] %vm5053_vm7, %v5509_v34  ;;  %v5510_v14 = vpack.c.bf16 %v4894_v20, %v4894_v20  ;;  %v6094_v16 = vadd.f32 %v4711_v62, %v1820_v46  ;;  %v6056_v5 = vpop.f32.mrb[6].mxu0 }
 0x228   :  { %5057 = vst.msk [vmem:[#allocation7 + $0xc] sm:$0xf] %vm5053_vm7, %v5512_v1  ;;  %v4867_v42 = vadd.f32 %v6093_v32, %v7975_v36  ;;  %v6095_v3 = vadd.f32 %v6056_v5, %v5856_v12  ;;  %v4714_v22 = vpop.f32.mrb[7].mxu0 }
 0x229   :  { %5055 = vst.msk [vmem:[#allocation7 + $0x4] sm:$0xf] %vm5053_vm7, %v5510_v14  ;;  %v4865_v29 = vadd.f32 %v6094_v16, %v7975_v36  ;;  %v6096_v58 = vadd.f32 %v4714_v22, %v1823_v55 }
 0x22a   :  { %v4899_v4 = vmax.f32 %v4867_v42, 0.0  ;;  %v4868_v2 = vadd.f32 %v6095_v3, %v7975_v36 }
 0x22b   :  { %v4897_v40 = vmax.f32 %v4865_v29, 0.0  ;;  %v4866_v30 = vadd.f32 %v6096_v58, %v7975_v36 }
 0x22c   :  { %v5515_v53 = vpack.c.bf16 %v4899_v4, %v4899_v4  ;;  %v4900_v9 = vmax.f32 %v4868_v2, 0.0 }
 0x22d   :  { %v5513_v48 = vpack.c.bf16 %v4897_v40, %v4897_v40  ;;  %v4898_v21 = vmax.f32 %v4866_v30, 0.0  ;;  %v6059_v41 = vpop.f32.mrb[8].mxu0 }
 0x22e   :  { %5060 = vst.msk [vmem:[#allocation7 + $0x18] sm:$0xf] %vm5053_vm7, %v5515_v53  ;;  %v5516_v17 = vpack.c.bf16 %v4900_v9, %v4900_v9  ;;  %v6097_v25 = vadd.f32 %v6059_v41, %v5859_v27  ;;  %v4727_v52 = vpop.f32.mrb[9].mxu0 }
 0x22f   :  { %5058 = vst.msk [vmem:[#allocation7 + $0x10] sm:$0xf] %vm5053_vm7, %v5513_v48  ;;  %v5514_v49 = vpack.c.bf16 %v4898_v21, %v4898_v21  ;;  %v6098_v51 = vadd.f32 %v4727_v52, %v1836_v24  ;;  %v6060_v43 = vpop.f32.mrb[10].mxu0 }
 0x230   :  { %5061 = vst.msk [vmem:[#allocation7 + $0x1c] sm:$0xf] %vm5053_vm7, %v5516_v17  ;;  %v4871_v26 = vadd.f32 %v6097_v25, %v7975_v36  ;;  %v6099_v35 = vadd.f32 %v6060_v43, %v5860_v33  ;;  %v4730_v6 = vpop.f32.mrb[11].mxu0 }
 0x231   :  { %5059 = vst.msk [vmem:[#allocation7 + $0x14] sm:$0xf] %vm5053_vm7, %v5514_v49  ;;  %v4869_v11 = vadd.f32 %v6098_v51, %v7975_v36  ;;  %v6100_v23 = vadd.f32 %v4730_v6, %v7962_v15 }
 0x232   :  { %v4903_v31 = vmax.f32 %v4871_v26, 0.0  ;;  %v4872_v59 = vadd.f32 %v6099_v35, %v7975_v36 }
 0x233   :  { %v4901_v46 = vmax.f32 %v4869_v11, 0.0  ;;  %v4870_v12 = vadd.f32 %v6100_v23, %v7975_v36 }
 0x234   :  { %v5519_v55 = vpack.c.bf16 %v4903_v31, %v4903_v31  ;;  %v4904_v27 = vmax.f32 %v4872_v59, 0.0 }
 0x235   :  { %v5517_v24 = vpack.c.bf16 %v4901_v46, %v4901_v46  ;;  %v4902_v39 = vmax.f32 %v4870_v12, 0.0  ;;  %v6063_v60 = vpop.f32.mrb[12].mxu0 }
 0x236   :  { %5064 = vst.msk [vmem:[#allocation7 + $0x28] sm:$0xf] %vm5053_vm7, %v5519_v55  ;;  %v5520_v33 = vpack.c.bf16 %v4904_v27, %v4904_v27  ;;  %v6101_v61 = vadd.f32 %v6063_v60, %v7964_v50  ;;  %v4743_v28 = vpop.f32.mrb[13].mxu0 }
 0x237   :  { %5062 = vst.msk [vmem:[#allocation7 + $0x20] sm:$0xf] %vm5053_vm7, %v5517_v24  ;;  %v5518_v15 = vpack.c.bf16 %v4902_v39, %v4902_v39  ;;  %v6102_v63 = vadd.f32 %v4743_v28, %v7966_v38  ;;  %v6064_v18 = vpop.f32.mrb[14].mxu0 }
 0x238   :  { %5065 = vst.msk [vmem:[#allocation7 + $0x2c] sm:$0xf] %vm5053_vm7, %v5520_v33  ;;  %v4875_v47 = vadd.f32 %v6101_v61, %v7975_v36  ;;  %v6103_v44 = vadd.f32 %v6064_v18, %v7968_v57  ;;  %v4746_v13 = vpop.f32.mrb[15].mxu0 }
 0x239   :  { %5063 = vst.msk [vmem:[#allocation7 + $0x24] sm:$0xf] %vm5053_vm7, %v5518_v15  ;;  %v4873_v19 = vadd.f32 %v6102_v63, %v7975_v36  ;;  %v6104_v50 = vadd.f32 %v4746_v13, %v7970_v56 }
 0x23a   :  { %v4907_v45 = vmax.f32 %v4875_v47, 0.0  ;;  %v4876_v0 = vadd.f32 %v6103_v44, %v7975_v36 }
 0x23b   :  { %v4905_v37 = vmax.f32 %v4873_v19, 0.0  ;;  %v4874_v38 = vadd.f32 %v6104_v50, %v7975_v36 }
 0x23c   :  { %v5523_v7 = vpack.c.bf16 %v4907_v45, %v4907_v45  ;;  %v4908_v10 = vmax.f32 %v4876_v0, 0.0 }
 0x23d   :  { %v5521_v8 = vpack.c.bf16 %v4905_v37, %v4905_v37  ;;  %v4906_v34 = vmax.f32 %v4874_v38, 0.0  ;;  %v6067_v20 = vpop.f32.mrb[16].mxu0 }
 0x23e   :  { %5068 = vst.msk [vmem:[#allocation7 + $0x38] sm:$0xf] %vm5053_vm7, %v5523_v7  ;;  %v5524_v57 = vpack.c.bf16 %v4908_v10, %v4908_v10  ;;  %v5907_v54 = vpop.f32.mrb[16].mxu1  ;;  %v4759_v1 = vpop.f32.mrb[17].mxu0 }
 0x23f   :  { %5066 = vst.msk [vmem:[#allocation7 + $0x30] sm:$0xf] %vm5053_vm7, %v5521_v8  ;;  %v5522_v32 = vpack.c.bf16 %v4906_v34, %v4906_v34  ;;  %v6105_v56 = vadd.f32 %v6067_v20, %v5907_v54  ;;  %v2622_v62 = vpop.f32.mrb[17].mxu1  ;;  %v6068_v14 = vpop.f32.mrb[18].mxu0 }
 0x240   :  { %5069 = vst.msk [vmem:[#allocation7 + $0x3c] sm:$0xf] %vm5053_vm7, %v5524_v57  ;;  %v6106_v16 = vadd.f32 %v4759_v1, %v2622_v62  ;;  %v5908_v5 = vpop.f32.mrb[18].mxu1  ;;  %v4762_v42 = vpop.f32.mrb[19].mxu0 }
 0x241   :  { %5067 = vst.msk [vmem:[#allocation7 + $0x34] sm:$0xf] %vm5053_vm7, %v5522_v32  ;;  %v4879_v3 = vadd.f32 %v6105_v56, %v7975_v36  ;;  %v6107_v22 = vadd.f32 %v6068_v14, %v5908_v5  ;;  %v2625_v29 = vpop.f32.mrb[19].mxu1 }
 0x242   :  { %v4877_v58 = vadd.f32 %v6106_v16, %v7975_v36  ;;  %v6108_v4 = vadd.f32 %v4762_v42, %v2625_v29 }
 0x243   :  { %v4911_v2 = vmax.f32 %v4879_v3, 0.0  ;;  %v4880_v40 = vadd.f32 %v6107_v22, %v7975_v36 }
 0x244   :  { %v4909_v30 = vmax.f32 %v4877_v58, 0.0  ;;  %v4878_v53 = vadd.f32 %v6108_v4, %v7975_v36 }
 0x245   :  { %v5527_v9 = vpack.c.bf16 %v4911_v2, %v4911_v2  ;;  %v4912_v48 = vmax.f32 %v4880_v40, 0.0  ;;  %v6071_v21 = vpop.f32.mrb[20].mxu0 }
 0x246   :  { %v5525_v41 = vpack.c.bf16 %v4909_v30, %v4909_v30  ;;  %v4910_v17 = vmax.f32 %v4878_v53, 0.0  ;;  %v5911_v25 = vpop.f32.mrb[20].mxu1  ;;  %v4775_v52 = vpop.f32.mrb[21].mxu0 }
 0x247   :  { %5072 = vst.msk [vmem:[#allocation7 + $0x48] sm:$0xf] %vm5053_vm7, %v5527_v9  ;;  %v5528_v49 = vpack.c.bf16 %v4912_v48, %v4912_v48  ;;  %v6109_v51 = vadd.f32 %v6071_v21, %v5911_v25  ;;  %v2638_v43 = vpop.f32.mrb[21].mxu1  ;;  %v6072_v26 = vpop.f32.mrb[22].mxu0 }
 0x248   :  { %5070 = vst.msk [vmem:[#allocation7 + $0x40] sm:$0xf] %vm5053_vm7, %v5525_v41  ;;  %v5526_v35 = vpack.c.bf16 %v4910_v17, %v4910_v17  ;;  %v6110_v6 = vadd.f32 %v4775_v52, %v2638_v43  ;;  %v5912_v11 = vpop.f32.mrb[22].mxu1  ;;  %v4778_v23 = vpop.f32.mrb[23].mxu0 }
 0x249   :  { %5073 = vst.msk [vmem:[#allocation7 + $0x4c] sm:$0xf] %vm5053_vm7, %v5528_v49  ;;  %v4883_v31 = vadd.f32 %v6109_v51, %v7975_v36  ;;  %v6111_v59 = vadd.f32 %v6072_v26, %v5912_v11  ;;  %v2641_v46 = vpop.f32.mrb[23].mxu1 }
 0x24a   :  { %5071 = vst.msk [vmem:[#allocation7 + $0x44] sm:$0xf] %vm5053_vm7, %v5526_v35  ;;  %v4881_v12 = vadd.f32 %v6110_v6, %v7975_v36  ;;  %v6112_v55 = vadd.f32 %v4778_v23, %v2641_v46 }
 0x24b   :  { %v4915_v27 = vmax.f32 %v4883_v31, 0.0  ;;  %v4884_v24 = vadd.f32 %v6111_v59, %v7975_v36 }
 0x24c   :  { %v4913_v39 = vmax.f32 %v4881_v12, 0.0  ;;  %v4882_v60 = vadd.f32 %v6112_v55, %v7975_v36 }
 0x24d   :  { %v5531_v33 = vpack.c.bf16 %v4915_v27, %v4915_v27  ;;  %v4916_v61 = vmax.f32 %v4884_v24, 0.0  ;;  %v6075_v28 = vpop.f32.mrb[24].mxu0 }
 0x24e   :  { %v5529_v15 = vpack.c.bf16 %v4913_v39, %v4913_v39  ;;  %v4914_v63 = vmax.f32 %v4882_v60, 0.0  ;;  %v5915_v18 = vpop.f32.mrb[24].mxu1  ;;  %v4791_v47 = vpop.f32.mrb[25].mxu0 }
 0x24f   :  { %5076 = vst.msk [vmem:[#allocation7 + $0x58] sm:$0xf] %vm5053_vm7, %v5531_v33  ;;  %v5532_v44 = vpack.c.bf16 %v4916_v61, %v4916_v61  ;;  %v6113_v13 = vadd.f32 %v6075_v28, %v5915_v18  ;;  %v2654_v19 = vpop.f32.mrb[25].mxu1  ;;  %v6076_v50 = vpop.f32.mrb[26].mxu0 }
 0x250   :  { %5074 = vst.msk [vmem:[#allocation7 + $0x50] sm:$0xf] %vm5053_vm7, %v5529_v15  ;;  %v5530_v45 = vpack.c.bf16 %v4914_v63, %v4914_v63  ;;  %v6114_v0 = vadd.f32 %v4791_v47, %v2654_v19  ;;  %v5916_v37 = vpop.f32.mrb[26].mxu1  ;;  %v4794_v38 = vpop.f32.mrb[27].mxu0 }
 0x251   :  { %5077 = vst.msk [vmem:[#allocation7 + $0x5c] sm:$0xf] %vm5053_vm7, %v5532_v44  ;;  %v4887_v7 = vadd.f32 %v6113_v13, %v7975_v36  ;;  %v6115_v10 = vadd.f32 %v6076_v50, %v5916_v37  ;;  %v2657_v8 = vpop.f32.mrb[27].mxu1 }
 0x252   :  { %5075 = vst.msk [vmem:[#allocation7 + $0x54] sm:$0xf] %vm5053_vm7, %v5530_v45  ;;  %v4885_v34 = vadd.f32 %v6114_v0, %v7975_v36  ;;  %v6116_v20 = vadd.f32 %v4794_v38, %v2657_v8 }
 0x253   :  { %v4919_v57 = vmax.f32 %v4887_v7, 0.0  ;;  %v4888_v54 = vadd.f32 %v6115_v10, %v7975_v36 }
 0x254   :  { %v4917_v1 = vmax.f32 %v4885_v34, 0.0  ;;  %v4886_v32 = vadd.f32 %v6116_v20, %v7975_v36 }
 0x255   :  { %v5535_v56 = vpack.c.bf16 %v4919_v57, %v4919_v57  ;;  %v4920_v62 = vmax.f32 %v4888_v54, 0.0  ;;  %v6079_v14 = vpop.f32.mrb[28].mxu0 }
 0x256   :  { %v5533_v16 = vpack.c.bf16 %v4917_v1, %v4917_v1  ;;  %v4918_v5 = vmax.f32 %v4886_v32, 0.0  ;;  %v5919_v42 = vpop.f32.mrb[28].mxu1  ;;  %v4807_v3 = vpop.f32.mrb[29].mxu0 }
 0x257   :  { %5080 = vst.msk [vmem:[#allocation7 + $0x68] sm:$0xf] %vm5053_vm7, %v5535_v56  ;;  %v5536_v22 = vpack.c.bf16 %v4920_v62, %v4920_v62  ;;  %v6117_v29 = vadd.f32 %v6079_v14, %v5919_v42  ;;  %v2670_v58 = vpop.f32.mrb[29].mxu1  ;;  %v6080_v4 = vpop.f32.mrb[30].mxu0 }
 0x258   :  { %5078 = vst.msk [vmem:[#allocation7 + $0x60] sm:$0xf] %vm5053_vm7, %v5533_v16  ;;  %v5534_v2 = vpack.c.bf16 %v4918_v5, %v4918_v5  ;;  %v6118_v40 = vadd.f32 %v4807_v3, %v2670_v58  ;;  %v5920_v30 = vpop.f32.mrb[30].mxu1  ;;  %v4810_v53 = vpop.f32.mrb[31].mxu0 }
 0x259   :  { %5081 = vst.msk [vmem:[#allocation7 + $0x6c] sm:$0xf] %vm5053_vm7, %v5536_v22  ;;  %v4891_v9 = vadd.f32 %v6117_v29, %v7975_v36  ;;  %v6119_v48 = vadd.f32 %v6080_v4, %v5920_v30  ;;  %v2673_v21 = vpop.f32.mrb[31].mxu1 }
 0x25a   :  { %5079 = vst.msk [vmem:[#allocation7 + $0x64] sm:$0xf] %vm5053_vm7, %v5534_v2  ;;  %v4889_v41 = vadd.f32 %v6118_v40, %v7975_v36  ;;  %v6120_v17 = vadd.f32 %v4810_v53, %v2673_v21 }
 0x25b   :  { %v4923_v25 = vmax.f32 %v4891_v9, 0.0  ;;  %v4892_v52 = vadd.f32 %v6119_v48, %v7975_v36 }
 0x25c   :  { %v4921_v49 = vmax.f32 %v4889_v41, 0.0  ;;  %v4890_v51 = vadd.f32 %v6120_v17, %v7975_v36 }
 0x25d   :  { %v5539_v43 = vpack.c.bf16 %v4923_v25, %v4923_v25  ;;  %v4924_v26 = vmax.f32 %v4892_v52, 0.0 }
 0x25e   :  { %v5537_v35 = vpack.c.bf16 %v4921_v49, %v4921_v49  ;;  %v4922_v6 = vmax.f32 %v4890_v51, 0.0 }
 0x25f   :  { %5084 = vst.msk [vmem:[#allocation7 + $0x78] sm:$0xf] %vm5053_vm7, %v5539_v43  ;;  %v5540_v11 = vpack.c.bf16 %v4924_v26, %v4924_v26 }
 0x260   :  { %5082 = vst.msk [vmem:[#allocation7 + $0x70] sm:$0xf] %vm5053_vm7, %v5537_v35  ;;  %v5538_v23 = vpack.c.bf16 %v4922_v6, %v4922_v6 }
 0x261   :  { %5085 = vst.msk [vmem:[#allocation7 + $0x7c] sm:$0xf] %vm5053_vm7, %v5540_v11 }
 0x262   :  { %5083 = vst.msk [vmem:[#allocation7 + $0x74] sm:$0xf] %vm5053_vm7, %v5538_v23 }
 0x263   :  { %6555 = shalt.err (!%p6552_p6)
}
 0x264   :  { %s6556_s15 = scalar_lea.hbm %s8064_s3, 2048 }
 0x265   :  { %p6557_p7 = scmp.ne.s32.totalorder %s8064_s3, %s6556_s15  ;;  %p6560_p8 = scmp.lt.u32.totalorder %s6556_s15, %s8064_s3 }
 0x267   :  { %p6562_p9 = pnand %p6560_p8, %p6557_p7 }
 0x269   :  { %6565 = shalt.err (!%p6562_p9)
}
 0x26a   :  { %5097 = dma.vmem_to_hbm [thread:$0]  %s5092_s11, 2048, %s8064_s3, [#allocation4], %s6573_s22, %s6573_s22, %s6574_s23  }
 0x26b   :  { %6570 = dma.done.wait [#allocation4], 2048  }
 0x26c   :  { %6571 = vsyncadd [#allocation4], 4294965248 }
 0x26d   :  { %5101 = vsyncpa [#allocation3], 1 }
 0x26e   :  { %5102 = vsyncpa [#allocation6], 1 }
 0x26f   :  { %5103 = vsyncpa [#allocation4], 1 }

// kernel: tpu_custom_call.1
= control target key start
LH: loop header
LB: loop body
LE: loop exit
PB: predicated region body
PF: predicated region fallthrough
CT: control target
= control target key end

     0   :  { %8 = vsyncpa [#allocation3], 0  ;;  %s3221_s0 = inlined_call_operand.hbm [shape: bf16[2048,256], index: 0, kind: input, shape index: {}]   ;;  %s3222_s1 = inlined_call_operand.vmem [shape: bf16[256,64], index: 1, kind: input, shape index: {}]   ;;  %s3223_s2 = inlined_call_operand.vmem [shape: f32[1,64], index: 2, kind: input, shape index: {}]   ;;  %s3224_s3 = inlined_call_operand.vmem [shape: f32[2048,64], index: 3, kind: output, shape index: {}]  }
   0x1   :  { %10 = vsyncpa [#allocation3 + $0x1], 0  ;;  %s2504_s12 = smov 0   ;;  %s2506_s13 = smov 0  }
   0x2   :  { %s2508_s14 = smov 0   ;;  %s2510_s15 = smov 0  }
   0x3   :  { %s2512_s16 = smov 0   ;;  %s2514_s17 = smov 0  }
   0x4 LB: > { %s1936_s18 = sadd.s32 4294967295, %s2478_s17   ;;  %s28_s19 = sadd.s32 1, %s2474_s16  ;;  %s2478_s17 = sphi %s2514_s17, %s16_s17   ;;  %s2474_s16 = sphi %s2512_s16, %s3232_s16   ;;  %s2470_s15 = sphi %s2510_s15, %s3231_s15   ;;  %s2466_s14 = sphi %s2508_s14, %s3230_s14   ;;  %s2462_s13 = sphi %s2506_s13, %s3229_s13   ;;  %s2458_s12 = sphi %s2504_s12, %s3228_s12  }
   0x5   : > { %p30_p0 = scmp.ge.s32.totalorder %s28_s19, 2  ;;  %s35_s20 = sadd.s32 1, %s2466_s14 }
   0x6   : > { %p42_p1 = scmp.ne.s32.totalorder %s2466_s14, %s2462_s13  ;;  %p43_p2 = scmp.eq.s32.totalorder %s2478_s17, 0 }
   0x7   : > { %s3234_s19 = smov (%p30_p0, %s28_s19), 0  ;;  %p48_p4 = scmp.ne.s32.totalorder %s2462_s13, %s2458_s12 }
   0x8   : > { %p2540_p3 = por %p43_p2, %p42_p1  ;;  %s32_s22 = ssub.s32 %s2474_s16, %s3234_s19 }
   0x9   : > { %p49_p5 = scmp.eq.s32.totalorder %s1936_s18, 0  ;;  %p33_p6 = scmp.eq.s32.totalorder %s32_s22, 0 }
   0xa   : > { %p2137_p8 = scmp.lt.s32.totalorder %s2478_s17, 2  ;;  %s165_s25 = sand.u32 1, %s2466_s14  }
   0xb   : > { %p2547_p7 = por %p49_p5, %p48_p4  ;;  %s2098_s26 = sshll.u32 %s2474_s16, 14 }
   0xc   : > { %s2553_s24 = scalar_select %p33_p6, %s2466_s14, %s35_s20  }
   0xd   : > { %s1942_s27 = sshll.u32 %s165_s25, 10  ;;  %s2560_s30 = scalar_lea.hbm %s3221_s0, %s2098_s26 }
   0xe   : > { %s169_s4 = scalar_lea.vmem [#allocation2], %s1942_s27  ;;  %p2564_p9 = pnand %p2137_p8, %p2540_p3 }
   0xf   : > { %s177_s5 = sshll.u32 %s169_s4, 4  ;;  %s2570_s7 = scalar_lea.sflag [#allocation3], %s165_s25  ;;  %s2568_s5 = int_to_ptr.vmem [resolvable:$true] %s177_s5 }
  0x10   : > { %s2398_s8 = scalar_lea.hbm %s2560_s30, 16384  ;;  %p2400_p11 = pneg %p2564_p9 }
  0x11   : > { %p2399_p10 = scmp.ne.s32.totalorder %s2560_s30, %s2398_s8  ;;  %s2403_s11 = scalar_lea.hbm %s3221_s0, 32768 }
  0x12   : > { %p2404_p0 = scmp.lt.u32.totalorder %s2560_s30, %s3221_s0  ;;  %p2405_p1 = scmp.lt.u32.totalorder %s2403_s11, %s2398_s8 }
  0x13   : > { %p2401_p12 = pnand %p2400_p11, %p2399_p10  ;;  %p2407_p3 = scmp.lt.u32.totalorder %s2398_s8, %s2560_s30 }
  0x14   : > { %p2406_p2 = por %p2405_p1, %p2404_p0 }
  0x15   : > { %p2402_p13 = pneg %p2401_p12 }
  0x16   : > { %p2408_p4 = por %p2407_p3, %p2406_p2 }
  0x18   : > { %p2409_p5 = pnand %p2408_p4, %p2402_p13 }
  0x1a   : > { %2412 = shalt.err (!%p2409_p5)
}
  0x1b   : > { %s2413_s20 = scalar_lea.vmem %s2568_s5, 16384  ;;  %s2480_s21 = smov [#allocation2]  }
  0x1c   : > { %p2414_p6 = scmp.ne.s32.totalorder %s2568_s5, %s2413_s20  ;;  %s2418_s22 = sshll.u32 %s2480_s21, 4  ;;  %s2419_s22 = int_to_ptr.vmem [resolvable:$false] %s2418_s22 }
  0x1d   : > { %s2420_s25 = scalar_lea.vmem %s2419_s22, 32768  ;;  %p2421_p12 = scmp.lt.s32.totalorder %s2568_s5, %s2419_s22 }
  0x1e   : > { %p2416_p8 = pnand %p2414_p6, %p2400_p11  ;;  %p2422_p0 = scmp.lt.s32.totalorder %s2420_s25, %s2413_s20 }
  0x20   : > { %p2417_p10 = pneg %p2416_p8  ;;  %p2423_p1 = por %p2422_p0, %p2421_p12 }
  0x22   : > { %p2424_p2 = pnand %p2423_p1, %p2417_p10 }
  0x24   : > { %2427 = shalt.err (!%p2424_p2)
}
  0x25   : > { %s2481_s26 = smov 128   ;;  %s2482_s27 = smov 8  }
  0x26   : > { %2136 = dma.hbm_to_vmem [thread:$0]  (!%p2564_p9), %s2560_s30, 16384, %s2568_s5, %s2570_s7, %s2481_s26, %s2481_s26, %s2482_s27  }
  0x27   : > { %p1946_p11 = scmp.ge.s32.totalorder %s2478_s17, 1  ;;  %p185_p13 = scmp.lt.s32.totalorder %s2478_s17, 3 }
  0x29   : > { %p186_p3 = pnand %p1946_p11, %p185_p13 }
  0x2a   : > { %s191_s28 = sand.u32 (!%p186_p3), 1, %s2462_s13  }
  0x2b   : > { %189 = sbr.rel (%p186_p3) target bundleno = 581 (0x245), region = 32  ;;  %s1947_s29 = sshll.u32 (!%p186_p3), %s191_s28, 10 }
  0x2c   : > { %s192_s4 = scalar_lea.sflag (!%p186_p3), [#allocation3], %s191_s28  ;;  %s2601_s8 = scalar_lea.vmem (!%p186_p3), [#allocation2], %s1947_s29 }
  0x32   : > { %2453 = dma.done.wait (%p2547_p7), %s192_s4, 16384  }
  0x33   : > { %2455 = vsyncadd (%p2547_p7), %s192_s4, 4294950912  ;;  %v2483_v0 = vmov 0   ;;  %v2189_v1 = vld [vmem:[%s3222_s1] sm:$0xff]   ;;  %v2190_v2 = vld [vmem:[%s3222_s1 + $0x8] sm:$0xff]   ;;  %s1948_s25 = sshll.u32 %s2470_s15, 7  ;;  %vm1694_vm0 = vcmask 523264  }
  0x34   : > { %1149 = vmatprep.subr.bf16.mxu0 %v2483_v0  ;;  %2099 = vmatprep.subr.bf16.mxu1 %v2483_v0  ;;  %v2191_v3 = vld [vmem:[%s3222_s1 + $0x10] sm:$0xff]   ;;  %v2192_v4 = vld [vmem:[%s3222_s1 + $0x18] sm:$0xff]   ;;  %v2193_v5 = vld [vmem:[%s3222_s1 + $0x20] sm:$0xff]   ;;  %p237_p7 = scmp.lt.s32.totalorder %s1948_s25, 255 }
  0x35   : > { %1150 = vmatpush1.bf16.msra.mxu0 %v2189_v1  ;;  %2115 = vmatpush1.bf16.msra.mxu1 %v2189_v1  ;;  %v2207_v6 = vld [vmem:[%s2601_s8 + $0x4] ss:$8 sps:$4 sm:$0xff]   ;;  %v2195_v9 = vld [vmem:[%s3222_s1 + $0x30] sm:$0xff]   ;;  %v2196_v10 = vld [vmem:[%s3222_s1 + $0x38] sm:$0xff]  }
  0x36   : > { %1151 = vmatprep.subr.bf16.mxu0 %v2483_v0  ;;  %2100 = vmatprep.subr.bf16.mxu1 %v2483_v0  ;;  %v2194_v7 = vld [vmem:[%s3222_s1 + $0x28] sm:$0xff]   ;;  %v2197_v11 = vld [vmem:[%s3222_s1 + $0x40] sm:$0xff]   ;;  %v2199_v13 = vld [vmem:[%s3222_s1 + $0x50] sm:$0xff]   ;;  %s3236_s25 = smov (!%p237_p7, %s1948_s25), 255 }
  0x37   : > { %v2210_v8 = vld [vmem:[%s2601_s8 + $0x204] ss:$8 sps:$4 sm:$0xff]   ;;  %1181 = vmatprep.mubr.bf16.mxu0 %v2207_v6  ;;  %v2200_v14 = vld [vmem:[%s3222_s1 + $0x58] sm:$0xff]   ;;  %v2203_v17 = vld [vmem:[%s3222_s1 + $0x70] sm:$0xff]   ;;  %s1949_s26 = sshll.u32 %s3236_s25, 3 }
  0x38   : > { %1437 = vmatprep.mubr.bf16.mxu1 %v2210_v8  ;;  %v2198_v12 = vld [vmem:[%s3222_s1 + $0x48] sm:$0xff]   ;;  %v2201_v15 = vld [vmem:[%s3222_s1 + $0x60] sm:$0xff]   ;;  %v2204_v18 = vld [vmem:[%s3222_s1 + $0x78] sm:$0xff]   ;;  %s2806_s4 = scalar_lea.vmem %s3224_s3, %s1949_s26 }
  0x39   : > { %1152 = vmatpush1.bf16.msra.mxu0 %v2190_v2  ;;  %2116 = vmatpush1.bf16.msra.mxu1 %v2190_v2  ;;  %v2202_v16 = vld [vmem:[%s3222_s1 + $0x68] sm:$0xff]   ;;  %v2211_v21 = vld [vmem:[%s2601_s8 + $0x14] ss:$8 sps:$4 sm:$0xff]   ;;  %v2215_v23 = vld [vmem:[%s2601_s8 + $0x10] ss:$8 sps:$4 sm:$0xff]  }
  0x3a   : > { %1153 = vmatprep.subr.bf16.mxu0 %v2483_v0  ;;  %2101 = vmatprep.subr.bf16.mxu1 %v2483_v0  ;;  %v2205_v19 = vld [vmem:[%s2601_s8] ss:$8 sps:$4 sm:$0xff]   ;;  %v2213_v22 = vld [vmem:[%s2601_s8 + $0x214] ss:$8 sps:$4 sm:$0xff]   ;;  %v2216_v24 = vld [vmem:[%s2601_s8 + $0x210] ss:$8 sps:$4 sm:$0xff]  }
  0x3b   : > { %v2208_v20 = vld [vmem:[%s2601_s8 + $0x200] ss:$8 sps:$4 sm:$0xff]   ;;  %v2217_v25 = vld [vmem:[%s2601_s8 + $0x24] ss:$8 sps:$4 sm:$0xff]   ;;  %v2223_v29 = vld [vmem:[%s2601_s8 + $0x34] ss:$8 sps:$4 sm:$0xff]  }
  0x3c   : > { %v2219_v26 = vld [vmem:[%s2601_s8 + $0x224] ss:$8 sps:$4 sm:$0xff]   ;;  %v2221_v27 = vld [vmem:[%s2601_s8 + $0x20] ss:$8 sps:$4 sm:$0xff]   ;;  %v2225_v30 = vld [vmem:[%s2601_s8 + $0x234] ss:$8 sps:$4 sm:$0xff]  }
  0x3d   : > { %1154 = vmatpush1.bf16.msra.mxu0 %v2191_v3  ;;  %2117 = vmatpush1.bf16.msra.mxu1 %v2191_v3  ;;  %v2222_v28 = vld [vmem:[%s2601_s8 + $0x220] ss:$8 sps:$4 sm:$0xff]   ;;  %v2227_v31 = vld [vmem:[%s2601_s8 + $0x30] ss:$8 sps:$4 sm:$0xff]   ;;  %v2229_v33 = vld [vmem:[%s2601_s8 + $0x44] ss:$8 sps:$4 sm:$0xff]  }
  0x3e   : > { %1155 = vmatprep.subr.bf16.mxu0 %v2483_v0  ;;  %2102 = vmatprep.subr.bf16.mxu1 %v2483_v0  ;;  %v2228_v32 = vld [vmem:[%s2601_s8 + $0x230] ss:$8 sps:$4 sm:$0xff]   ;;  %v2231_v34 = vld [vmem:[%s2601_s8 + $0x244] ss:$8 sps:$4 sm:$0xff]   ;;  %v2233_v35 = vld [vmem:[%s2601_s8 + $0x40] ss:$8 sps:$4 sm:$0xff]  }
  0x3f   : > { %v2234_v36 = vld [vmem:[%s2601_s8 + $0x240] ss:$8 sps:$4 sm:$0xff]   ;;  %v2235_v37 = vld [vmem:[%s2601_s8 + $0x54] ss:$8 sps:$4 sm:$0xff]   ;;  %v2239_v39 = vld [vmem:[%s2601_s8 + $0x50] ss:$8 sps:$4 sm:$0xff]  }
  0x40   : > { %v2237_v38 = vld [vmem:[%s2601_s8 + $0x254] ss:$8 sps:$4 sm:$0xff]   ;;  %v2240_v40 = vld [vmem:[%s2601_s8 + $0x250] ss:$8 sps:$4 sm:$0xff]   ;;  %v2241_v41 = vld [vmem:[%s2601_s8 + $0x64] ss:$8 sps:$4 sm:$0xff]  }
  0x41   : > { %1156 = vmatpush1.bf16.msra.mxu0 %v2192_v4  ;;  %2118 = vmatpush1.bf16.msra.mxu1 %v2192_v4  ;;  %v2243_v42 = vld [vmem:[%s2601_s8 + $0x264] ss:$8 sps:$4 sm:$0xff]   ;;  %v2245_v43 = vld [vmem:[%s2601_s8 + $0x60] ss:$8 sps:$4 sm:$0xff]   ;;  %v2247_v45 = vld [vmem:[%s2601_s8 + $0x74] ss:$8 sps:$4 sm:$0xff]  }
  0x42   : > { %1157 = vmatprep.subr.bf16.mxu0 %v2483_v0  ;;  %2103 = vmatprep.subr.bf16.mxu1 %v2483_v0  ;;  %v2246_v44 = vld [vmem:[%s2601_s8 + $0x260] ss:$8 sps:$4 sm:$0xff]   ;;  %v2249_v46 = vld [vmem:[%s2601_s8 + $0x274] ss:$8 sps:$4 sm:$0xff]   ;;  %v2251_v47 = vld [vmem:[%s2601_s8 + $0x70] ss:$8 sps:$4 sm:$0xff]  }
  0x43   : > { %v2252_v48 = vld [vmem:[%s2601_s8 + $0x270] ss:$8 sps:$4 sm:$0xff]   ;;  %v2253_v49 = vld [vmem:[%s2601_s8 + $0x84] ss:$8 sps:$4 sm:$0xff]   ;;  %v2257_v51 = vld [vmem:[%s2601_s8 + $0x80] ss:$8 sps:$4 sm:$0xff]  }
  0x44   : > { %v2255_v50 = vld [vmem:[%s2601_s8 + $0x284] ss:$8 sps:$4 sm:$0xff]   ;;  %v2258_v52 = vld [vmem:[%s2601_s8 + $0x280] ss:$8 sps:$4 sm:$0xff]   ;;  %v2259_v53 = vld [vmem:[%s2601_s8 + $0x94] ss:$8 sps:$4 sm:$0xff]  }
  0x45   : > { %1158 = vmatpush1.bf16.msra.mxu0 %v2193_v5  ;;  %2119 = vmatpush1.bf16.msra.mxu1 %v2193_v5  ;;  %v2261_v54 = vld [vmem:[%s2601_s8 + $0x294] ss:$8 sps:$4 sm:$0xff]   ;;  %v2263_v55 = vld [vmem:[%s2601_s8 + $0x90] ss:$8 sps:$4 sm:$0xff]   ;;  %v2265_v57 = vld [vmem:[%s2601_s8 + $0xa4] ss:$8 sps:$4 sm:$0xff]  }
  0x46   : > { %1159 = vmatprep.subr.bf16.mxu0 %v2483_v0  ;;  %2104 = vmatprep.subr.bf16.mxu1 %v2483_v0  ;;  %v2264_v56 = vld [vmem:[%s2601_s8 + $0x290] ss:$8 sps:$4 sm:$0xff]   ;;  %v2267_v58 = vld [vmem:[%s2601_s8 + $0x2a4] ss:$8 sps:$4 sm:$0xff]   ;;  %v2269_v59 = vld [vmem:[%s2601_s8 + $0xa0] ss:$8 sps:$4 sm:$0xff]  }
  0x47   : > { %v2270_v60 = vld [vmem:[%s2601_s8 + $0x2a0] ss:$8 sps:$4 sm:$0xff]   ;;  %v2271_v61 = vld [vmem:[%s2601_s8 + $0xb4] ss:$8 sps:$4 sm:$0xff]   ;;  %v2275_v63 = vld [vmem:[%s2601_s8 + $0xb0] ss:$8 sps:$4 sm:$0xff]  }
  0x48   : > { %v2273_v62 = vld [vmem:[%s2601_s8 + $0x2b4] ss:$8 sps:$4 sm:$0xff]   ;;  %v2277_v1 = vld [vmem:[%s2601_s8 + $0xc4] ss:$8 sps:$4 sm:$0xff]   ;;  %v2281_v3 = vld [vmem:[%s2601_s8 + $0xc0] ss:$8 sps:$4 sm:$0xff]  }
  0x49   : > { %1160 = vmatpush1.bf16.msra.mxu0 %v2194_v7  ;;  %2120 = vmatpush1.bf16.msra.mxu1 %v2194_v7  ;;  %v2279_v2 = vld [vmem:[%s2601_s8 + $0x2c4] ss:$8 sps:$4 sm:$0xff]   ;;  %v2282_v4 = vld [vmem:[%s2601_s8 + $0x2c0] ss:$8 sps:$4 sm:$0xff]   ;;  %v2283_v5 = vld [vmem:[%s2601_s8 + $0xd4] ss:$8 sps:$4 sm:$0xff]  }
  0x4a   : > { %1161 = vmatprep.subr.bf16.mxu0 %v2483_v0  ;;  %2105 = vmatprep.subr.bf16.mxu1 %v2483_v0  ;;  %v2285_v6 = vld [vmem:[%s2601_s8 + $0x2d4] ss:$8 sps:$4 sm:$0xff]   ;;  %v2287_v7 = vld [vmem:[%s2601_s8 + $0xd0] ss:$8 sps:$4 sm:$0xff]  }
  0x4b   : > { %v2288_v8 = vld [vmem:[%s2601_s8 + $0x2d0] ss:$8 sps:$4 sm:$0xff]  }
  0x4d   : > { %1162 = vmatpush1.bf16.msra.mxu0 %v2195_v9  ;;  %2121 = vmatpush1.bf16.msra.mxu1 %v2195_v9  ;;  %v2289_v9 = vld [vmem:[%s2601_s8 + $0xe4] ss:$8 sps:$4 sm:$0xff]  }
  0x4e   : > { %1163 = vmatprep.subr.bf16.mxu0 %v2483_v0  ;;  %2106 = vmatprep.subr.bf16.mxu1 %v2483_v0 }
  0x51   : > { %1164 = vmatpush1.bf16.msra.mxu0 %v2196_v10  ;;  %2122 = vmatpush1.bf16.msra.mxu1 %v2196_v10  ;;  %v2291_v10 = vld [vmem:[%s2601_s8 + $0x2e4] ss:$8 sps:$4 sm:$0xff]  }
  0x52   : > { %1165 = vmatprep.subr.bf16.mxu0 %v2483_v0  ;;  %2107 = vmatprep.subr.bf16.mxu1 %v2483_v0 }
  0x55   : > { %1166 = vmatpush1.bf16.msra.mxu0 %v2197_v11  ;;  %2123 = vmatpush1.bf16.msra.mxu1 %v2197_v11  ;;  %v2293_v11 = vld [vmem:[%s2601_s8 + $0xe0] ss:$8 sps:$4 sm:$0xff]  }
  0x56   : > { %1167 = vmatprep.subr.bf16.mxu0 %v2483_v0  ;;  %2108 = vmatprep.subr.bf16.mxu1 %v2483_v0 }
  0x59   : > { %1168 = vmatpush1.bf16.msra.mxu0 %v2198_v12  ;;  %2124 = vmatpush1.bf16.msra.mxu1 %v2198_v12  ;;  %v2294_v12 = vld [vmem:[%s2601_s8 + $0x2e0] ss:$8 sps:$4 sm:$0xff]  }
  0x5a   : > { %1169 = vmatprep.subr.bf16.mxu0 %v2483_v0  ;;  %2109 = vmatprep.subr.bf16.mxu1 %v2483_v0 }
  0x5d   : > { %1170 = vmatpush1.bf16.msra.mxu0 %v2199_v13  ;;  %2125 = vmatpush1.bf16.msra.mxu1 %v2199_v13  ;;  %v2295_v13 = vld [vmem:[%s2601_s8 + $0xf4] ss:$8 sps:$4 sm:$0xff]  }
  0x5e   : > { %1171 = vmatprep.subr.bf16.mxu0 %v2483_v0  ;;  %2110 = vmatprep.subr.bf16.mxu1 %v2483_v0 }
  0x61   : > { %1172 = vmatpush1.bf16.msra.mxu0 %v2200_v14  ;;  %2126 = vmatpush1.bf16.msra.mxu1 %v2200_v14  ;;  %v2297_v14 = vld [vmem:[%s2601_s8 + $0x2f4] ss:$8 sps:$4 sm:$0xff]  }
  0x62   : > { %1173 = vmatprep.subr.bf16.mxu0 %v2483_v0  ;;  %2111 = vmatprep.subr.bf16.mxu1 %v2483_v0 }
  0x65   : > { %1174 = vmatpush1.bf16.msra.mxu0 %v2201_v15  ;;  %2127 = vmatpush1.bf16.msra.mxu1 %v2201_v15  ;;  %v2299_v15 = vld [vmem:[%s2601_s8 + $0xf0] ss:$8 sps:$4 sm:$0xff]  }
  0x66   : > { %1175 = vmatprep.subr.bf16.mxu0 %v2483_v0  ;;  %2112 = vmatprep.subr.bf16.mxu1 %v2483_v0 }
  0x69   : > { %1176 = vmatpush1.bf16.msra.mxu0 %v2202_v16  ;;  %2128 = vmatpush1.bf16.msra.mxu1 %v2202_v16  ;;  %v2300_v16 = vld [vmem:[%s2601_s8 + $0x2f0] ss:$8 sps:$4 sm:$0xff]  }
  0x6a   : > { %1177 = vmatprep.subr.bf16.mxu0 %v2483_v0  ;;  %2113 = vmatprep.subr.bf16.mxu1 %v2483_v0 }
  0x6d   : > { %1178 = vmatpush1.bf16.msra.mxu0 %v2203_v17  ;;  %2129 = vmatpush1.bf16.msra.mxu1 %v2203_v17  ;;  %v2301_v17 = vld [vmem:[%s2601_s8 + $0x104] ss:$8 sps:$4 sm:$0xff]  }
  0x6e   : > { %1179 = vmatprep.subr.bf16.mxu0 %v2483_v0  ;;  %2114 = vmatprep.subr.bf16.mxu1 %v2483_v0  ;;  %v2276_v0 = vld [vmem:[%s2601_s8 + $0x2b0] ss:$8 sps:$4 sm:$0xff]  }
  0x71   : > { %1180 = vmatpush1.bf16.msra.mxu0 %v2204_v18  ;;  %2130 = vmatpush1.bf16.msra.mxu1 %v2204_v18  ;;  %v2303_v18 = vld [vmem:[%s2601_s8 + $0x304] ss:$8 sps:$4 sm:$0xff]  }
  0x74   : > { %1182 = vmatmul.mubr.bf16.vlgmr.msra.gmra.mrb[0].mxu0 %v2205_v19  ;;  %1438 = vmatmul.mubr.bf16.vlgmr.msra.gmra.mrb[0].mxu1 %v2208_v20  ;;  %v2305_v19 = vld [vmem:[%s2601_s8 + $0x100] ss:$8 sps:$4 sm:$0xff]  }
  0x75   : > { %1189 = vmatprep.mubr.bf16.mxu0 %v2211_v21  ;;  %1445 = vmatprep.mubr.bf16.mxu1 %v2213_v22  ;;  %v2306_v20 = vld [vmem:[%s2601_s8 + $0x300] ss:$8 sps:$4 sm:$0xff]   ;;  %v2307_v21 = vld [vmem:[%s2601_s8 + $0x114] ss:$8 sps:$4 sm:$0xff]  }
  0x76   : > { %v2309_v22 = vld [vmem:[%s2601_s8 + $0x314] ss:$8 sps:$4 sm:$0xff]  }
  0x7c   : > { %1190 = vmatmul.mubr.bf16.gmra.mrb[4].mxu0 %v2215_v23  ;;  %1446 = vmatmul.mubr.bf16.gmra.mrb[4].mxu1 %v2216_v24  ;;  %v2311_v23 = vld [vmem:[%s2601_s8 + $0x110] ss:$8 sps:$4 sm:$0xff]  }
  0x7d   : > { %1197 = vmatprep.mubr.bf16.mxu0 %v2217_v25  ;;  %1453 = vmatprep.mubr.bf16.mxu1 %v2219_v26  ;;  %v2312_v24 = vld [vmem:[%s2601_s8 + $0x310] ss:$8 sps:$4 sm:$0xff]   ;;  %v2313_v25 = vld [vmem:[%s2601_s8 + $0x124] ss:$8 sps:$4 sm:$0xff]  }
  0x7e   : > { %v2315_v26 = vld [vmem:[%s2601_s8 + $0x324] ss:$8 sps:$4 sm:$0xff]  }
  0x84   : > { %1198 = vmatmul.mubr.bf16.gmra.mrb[8].mxu0 %v2221_v27  ;;  %1454 = vmatmul.mubr.bf16.gmra.mrb[8].mxu1 %v2222_v28  ;;  %v2317_v27 = vld [vmem:[%s2601_s8 + $0x120] ss:$8 sps:$4 sm:$0xff]  }
  0x85   : > { %1205 = vmatprep.mubr.bf16.mxu0 %v2223_v29  ;;  %1461 = vmatprep.mubr.bf16.mxu1 %v2225_v30  ;;  %v2318_v28 = vld [vmem:[%s2601_s8 + $0x320] ss:$8 sps:$4 sm:$0xff]   ;;  %v2319_v29 = vld [vmem:[%s2601_s8 + $0x134] ss:$8 sps:$4 sm:$0xff]  }
  0x86   : > { %v2321_v30 = vld [vmem:[%s2601_s8 + $0x334] ss:$8 sps:$4 sm:$0xff]  }
  0x8c   : > { %1206 = vmatmul.mubr.bf16.gmra.mrb[12].mxu0 %v2227_v31  ;;  %1462 = vmatmul.mubr.bf16.gmra.mrb[12].mxu1 %v2228_v32  ;;  %v2323_v31 = vld [vmem:[%s2601_s8 + $0x130] ss:$8 sps:$4 sm:$0xff]  }
  0x8d   : > { %1213 = vmatprep.mubr.bf16.mxu0 %v2229_v33  ;;  %1469 = vmatprep.mubr.bf16.mxu1 %v2231_v34  ;;  %v2324_v32 = vld [vmem:[%s2601_s8 + $0x330] ss:$8 sps:$4 sm:$0xff]   ;;  %v2325_v33 = vld [vmem:[%s2601_s8 + $0x144] ss:$8 sps:$4 sm:$0xff]  }
  0x8e   : > { %v2327_v34 = vld [vmem:[%s2601_s8 + $0x344] ss:$8 sps:$4 sm:$0xff]  }
  0x94   : > { %1214 = vmatmul.mubr.bf16.gmra.mrb[16].mxu0 %v2233_v35  ;;  %1470 = vmatmul.mubr.bf16.gmra.mrb[16].mxu1 %v2234_v36  ;;  %v2329_v35 = vld [vmem:[%s2601_s8 + $0x140] ss:$8 sps:$4 sm:$0xff]  }
  0x95   : > { %1221 = vmatprep.mubr.bf16.mxu0 %v2235_v37  ;;  %1477 = vmatprep.mubr.bf16.mxu1 %v2237_v38  ;;  %v2330_v36 = vld [vmem:[%s2601_s8 + $0x340] ss:$8 sps:$4 sm:$0xff]   ;;  %v2331_v37 = vld [vmem:[%s2601_s8 + $0x154] ss:$8 sps:$4 sm:$0xff]  }
  0x96   : > { %v2333_v38 = vld [vmem:[%s2601_s8 + $0x354] ss:$8 sps:$4 sm:$0xff]  }
  0x9c   : > { %1222 = vmatmul.mubr.bf16.gmra.mrb[20].mxu0 %v2239_v39  ;;  %1478 = vmatmul.mubr.bf16.gmra.mrb[20].mxu1 %v2240_v40  ;;  %v2335_v39 = vld [vmem:[%s2601_s8 + $0x150] ss:$8 sps:$4 sm:$0xff]  }
  0x9d   : > { %1229 = vmatprep.mubr.bf16.mxu0 %v2241_v41  ;;  %1485 = vmatprep.mubr.bf16.mxu1 %v2243_v42  ;;  %v2336_v40 = vld [vmem:[%s2601_s8 + $0x350] ss:$8 sps:$4 sm:$0xff]   ;;  %v2337_v41 = vld [vmem:[%s2601_s8 + $0x164] ss:$8 sps:$4 sm:$0xff]  }
  0x9e   : > { %v2339_v42 = vld [vmem:[%s2601_s8 + $0x364] ss:$8 sps:$4 sm:$0xff]  }
  0xa4   : > { %1230 = vmatmul.mubr.bf16.gmra.mrb[24].mxu0 %v2245_v43  ;;  %1486 = vmatmul.mubr.bf16.gmra.mrb[24].mxu1 %v2246_v44  ;;  %v2341_v43 = vld [vmem:[%s2601_s8 + $0x160] ss:$8 sps:$4 sm:$0xff]  }
  0xa5   : > { %1237 = vmatprep.mubr.bf16.mxu0 %v2247_v45  ;;  %1493 = vmatprep.mubr.bf16.mxu1 %v2249_v46  ;;  %v2342_v44 = vld [vmem:[%s2601_s8 + $0x360] ss:$8 sps:$4 sm:$0xff]   ;;  %v2343_v45 = vld [vmem:[%s2601_s8 + $0x174] ss:$8 sps:$4 sm:$0xff]  }
  0xa6   : > { %v2345_v46 = vld [vmem:[%s2601_s8 + $0x374] ss:$8 sps:$4 sm:$0xff]  }
  0xac   : > { %1238 = vmatmul.mubr.bf16.gmra.mrb[28].mxu0 %v2251_v47  ;;  %1494 = vmatmul.mubr.bf16.gmra.mrb[28].mxu1 %v2252_v48  ;;  %v2347_v47 = vld [vmem:[%s2601_s8 + $0x170] ss:$8 sps:$4 sm:$0xff]  }
  0xad   : > { %1245 = vmatprep.mubr.bf16.mxu0 %v2253_v49  ;;  %1501 = vmatprep.mubr.bf16.mxu1 %v2255_v50  ;;  %v2348_v48 = vld [vmem:[%s2601_s8 + $0x370] ss:$8 sps:$4 sm:$0xff]   ;;  %v2349_v49 = vld [vmem:[%s2601_s8 + $0x184] ss:$8 sps:$4 sm:$0xff]  }
  0xae   : > { %v2351_v50 = vld [vmem:[%s2601_s8 + $0x384] ss:$8 sps:$4 sm:$0xff]  }
  0xb4   : > { %1246 = vmatmul.mubr.bf16.gmra.mrb[32].mxu0 %v2257_v51  ;;  %1502 = vmatmul.mubr.bf16.gmra.mrb[32].mxu1 %v2258_v52  ;;  %v2353_v51 = vld [vmem:[%s2601_s8 + $0x180] ss:$8 sps:$4 sm:$0xff]  }
  0xb5   : > { %1253 = vmatprep.mubr.bf16.mxu0 %v2259_v53  ;;  %1509 = vmatprep.mubr.bf16.mxu1 %v2261_v54  ;;  %v2354_v52 = vld [vmem:[%s2601_s8 + $0x380] ss:$8 sps:$4 sm:$0xff]   ;;  %v2355_v53 = vld [vmem:[%s2601_s8 + $0x194] ss:$8 sps:$4 sm:$0xff]  }
  0xb6   : > { %v2357_v54 = vld [vmem:[%s2601_s8 + $0x394] ss:$8 sps:$4 sm:$0xff]  }
  0xbc   : > { %1254 = vmatmul.mubr.bf16.gmra.mrb[36].mxu0 %v2263_v55  ;;  %1510 = vmatmul.mubr.bf16.gmra.mrb[36].mxu1 %v2264_v56  ;;  %v2359_v55 = vld [vmem:[%s2601_s8 + $0x190] ss:$8 sps:$4 sm:$0xff]  }
  0xbd   : > { %1261 = vmatprep.mubr.bf16.mxu0 %v2265_v57  ;;  %1517 = vmatprep.mubr.bf16.mxu1 %v2267_v58  ;;  %v2360_v56 = vld [vmem:[%s2601_s8 + $0x390] ss:$8 sps:$4 sm:$0xff]   ;;  %v2361_v57 = vld [vmem:[%s2601_s8 + $0x1a4] ss:$8 sps:$4 sm:$0xff]  }
  0xbe   : > { %v2363_v58 = vld [vmem:[%s2601_s8 + $0x3a4] ss:$8 sps:$4 sm:$0xff]  }
  0xc4   : > { %1262 = vmatmul.mubr.bf16.gmra.mrb[40].mxu0 %v2269_v59  ;;  %1518 = vmatmul.mubr.bf16.gmra.mrb[40].mxu1 %v2270_v60  ;;  %v2365_v59 = vld [vmem:[%s2601_s8 + $0x1a0] ss:$8 sps:$4 sm:$0xff]  }
  0xc5   : > { %1269 = vmatprep.mubr.bf16.mxu0 %v2271_v61  ;;  %1525 = vmatprep.mubr.bf16.mxu1 %v2273_v62  ;;  %v2366_v60 = vld [vmem:[%s2601_s8 + $0x3a0] ss:$8 sps:$4 sm:$0xff]   ;;  %v2367_v61 = vld [vmem:[%s2601_s8 + $0x1b4] ss:$8 sps:$4 sm:$0xff]  }
  0xc6   : > { %v2369_v62 = vld [vmem:[%s2601_s8 + $0x3b4] ss:$8 sps:$4 sm:$0xff]  }
  0xcc   : > { %1270 = vmatmul.mubr.bf16.gmra.mrb[44].mxu0 %v2275_v63  ;;  %1526 = vmatmul.mubr.bf16.gmra.mrb[44].mxu1 %v2276_v0  ;;  %v2801_v63 = vld [vmem:[%s3223_s2] ss:$0 sm:$0xff] }
  0xcd   : > { %1277 = vmatprep.mubr.bf16.mxu0 %v2277_v1  ;;  %1533 = vmatprep.mubr.bf16.mxu1 %v2279_v2 }
  0xd4   : > { %1278 = vmatmul.mubr.bf16.gmra.mrb[48].mxu0 %v2281_v3  ;;  %1534 = vmatmul.mubr.bf16.gmra.mrb[48].mxu1 %v2282_v4 }
  0xd5   : > { %1285 = vmatprep.mubr.bf16.mxu0 %v2283_v5  ;;  %1541 = vmatprep.mubr.bf16.mxu1 %v2285_v6  ;;  %v2371_v6 = vld [vmem:[%s2601_s8 + $0x1b0] ss:$8 sps:$4 sm:$0xff]  }
  0xdc   : > { %1286 = vmatmul.mubr.bf16.gmra.mrb[52].mxu0 %v2287_v7  ;;  %1542 = vmatmul.mubr.bf16.gmra.mrb[52].mxu1 %v2288_v8  ;;  %v2372_v7 = vld [vmem:[%s2601_s8 + $0x3b0] ss:$8 sps:$4 sm:$0xff]  }
  0xdd   : > { %1293 = vmatprep.mubr.bf16.mxu0 %v2289_v9  ;;  %1549 = vmatprep.mubr.bf16.mxu1 %v2291_v10  ;;  %v2373_v10 = vld [vmem:[%s2601_s8 + $0x1c4] ss:$8 sps:$4 sm:$0xff]  }
  0xe4   : > { %1294 = vmatmul.mubr.bf16.gmra.mrb[56].mxu0 %v2293_v11  ;;  %1550 = vmatmul.mubr.bf16.gmra.mrb[56].mxu1 %v2294_v12  ;;  %v2375_v11 = vld [vmem:[%s2601_s8 + $0x3c4] ss:$8 sps:$4 sm:$0xff]  }
  0xe5   : > { %1301 = vmatprep.mubr.bf16.mxu0 %v2295_v13  ;;  %1557 = vmatprep.mubr.bf16.mxu1 %v2297_v14 }
  0xec   : > { %1302 = vmatmul.mubr.bf16.gmra.mrb[60].mxu0 %v2299_v15  ;;  %1558 = vmatmul.mubr.bf16.gmra.mrb[60].mxu1 %v2300_v16 }
  0xed   : > { %1309 = vmatprep.mubr.bf16.mxu0 %v2301_v17  ;;  %1565 = vmatprep.mubr.bf16.mxu1 %v2303_v18 }
  0xf4   : > { %1310 = vmatmul.mubr.bf16.gmra.mrb[64].mxu0 %v2305_v19  ;;  %1566 = vmatmul.mubr.bf16.gmra.mrb[64].mxu1 %v2306_v20 }
  0xf5   : > { %1317 = vmatprep.mubr.bf16.mxu0 %v2307_v21  ;;  %1573 = vmatprep.mubr.bf16.mxu1 %v2309_v22  ;;  %v2377_v22 = vld [vmem:[%s2601_s8 + $0x1c0] ss:$8 sps:$4 sm:$0xff]  }
  0xfc   : > { %1318 = vmatmul.mubr.bf16.gmra.mrb[68].mxu0 %v2311_v23  ;;  %1574 = vmatmul.mubr.bf16.gmra.mrb[68].mxu1 %v2312_v24  ;;  %v2378_v23 = vld [vmem:[%s2601_s8 + $0x3c0] ss:$8 sps:$4 sm:$0xff]  }
  0xfd   : > { %1325 = vmatprep.mubr.bf16.mxu0 %v2313_v25  ;;  %1581 = vmatprep.mubr.bf16.mxu1 %v2315_v26  ;;  %v2379_v26 = vld [vmem:[%s2601_s8 + $0x1d4] ss:$8 sps:$4 sm:$0xff]  }
 0x104   : > { %1326 = vmatmul.mubr.bf16.gmra.mrb[72].mxu0 %v2317_v27  ;;  %1582 = vmatmul.mubr.bf16.gmra.mrb[72].mxu1 %v2318_v28  ;;  %v2381_v27 = vld [vmem:[%s2601_s8 + $0x3d4] ss:$8 sps:$4 sm:$0xff]  }
 0x105   : > { %1333 = vmatprep.mubr.bf16.mxu0 %v2319_v29  ;;  %1589 = vmatprep.mubr.bf16.mxu1 %v2321_v30 }
 0x10c   : > { %1334 = vmatmul.mubr.bf16.gmra.mrb[76].mxu0 %v2323_v31  ;;  %1590 = vmatmul.mubr.bf16.gmra.mrb[76].mxu1 %v2324_v32 }
 0x10d   : > { %1341 = vmatprep.mubr.bf16.mxu0 %v2325_v33  ;;  %1597 = vmatprep.mubr.bf16.mxu1 %v2327_v34 }
 0x114   : > { %1342 = vmatmul.mubr.bf16.gmra.mrb[80].mxu0 %v2329_v35  ;;  %1598 = vmatmul.mubr.bf16.gmra.mrb[80].mxu1 %v2330_v36 }
 0x115   : > { %1349 = vmatprep.mubr.bf16.mxu0 %v2331_v37  ;;  %1605 = vmatprep.mubr.bf16.mxu1 %v2333_v38  ;;  %v2383_v38 = vld [vmem:[%s2601_s8 + $0x1d0] ss:$8 sps:$4 sm:$0xff]  }
 0x11c   : > { %1350 = vmatmul.mubr.bf16.gmra.mrb[84].mxu0 %v2335_v39  ;;  %1606 = vmatmul.mubr.bf16.gmra.mrb[84].mxu1 %v2336_v40  ;;  %v2384_v39 = vld [vmem:[%s2601_s8 + $0x3d0] ss:$8 sps:$4 sm:$0xff]  }
 0x11d   : > { %1357 = vmatprep.mubr.bf16.mxu0 %v2337_v41  ;;  %1613 = vmatprep.mubr.bf16.mxu1 %v2339_v42  ;;  %v2385_v42 = vld [vmem:[%s2601_s8 + $0x1e4] ss:$8 sps:$4 sm:$0xff]  }
 0x124   : > { %1358 = vmatmul.mubr.bf16.gmra.mrb[88].mxu0 %v2341_v43  ;;  %1614 = vmatmul.mubr.bf16.gmra.mrb[88].mxu1 %v2342_v44  ;;  %v2387_v43 = vld [vmem:[%s2601_s8 + $0x3e4] ss:$8 sps:$4 sm:$0xff]  }
 0x125   : > { %1365 = vmatprep.mubr.bf16.mxu0 %v2343_v45  ;;  %1621 = vmatprep.mubr.bf16.mxu1 %v2345_v46 }
 0x12c   : > { %1366 = vmatmul.mubr.bf16.gmra.mrb[92].mxu0 %v2347_v47  ;;  %1622 = vmatmul.mubr.bf16.gmra.mrb[92].mxu1 %v2348_v48 }
 0x12d   : > { %1373 = vmatprep.mubr.bf16.mxu0 %v2349_v49  ;;  %1629 = vmatprep.mubr.bf16.mxu1 %v2351_v50 }
 0x134   : > { %1374 = vmatmul.mubr.bf16.gmra.mrb[96].mxu0 %v2353_v51  ;;  %1630 = vmatmul.mubr.bf16.gmra.mrb[96].mxu1 %v2354_v52 }
 0x135   : > { %1381 = vmatprep.mubr.bf16.mxu0 %v2355_v53  ;;  %1637 = vmatprep.mubr.bf16.mxu1 %v2357_v54  ;;  %v2389_v54 = vld [vmem:[%s2601_s8 + $0x1e0] ss:$8 sps:$4 sm:$0xff]  }
 0x13c   : > { %1382 = vmatmul.mubr.bf16.gmra.mrb[100].mxu0 %v2359_v55  ;;  %1638 = vmatmul.mubr.bf16.gmra.mrb[100].mxu1 %v2360_v56  ;;  %v2390_v55 = vld [vmem:[%s2601_s8 + $0x3e0] ss:$8 sps:$4 sm:$0xff]  }
 0x13d   : > { %1389 = vmatprep.mubr.bf16.mxu0 %v2361_v57  ;;  %1645 = vmatprep.mubr.bf16.mxu1 %v2363_v58  ;;  %v2391_v58 = vld [vmem:[%s2601_s8 + $0x1f4] ss:$8 sps:$4 sm:$0xff]  }
 0x144   : > { %1390 = vmatmul.mubr.bf16.gmra.mrb[104].mxu0 %v2365_v59  ;;  %1646 = vmatmul.mubr.bf16.gmra.mrb[104].mxu1 %v2366_v60  ;;  %v2393_v59 = vld [vmem:[%s2601_s8 + $0x3f4] ss:$8 sps:$4 sm:$0xff]  }
 0x145   : > { %1397 = vmatprep.mubr.bf16.mxu0 %v2367_v61  ;;  %1653 = vmatprep.mubr.bf16.mxu1 %v2369_v62 }
 0x147   : > { %v1183_v0 = vpop.f32.mrb[0].mxu0  ;;  %v1439_v1 = vpop.f32.mrb[0].mxu1 }
 0x148   : > { %v1184_v2 = vadd.f32 %v2801_v63, %v1183_v0  ;;  %v1440_v3 = vadd.f32 %v2801_v63, %v1439_v1  ;;  %v1185_v4 = vpop.f32.mrb[1].mxu0  ;;  %v1441_v5 = vpop.f32.mrb[1].mxu1 }
 0x149   : > { %v1186_v8 = vpop.f32.mrb[2].mxu0  ;;  %v1442_v9 = vpop.f32.mrb[2].mxu1 }
 0x14a   : > { %1695 = vst.msk [vmem:[%s2806_s4] sm:$0xff] %vm1694_vm0, %v1184_v2  ;;  %1759 = vst.msk [vmem:[%s2806_s4 + $0x200] sm:$0xff] %vm1694_vm0, %v1440_v3  ;;  %v1187_v12 = vadd.f32 %v2801_v63, %v1186_v8  ;;  %v1443_v13 = vadd.f32 %v2801_v63, %v1442_v9  ;;  %v1188_v14 = vpop.f32.mrb[3].mxu0  ;;  %v1444_v15 = vpop.f32.mrb[3].mxu1  ;;  %v2396_v8 = vld [vmem:[%s2601_s8 + $0x3f0] ss:$8 sps:$4 sm:$0xff]  }
 0x14c   : > { %1696 = vst.msk [vmem:[%s2806_s4 + $0x8] sm:$0xff] %vm1694_vm0, %v1187_v12  ;;  %1760 = vst.msk [vmem:[%s2806_s4 + $0x208] sm:$0xff] %vm1694_vm0, %v1443_v13  ;;  %1398 = vmatmul.mubr.bf16.gmra.mrb[108].mxu0 %v2371_v6  ;;  %1654 = vmatmul.mubr.bf16.gmra.mrb[108].mxu1 %v2372_v7  ;;  %v2395_v7 = vld [vmem:[%s2601_s8 + $0x1f0] ss:$8 sps:$4 sm:$0xff]  }
 0x14d   : > { %1405 = vmatprep.mubr.bf16.mxu0 %v2373_v10  ;;  %1661 = vmatprep.mubr.bf16.mxu1 %v2375_v11 }
 0x14f   : > { %v1191_v16 = vpop.f32.mrb[4].mxu0  ;;  %v1447_v17 = vpop.f32.mrb[4].mxu1 }
 0x150   : > { %v1192_v18 = vadd.f32 %v2801_v63, %v1191_v16  ;;  %v1448_v19 = vadd.f32 %v2801_v63, %v1447_v17  ;;  %v1193_v20 = vpop.f32.mrb[5].mxu0  ;;  %v1449_v21 = vpop.f32.mrb[5].mxu1 }
 0x151   : > { %v1194_v24 = vpop.f32.mrb[6].mxu0  ;;  %v1450_v25 = vpop.f32.mrb[6].mxu1 }
 0x152   : > { %1697 = vst.msk [vmem:[%s2806_s4 + $0x10] sm:$0xff] %vm1694_vm0, %v1192_v18  ;;  %1761 = vst.msk [vmem:[%s2806_s4 + $0x210] sm:$0xff] %vm1694_vm0, %v1448_v19  ;;  %v1195_v28 = vadd.f32 %v2801_v63, %v1194_v24  ;;  %v1451_v29 = vadd.f32 %v2801_v63, %v1450_v25  ;;  %v1196_v30 = vpop.f32.mrb[7].mxu0  ;;  %v1452_v31 = vpop.f32.mrb[7].mxu1 }
 0x154   : > { %1698 = vst.msk [vmem:[%s2806_s4 + $0x18] sm:$0xff] %vm1694_vm0, %v1195_v28  ;;  %1762 = vst.msk [vmem:[%s2806_s4 + $0x218] sm:$0xff] %vm1694_vm0, %v1451_v29  ;;  %1406 = vmatmul.mubr.bf16.gmra.mrb[112].mxu0 %v2377_v22  ;;  %1662 = vmatmul.mubr.bf16.gmra.mrb[112].mxu1 %v2378_v23 }
 0x155   : > { %1413 = vmatprep.mubr.bf16.mxu0 %v2379_v26  ;;  %1669 = vmatprep.mubr.bf16.mxu1 %v2381_v27 }
 0x157   : > { %v1199_v32 = vpop.f32.mrb[8].mxu0  ;;  %v1455_v33 = vpop.f32.mrb[8].mxu1 }
 0x158   : > { %v1200_v34 = vadd.f32 %v2801_v63, %v1199_v32  ;;  %v1456_v35 = vadd.f32 %v2801_v63, %v1455_v33  ;;  %v1201_v36 = vpop.f32.mrb[9].mxu0  ;;  %v1457_v37 = vpop.f32.mrb[9].mxu1 }
 0x159   : > { %v1202_v40 = vpop.f32.mrb[10].mxu0  ;;  %v1458_v41 = vpop.f32.mrb[10].mxu1 }
 0x15a   : > { %1699 = vst.msk [vmem:[%s2806_s4 + $0x20] sm:$0xff] %vm1694_vm0, %v1200_v34  ;;  %1763 = vst.msk [vmem:[%s2806_s4 + $0x220] sm:$0xff] %vm1694_vm0, %v1456_v35  ;;  %v1203_v44 = vadd.f32 %v2801_v63, %v1202_v40  ;;  %v1459_v45 = vadd.f32 %v2801_v63, %v1458_v41  ;;  %v1204_v46 = vpop.f32.mrb[11].mxu0  ;;  %v1460_v47 = vpop.f32.mrb[11].mxu1 }
 0x15c   : > { %1700 = vst.msk [vmem:[%s2806_s4 + $0x28] sm:$0xff] %vm1694_vm0, %v1203_v44  ;;  %1764 = vst.msk [vmem:[%s2806_s4 + $0x228] sm:$0xff] %vm1694_vm0, %v1459_v45  ;;  %1414 = vmatmul.mubr.bf16.gmra.mrb[116].mxu0 %v2383_v38  ;;  %1670 = vmatmul.mubr.bf16.gmra.mrb[116].mxu1 %v2384_v39 }
 0x15d   : > { %1421 = vmatprep.mubr.bf16.mxu0 %v2385_v42  ;;  %1677 = vmatprep.mubr.bf16.mxu1 %v2387_v43 }
 0x15f   : > { %v1207_v48 = vpop.f32.mrb[12].mxu0  ;;  %v1463_v49 = vpop.f32.mrb[12].mxu1 }
 0x160   : > { %v1208_v50 = vadd.f32 %v2801_v63, %v1207_v48  ;;  %v1464_v51 = vadd.f32 %v2801_v63, %v1463_v49  ;;  %v1209_v52 = vpop.f32.mrb[13].mxu0  ;;  %v1465_v53 = vpop.f32.mrb[13].mxu1 }
 0x161   : > { %v1210_v56 = vpop.f32.mrb[14].mxu0  ;;  %v1466_v57 = vpop.f32.mrb[14].mxu1 }
 0x162   : > { %1701 = vst.msk [vmem:[%s2806_s4 + $0x30] sm:$0xff] %vm1694_vm0, %v1208_v50  ;;  %1765 = vst.msk [vmem:[%s2806_s4 + $0x230] sm:$0xff] %vm1694_vm0, %v1464_v51  ;;  %v1211_v60 = vadd.f32 %v2801_v63, %v1210_v56  ;;  %v1467_v61 = vadd.f32 %v2801_v63, %v1466_v57  ;;  %v1212_v62 = vpop.f32.mrb[15].mxu0  ;;  %v1468_v0 = vpop.f32.mrb[15].mxu1 }
 0x164   : > { %1702 = vst.msk [vmem:[%s2806_s4 + $0x38] sm:$0xff] %vm1694_vm0, %v1211_v60  ;;  %1766 = vst.msk [vmem:[%s2806_s4 + $0x238] sm:$0xff] %vm1694_vm0, %v1467_v61  ;;  %1422 = vmatmul.mubr.bf16.gmra.mrb[120].mxu0 %v2389_v54  ;;  %1678 = vmatmul.mubr.bf16.gmra.mrb[120].mxu1 %v2390_v55 }
 0x165   : > { %1429 = vmatprep.mubr.bf16.mxu0 %v2391_v58  ;;  %1685 = vmatprep.mubr.bf16.mxu1 %v2393_v59 }
 0x167   : > { %v1215_v1 = vpop.f32.mrb[16].mxu0  ;;  %v1471_v2 = vpop.f32.mrb[16].mxu1 }
 0x168   : > { %v1216_v3 = vadd.f32 %v2801_v63, %v1215_v1  ;;  %v1472_v4 = vadd.f32 %v2801_v63, %v1471_v2  ;;  %v1217_v5 = vpop.f32.mrb[17].mxu0  ;;  %v1473_v6 = vpop.f32.mrb[17].mxu1 }
 0x169   : > { %v1218_v9 = vpop.f32.mrb[18].mxu0  ;;  %v1474_v10 = vpop.f32.mrb[18].mxu1 }
 0x16a   : > { %1703 = vst.msk [vmem:[%s2806_s4 + $0x40] sm:$0xff] %vm1694_vm0, %v1216_v3  ;;  %1767 = vst.msk [vmem:[%s2806_s4 + $0x240] sm:$0xff] %vm1694_vm0, %v1472_v4  ;;  %v1219_v11 = vadd.f32 %v2801_v63, %v1218_v9  ;;  %v1475_v12 = vadd.f32 %v2801_v63, %v1474_v10  ;;  %v1220_v13 = vpop.f32.mrb[19].mxu0  ;;  %v1476_v14 = vpop.f32.mrb[19].mxu1 }
 0x16c   : > { %1704 = vst.msk [vmem:[%s2806_s4 + $0x48] sm:$0xff] %vm1694_vm0, %v1219_v11  ;;  %1768 = vst.msk [vmem:[%s2806_s4 + $0x248] sm:$0xff] %vm1694_vm0, %v1475_v12  ;;  %1430 = vmatmul.mubr.bf16.gmra.mrb[124].mxu0 %v2395_v7  ;;  %1686 = vmatmul.mubr.bf16.gmra.mrb[124].mxu1 %v2396_v8 }
 0x16f   : > { %v1223_v15 = vpop.f32.mrb[20].mxu0  ;;  %v1479_v16 = vpop.f32.mrb[20].mxu1 }
 0x170   : > { %v1224_v17 = vadd.f32 %v2801_v63, %v1223_v15  ;;  %v1480_v18 = vadd.f32 %v2801_v63, %v1479_v16  ;;  %v1225_v19 = vpop.f32.mrb[21].mxu0  ;;  %v1481_v20 = vpop.f32.mrb[21].mxu1 }
 0x171   : > { %v1226_v21 = vpop.f32.mrb[22].mxu0  ;;  %v1482_v22 = vpop.f32.mrb[22].mxu1 }
 0x172   : > { %1705 = vst.msk [vmem:[%s2806_s4 + $0x50] sm:$0xff] %vm1694_vm0, %v1224_v17  ;;  %1769 = vst.msk [vmem:[%s2806_s4 + $0x250] sm:$0xff] %vm1694_vm0, %v1480_v18  ;;  %v1227_v23 = vadd.f32 %v2801_v63, %v1226_v21  ;;  %v1483_v24 = vadd.f32 %v2801_v63, %v1482_v22  ;;  %v1228_v25 = vpop.f32.mrb[23].mxu0  ;;  %v1484_v26 = vpop.f32.mrb[23].mxu1 }
 0x174   : > { %1706 = vst.msk [vmem:[%s2806_s4 + $0x58] sm:$0xff] %vm1694_vm0, %v1227_v23  ;;  %1770 = vst.msk [vmem:[%s2806_s4 + $0x258] sm:$0xff] %vm1694_vm0, %v1483_v24 }
 0x177   : > { %v1231_v27 = vpop.f32.mrb[24].mxu0  ;;  %v1487_v28 = vpop.f32.mrb[24].mxu1 }
 0x178   : > { %v1232_v29 = vadd.f32 %v2801_v63, %v1231_v27  ;;  %v1488_v30 = vadd.f32 %v2801_v63, %v1487_v28  ;;  %v1233_v31 = vpop.f32.mrb[25].mxu0  ;;  %v1489_v32 = vpop.f32.mrb[25].mxu1 }
 0x179   : > { %v1234_v33 = vpop.f32.mrb[26].mxu0  ;;  %v1490_v34 = vpop.f32.mrb[26].mxu1 }
 0x17a   : > { %1707 = vst.msk [vmem:[%s2806_s4 + $0x60] sm:$0xff] %vm1694_vm0, %v1232_v29  ;;  %1771 = vst.msk [vmem:[%s2806_s4 + $0x260] sm:$0xff] %vm1694_vm0, %v1488_v30  ;;  %v1235_v35 = vadd.f32 %v2801_v63, %v1234_v33  ;;  %v1491_v36 = vadd.f32 %v2801_v63, %v1490_v34  ;;  %v1236_v37 = vpop.f32.mrb[27].mxu0  ;;  %v1492_v38 = vpop.f32.mrb[27].mxu1 }
 0x17c   : > { %1708 = vst.msk [vmem:[%s2806_s4 + $0x68] sm:$0xff] %vm1694_vm0, %v1235_v35  ;;  %1772 = vst.msk [vmem:[%s2806_s4 + $0x268] sm:$0xff] %vm1694_vm0, %v1491_v36 }
 0x17f   : > { %v1239_v39 = vpop.f32.mrb[28].mxu0  ;;  %v1495_v40 = vpop.f32.mrb[28].mxu1 }
 0x180   : > { %v1240_v41 = vadd.f32 %v2801_v63, %v1239_v39  ;;  %v1496_v42 = vadd.f32 %v2801_v63, %v1495_v40  ;;  %v1241_v43 = vpop.f32.mrb[29].mxu0  ;;  %v1497_v44 = vpop.f32.mrb[29].mxu1 }
 0x181   : > { %v1242_v45 = vpop.f32.mrb[30].mxu0  ;;  %v1498_v46 = vpop.f32.mrb[30].mxu1 }
 0x182   : > { %1709 = vst.msk [vmem:[%s2806_s4 + $0x70] sm:$0xff] %vm1694_vm0, %v1240_v41  ;;  %1773 = vst.msk [vmem:[%s2806_s4 + $0x270] sm:$0xff] %vm1694_vm0, %v1496_v42  ;;  %v1243_v47 = vadd.f32 %v2801_v63, %v1242_v45  ;;  %v1499_v48 = vadd.f32 %v2801_v63, %v1498_v46  ;;  %v1244_v49 = vpop.f32.mrb[31].mxu0  ;;  %v1500_v50 = vpop.f32.mrb[31].mxu1 }
 0x184   : > { %1710 = vst.msk [vmem:[%s2806_s4 + $0x78] sm:$0xff] %vm1694_vm0, %v1243_v47  ;;  %1774 = vst.msk [vmem:[%s2806_s4 + $0x278] sm:$0xff] %vm1694_vm0, %v1499_v48 }
 0x187   : > { %v1247_v51 = vpop.f32.mrb[32].mxu0  ;;  %v1503_v52 = vpop.f32.mrb[32].mxu1 }
 0x188   : > { %v1248_v53 = vadd.f32 %v2801_v63, %v1247_v51  ;;  %v1504_v54 = vadd.f32 %v2801_v63, %v1503_v52  ;;  %v1249_v55 = vpop.f32.mrb[33].mxu0  ;;  %v1505_v56 = vpop.f32.mrb[33].mxu1 }
 0x189   : > { %v1250_v57 = vpop.f32.mrb[34].mxu0  ;;  %v1506_v58 = vpop.f32.mrb[34].mxu1 }
 0x18a   : > { %1711 = vst.msk [vmem:[%s2806_s4 + $0x80] sm:$0xff] %vm1694_vm0, %v1248_v53  ;;  %1775 = vst.msk [vmem:[%s2806_s4 + $0x280] sm:$0xff] %vm1694_vm0, %v1504_v54  ;;  %v1251_v59 = vadd.f32 %v2801_v63, %v1250_v57  ;;  %v1507_v60 = vadd.f32 %v2801_v63, %v1506_v58  ;;  %v1252_v61 = vpop.f32.mrb[35].mxu0  ;;  %v1508_v62 = vpop.f32.mrb[35].mxu1 }
 0x18c   : > { %1712 = vst.msk [vmem:[%s2806_s4 + $0x88] sm:$0xff] %vm1694_vm0, %v1251_v59  ;;  %1776 = vst.msk [vmem:[%s2806_s4 + $0x288] sm:$0xff] %vm1694_vm0, %v1507_v60 }
 0x18f   : > { %v1255_v0 = vpop.f32.mrb[36].mxu0  ;;  %v1511_v1 = vpop.f32.mrb[36].mxu1 }
 0x190   : > { %v1256_v2 = vadd.f32 %v2801_v63, %v1255_v0  ;;  %v1512_v3 = vadd.f32 %v2801_v63, %v1511_v1  ;;  %v1257_v4 = vpop.f32.mrb[37].mxu0  ;;  %v1513_v5 = vpop.f32.mrb[37].mxu1 }
 0x191   : > { %v1258_v6 = vpop.f32.mrb[38].mxu0  ;;  %v1514_v7 = vpop.f32.mrb[38].mxu1 }
 0x192   : > { %1713 = vst.msk [vmem:[%s2806_s4 + $0x90] sm:$0xff] %vm1694_vm0, %v1256_v2  ;;  %1777 = vst.msk [vmem:[%s2806_s4 + $0x290] sm:$0xff] %vm1694_vm0, %v1512_v3  ;;  %v1259_v8 = vadd.f32 %v2801_v63, %v1258_v6  ;;  %v1515_v9 = vadd.f32 %v2801_v63, %v1514_v7  ;;  %v1260_v10 = vpop.f32.mrb[39].mxu0  ;;  %v1516_v11 = vpop.f32.mrb[39].mxu1 }
 0x194   : > { %1714 = vst.msk [vmem:[%s2806_s4 + $0x98] sm:$0xff] %vm1694_vm0, %v1259_v8  ;;  %1778 = vst.msk [vmem:[%s2806_s4 + $0x298] sm:$0xff] %vm1694_vm0, %v1515_v9 }
 0x197   : > { %v1263_v12 = vpop.f32.mrb[40].mxu0  ;;  %v1519_v13 = vpop.f32.mrb[40].mxu1 }
 0x198   : > { %v1264_v14 = vadd.f32 %v2801_v63, %v1263_v12  ;;  %v1520_v15 = vadd.f32 %v2801_v63, %v1519_v13  ;;  %v1265_v16 = vpop.f32.mrb[41].mxu0  ;;  %v1521_v17 = vpop.f32.mrb[41].mxu1 }
 0x199   : > { %v1266_v18 = vpop.f32.mrb[42].mxu0  ;;  %v1522_v19 = vpop.f32.mrb[42].mxu1 }
 0x19a   : > { %1715 = vst.msk [vmem:[%s2806_s4 + $0xa0] sm:$0xff] %vm1694_vm0, %v1264_v14  ;;  %1779 = vst.msk [vmem:[%s2806_s4 + $0x2a0] sm:$0xff] %vm1694_vm0, %v1520_v15  ;;  %v1267_v20 = vadd.f32 %v2801_v63, %v1266_v18  ;;  %v1523_v21 = vadd.f32 %v2801_v63, %v1522_v19  ;;  %v1268_v22 = vpop.f32.mrb[43].mxu0  ;;  %v1524_v23 = vpop.f32.mrb[43].mxu1 }
 0x19c   : > { %1716 = vst.msk [vmem:[%s2806_s4 + $0xa8] sm:$0xff] %vm1694_vm0, %v1267_v20  ;;  %1780 = vst.msk [vmem:[%s2806_s4 + $0x2a8] sm:$0xff] %vm1694_vm0, %v1523_v21 }
 0x19f   : > { %v1271_v24 = vpop.f32.mrb[44].mxu0  ;;  %v1527_v25 = vpop.f32.mrb[44].mxu1 }
 0x1a0   : > { %v1272_v26 = vadd.f32 %v2801_v63, %v1271_v24  ;;  %v1528_v27 = vadd.f32 %v2801_v63, %v1527_v25  ;;  %v1273_v28 = vpop.f32.mrb[45].mxu0  ;;  %v1529_v29 = vpop.f32.mrb[45].mxu1 }
 0x1a1   : > { %v1274_v30 = vpop.f32.mrb[46].mxu0  ;;  %v1530_v31 = vpop.f32.mrb[46].mxu1 }
 0x1a2   : > { %1717 = vst.msk [vmem:[%s2806_s4 + $0xb0] sm:$0xff] %vm1694_vm0, %v1272_v26  ;;  %1781 = vst.msk [vmem:[%s2806_s4 + $0x2b0] sm:$0xff] %vm1694_vm0, %v1528_v27  ;;  %v1275_v32 = vadd.f32 %v2801_v63, %v1274_v30  ;;  %v1531_v33 = vadd.f32 %v2801_v63, %v1530_v31  ;;  %v1276_v34 = vpop.f32.mrb[47].mxu0  ;;  %v1532_v35 = vpop.f32.mrb[47].mxu1 }
 0x1a4   : > { %1718 = vst.msk [vmem:[%s2806_s4 + $0xb8] sm:$0xff] %vm1694_vm0, %v1275_v32  ;;  %1782 = vst.msk [vmem:[%s2806_s4 + $0x2b8] sm:$0xff] %vm1694_vm0, %v1531_v33 }
 0x1a7   : > { %v1279_v36 = vpop.f32.mrb[48].mxu0  ;;  %v1535_v37 = vpop.f32.mrb[48].mxu1 }
 0x1a8   : > { %v1280_v38 = vadd.f32 %v2801_v63, %v1279_v36  ;;  %v1536_v39 = vadd.f32 %v2801_v63, %v1535_v37  ;;  %v1281_v40 = vpop.f32.mrb[49].mxu0  ;;  %v1537_v41 = vpop.f32.mrb[49].mxu1 }
 0x1a9   : > { %v1282_v42 = vpop.f32.mrb[50].mxu0  ;;  %v1538_v43 = vpop.f32.mrb[50].mxu1 }
 0x1aa   : > { %1719 = vst.msk [vmem:[%s2806_s4 + $0xc0] sm:$0xff] %vm1694_vm0, %v1280_v38  ;;  %1783 = vst.msk [vmem:[%s2806_s4 + $0x2c0] sm:$0xff] %vm1694_vm0, %v1536_v39  ;;  %v1283_v44 = vadd.f32 %v2801_v63, %v1282_v42  ;;  %v1539_v45 = vadd.f32 %v2801_v63, %v1538_v43  ;;  %v1284_v46 = vpop.f32.mrb[51].mxu0  ;;  %v1540_v47 = vpop.f32.mrb[51].mxu1 }
 0x1ac   : > { %1720 = vst.msk [vmem:[%s2806_s4 + $0xc8] sm:$0xff] %vm1694_vm0, %v1283_v44  ;;  %1784 = vst.msk [vmem:[%s2806_s4 + $0x2c8] sm:$0xff] %vm1694_vm0, %v1539_v45 }
 0x1af   : > { %v1287_v48 = vpop.f32.mrb[52].mxu0  ;;  %v1543_v49 = vpop.f32.mrb[52].mxu1 }
 0x1b0   : > { %v1288_v50 = vadd.f32 %v2801_v63, %v1287_v48  ;;  %v1544_v51 = vadd.f32 %v2801_v63, %v1543_v49  ;;  %v1289_v52 = vpop.f32.mrb[53].mxu0  ;;  %v1545_v53 = vpop.f32.mrb[53].mxu1 }
 0x1b1   : > { %v1290_v54 = vpop.f32.mrb[54].mxu0  ;;  %v1546_v55 = vpop.f32.mrb[54].mxu1 }
 0x1b2   : > { %1721 = vst.msk [vmem:[%s2806_s4 + $0xd0] sm:$0xff] %vm1694_vm0, %v1288_v50  ;;  %1785 = vst.msk [vmem:[%s2806_s4 + $0x2d0] sm:$0xff] %vm1694_vm0, %v1544_v51  ;;  %v1291_v56 = vadd.f32 %v2801_v63, %v1290_v54  ;;  %v1547_v57 = vadd.f32 %v2801_v63, %v1546_v55  ;;  %v1292_v58 = vpop.f32.mrb[55].mxu0  ;;  %v1548_v59 = vpop.f32.mrb[55].mxu1 }
 0x1b4   : > { %1722 = vst.msk [vmem:[%s2806_s4 + $0xd8] sm:$0xff] %vm1694_vm0, %v1291_v56  ;;  %1786 = vst.msk [vmem:[%s2806_s4 + $0x2d8] sm:$0xff] %vm1694_vm0, %v1547_v57 }
 0x1b7   : > { %v1295_v60 = vpop.f32.mrb[56].mxu0  ;;  %v1551_v61 = vpop.f32.mrb[56].mxu1 }
 0x1b8   : > { %v1296_v62 = vadd.f32 %v2801_v63, %v1295_v60  ;;  %v1552_v0 = vadd.f32 %v2801_v63, %v1551_v61  ;;  %v1297_v1 = vpop.f32.mrb[57].mxu0  ;;  %v1553_v2 = vpop.f32.mrb[57].mxu1 }
 0x1b9   : > { %v1298_v3 = vpop.f32.mrb[58].mxu0  ;;  %v1554_v4 = vpop.f32.mrb[58].mxu1 }
 0x1ba   : > { %1723 = vst.msk [vmem:[%s2806_s4 + $0xe0] sm:$0xff] %vm1694_vm0, %v1296_v62  ;;  %1787 = vst.msk [vmem:[%s2806_s4 + $0x2e0] sm:$0xff] %vm1694_vm0, %v1552_v0  ;;  %v1299_v5 = vadd.f32 %v2801_v63, %v1298_v3  ;;  %v1555_v6 = vadd.f32 %v2801_v63, %v1554_v4  ;;  %v1300_v7 = vpop.f32.mrb[59].mxu0  ;;  %v1556_v8 = vpop.f32.mrb[59].mxu1 }
 0x1bc   : > { %1724 = vst.msk [vmem:[%s2806_s4 + $0xe8] sm:$0xff] %vm1694_vm0, %v1299_v5  ;;  %1788 = vst.msk [vmem:[%s2806_s4 + $0x2e8] sm:$0xff] %vm1694_vm0, %v1555_v6 }
 0x1bf   : > { %v1303_v9 = vpop.f32.mrb[60].mxu0  ;;  %v1559_v10 = vpop.f32.mrb[60].mxu1 }
 0x1c0   : > { %v1304_v11 = vadd.f32 %v2801_v63, %v1303_v9  ;;  %v1560_v12 = vadd.f32 %v2801_v63, %v1559_v10  ;;  %v1305_v13 = vpop.f32.mrb[61].mxu0  ;;  %v1561_v14 = vpop.f32.mrb[61].mxu1 }
 0x1c1   : > { %v1306_v15 = vpop.f32.mrb[62].mxu0  ;;  %v1562_v16 = vpop.f32.mrb[62].mxu1 }
 0x1c2   : > { %1725 = vst.msk [vmem:[%s2806_s4 + $0xf0] sm:$0xff] %vm1694_vm0, %v1304_v11  ;;  %1789 = vst.msk [vmem:[%s2806_s4 + $0x2f0] sm:$0xff] %vm1694_vm0, %v1560_v12  ;;  %v1307_v17 = vadd.f32 %v2801_v63, %v1306_v15  ;;  %v1563_v18 = vadd.f32 %v2801_v63, %v1562_v16  ;;  %v1308_v19 = vpop.f32.mrb[63].mxu0  ;;  %v1564_v20 = vpop.f32.mrb[63].mxu1 }
 0x1c4   : > { %1726 = vst.msk [vmem:[%s2806_s4 + $0xf8] sm:$0xff] %vm1694_vm0, %v1307_v17  ;;  %1790 = vst.msk [vmem:[%s2806_s4 + $0x2f8] sm:$0xff] %vm1694_vm0, %v1563_v18 }
 0x1c7   : > { %v1311_v21 = vpop.f32.mrb[64].mxu0  ;;  %v1567_v22 = vpop.f32.mrb[64].mxu1 }
 0x1c8   : > { %v1312_v23 = vadd.f32 %v2801_v63, %v1311_v21  ;;  %v1568_v24 = vadd.f32 %v2801_v63, %v1567_v22  ;;  %v1313_v25 = vpop.f32.mrb[65].mxu0  ;;  %v1569_v26 = vpop.f32.mrb[65].mxu1 }
 0x1c9   : > { %v1314_v27 = vpop.f32.mrb[66].mxu0  ;;  %v1570_v28 = vpop.f32.mrb[66].mxu1 }
 0x1ca   : > { %1727 = vst.msk [vmem:[%s2806_s4 + $0x100] sm:$0xff] %vm1694_vm0, %v1312_v23  ;;  %1791 = vst.msk [vmem:[%s2806_s4 + $0x300] sm:$0xff] %vm1694_vm0, %v1568_v24  ;;  %v1315_v29 = vadd.f32 %v2801_v63, %v1314_v27  ;;  %v1571_v30 = vadd.f32 %v2801_v63, %v1570_v28  ;;  %v1316_v31 = vpop.f32.mrb[67].mxu0  ;;  %v1572_v32 = vpop.f32.mrb[67].mxu1 }
 0x1cc   : > { %1728 = vst.msk [vmem:[%s2806_s4 + $0x108] sm:$0xff] %vm1694_vm0, %v1315_v29  ;;  %1792 = vst.msk [vmem:[%s2806_s4 + $0x308] sm:$0xff] %vm1694_vm0, %v1571_v30 }
 0x1cf   : > { %v1319_v33 = vpop.f32.mrb[68].mxu0  ;;  %v1575_v34 = vpop.f32.mrb[68].mxu1 }
 0x1d0   : > { %v1320_v35 = vadd.f32 %v2801_v63, %v1319_v33  ;;  %v1576_v36 = vadd.f32 %v2801_v63, %v1575_v34  ;;  %v1321_v37 = vpop.f32.mrb[69].mxu0  ;;  %v1577_v38 = vpop.f32.mrb[69].mxu1 }
 0x1d1   : > { %v1322_v39 = vpop.f32.mrb[70].mxu0  ;;  %v1578_v40 = vpop.f32.mrb[70].mxu1 }
 0x1d2   : > { %1729 = vst.msk [vmem:[%s2806_s4 + $0x110] sm:$0xff] %vm1694_vm0, %v1320_v35  ;;  %1793 = vst.msk [vmem:[%s2806_s4 + $0x310] sm:$0xff] %vm1694_vm0, %v1576_v36  ;;  %v1323_v41 = vadd.f32 %v2801_v63, %v1322_v39  ;;  %v1579_v42 = vadd.f32 %v2801_v63, %v1578_v40  ;;  %v1324_v43 = vpop.f32.mrb[71].mxu0  ;;  %v1580_v44 = vpop.f32.mrb[71].mxu1 }
 0x1d4   : > { %1730 = vst.msk [vmem:[%s2806_s4 + $0x118] sm:$0xff] %vm1694_vm0, %v1323_v41  ;;  %1794 = vst.msk [vmem:[%s2806_s4 + $0x318] sm:$0xff] %vm1694_vm0, %v1579_v42 }
 0x1d7   : > { %v1327_v45 = vpop.f32.mrb[72].mxu0  ;;  %v1583_v46 = vpop.f32.mrb[72].mxu1 }
 0x1d8   : > { %v1328_v47 = vadd.f32 %v2801_v63, %v1327_v45  ;;  %v1584_v48 = vadd.f32 %v2801_v63, %v1583_v46  ;;  %v1329_v49 = vpop.f32.mrb[73].mxu0  ;;  %v1585_v50 = vpop.f32.mrb[73].mxu1 }
 0x1d9   : > { %v1330_v51 = vpop.f32.mrb[74].mxu0  ;;  %v1586_v52 = vpop.f32.mrb[74].mxu1 }
 0x1da   : > { %1731 = vst.msk [vmem:[%s2806_s4 + $0x120] sm:$0xff] %vm1694_vm0, %v1328_v47  ;;  %1795 = vst.msk [vmem:[%s2806_s4 + $0x320] sm:$0xff] %vm1694_vm0, %v1584_v48  ;;  %v1331_v53 = vadd.f32 %v2801_v63, %v1330_v51  ;;  %v1587_v54 = vadd.f32 %v2801_v63, %v1586_v52  ;;  %v1332_v55 = vpop.f32.mrb[75].mxu0  ;;  %v1588_v56 = vpop.f32.mrb[75].mxu1 }
 0x1dc   : > { %1732 = vst.msk [vmem:[%s2806_s4 + $0x128] sm:$0xff] %vm1694_vm0, %v1331_v53  ;;  %1796 = vst.msk [vmem:[%s2806_s4 + $0x328] sm:$0xff] %vm1694_vm0, %v1587_v54 }
 0x1df   : > { %v1335_v57 = vpop.f32.mrb[76].mxu0  ;;  %v1591_v58 = vpop.f32.mrb[76].mxu1 }
 0x1e0   : > { %v1336_v59 = vadd.f32 %v2801_v63, %v1335_v57  ;;  %v1592_v60 = vadd.f32 %v2801_v63, %v1591_v58  ;;  %v1337_v61 = vpop.f32.mrb[77].mxu0  ;;  %v1593_v62 = vpop.f32.mrb[77].mxu1 }
 0x1e1   : > { %v1338_v0 = vpop.f32.mrb[78].mxu0  ;;  %v1594_v1 = vpop.f32.mrb[78].mxu1 }
 0x1e2   : > { %1733 = vst.msk [vmem:[%s2806_s4 + $0x130] sm:$0xff] %vm1694_vm0, %v1336_v59  ;;  %1797 = vst.msk [vmem:[%s2806_s4 + $0x330] sm:$0xff] %vm1694_vm0, %v1592_v60  ;;  %v1339_v2 = vadd.f32 %v2801_v63, %v1338_v0  ;;  %v1595_v3 = vadd.f32 %v2801_v63, %v1594_v1  ;;  %v1340_v4 = vpop.f32.mrb[79].mxu0  ;;  %v1596_v5 = vpop.f32.mrb[79].mxu1 }
 0x1e4   : > { %1734 = vst.msk [vmem:[%s2806_s4 + $0x138] sm:$0xff] %vm1694_vm0, %v1339_v2  ;;  %1798 = vst.msk [vmem:[%s2806_s4 + $0x338] sm:$0xff] %vm1694_vm0, %v1595_v3 }
 0x1e7   : > { %v1343_v6 = vpop.f32.mrb[80].mxu0  ;;  %v1599_v7 = vpop.f32.mrb[80].mxu1 }
 0x1e8   : > { %v1344_v8 = vadd.f32 %v2801_v63, %v1343_v6  ;;  %v1600_v9 = vadd.f32 %v2801_v63, %v1599_v7  ;;  %v1345_v10 = vpop.f32.mrb[81].mxu0  ;;  %v1601_v11 = vpop.f32.mrb[81].mxu1 }
 0x1e9   : > { %v1346_v12 = vpop.f32.mrb[82].mxu0  ;;  %v1602_v13 = vpop.f32.mrb[82].mxu1 }
 0x1ea   : > { %1735 = vst.msk [vmem:[%s2806_s4 + $0x140] sm:$0xff] %vm1694_vm0, %v1344_v8  ;;  %1799 = vst.msk [vmem:[%s2806_s4 + $0x340] sm:$0xff] %vm1694_vm0, %v1600_v9  ;;  %v1347_v14 = vadd.f32 %v2801_v63, %v1346_v12  ;;  %v1603_v15 = vadd.f32 %v2801_v63, %v1602_v13  ;;  %v1348_v16 = vpop.f32.mrb[83].mxu0  ;;  %v1604_v17 = vpop.f32.mrb[83].mxu1 }
 0x1ec   : > { %1736 = vst.msk [vmem:[%s2806_s4 + $0x148] sm:$0xff] %vm1694_vm0, %v1347_v14  ;;  %1800 = vst.msk [vmem:[%s2806_s4 + $0x348] sm:$0xff] %vm1694_vm0, %v1603_v15 }
 0x1ef   : > { %v1351_v18 = vpop.f32.mrb[84].mxu0  ;;  %v1607_v19 = vpop.f32.mrb[84].mxu1 }
 0x1f0   : > { %v1352_v20 = vadd.f32 %v2801_v63, %v1351_v18  ;;  %v1608_v21 = vadd.f32 %v2801_v63, %v1607_v19  ;;  %v1353_v22 = vpop.f32.mrb[85].mxu0  ;;  %v1609_v23 = vpop.f32.mrb[85].mxu1 }
 0x1f1   : > { %v1354_v24 = vpop.f32.mrb[86].mxu0  ;;  %v1610_v25 = vpop.f32.mrb[86].mxu1 }
 0x1f2   : > { %1737 = vst.msk [vmem:[%s2806_s4 + $0x150] sm:$0xff] %vm1694_vm0, %v1352_v20  ;;  %1801 = vst.msk [vmem:[%s2806_s4 + $0x350] sm:$0xff] %vm1694_vm0, %v1608_v21  ;;  %v1355_v26 = vadd.f32 %v2801_v63, %v1354_v24  ;;  %v1611_v27 = vadd.f32 %v2801_v63, %v1610_v25  ;;  %v1356_v28 = vpop.f32.mrb[87].mxu0  ;;  %v1612_v29 = vpop.f32.mrb[87].mxu1 }
 0x1f4   : > { %1738 = vst.msk [vmem:[%s2806_s4 + $0x158] sm:$0xff] %vm1694_vm0, %v1355_v26  ;;  %1802 = vst.msk [vmem:[%s2806_s4 + $0x358] sm:$0xff] %vm1694_vm0, %v1611_v27 }
 0x1f7   : > { %v1359_v30 = vpop.f32.mrb[88].mxu0  ;;  %v1615_v31 = vpop.f32.mrb[88].mxu1 }
 0x1f8   : > { %v1360_v32 = vadd.f32 %v2801_v63, %v1359_v30  ;;  %v1616_v33 = vadd.f32 %v2801_v63, %v1615_v31  ;;  %v1361_v34 = vpop.f32.mrb[89].mxu0  ;;  %v1617_v35 = vpop.f32.mrb[89].mxu1 }
 0x1f9   : > { %v1362_v36 = vpop.f32.mrb[90].mxu0  ;;  %v1618_v37 = vpop.f32.mrb[90].mxu1 }
 0x1fa   : > { %1739 = vst.msk [vmem:[%s2806_s4 + $0x160] sm:$0xff] %vm1694_vm0, %v1360_v32  ;;  %1803 = vst.msk [vmem:[%s2806_s4 + $0x360] sm:$0xff] %vm1694_vm0, %v1616_v33  ;;  %v1363_v38 = vadd.f32 %v2801_v63, %v1362_v36  ;;  %v1619_v39 = vadd.f32 %v2801_v63, %v1618_v37  ;;  %v1364_v40 = vpop.f32.mrb[91].mxu0  ;;  %v1620_v41 = vpop.f32.mrb[91].mxu1 }
 0x1fc   : > { %1740 = vst.msk [vmem:[%s2806_s4 + $0x168] sm:$0xff] %vm1694_vm0, %v1363_v38  ;;  %1804 = vst.msk [vmem:[%s2806_s4 + $0x368] sm:$0xff] %vm1694_vm0, %v1619_v39 }
 0x1ff   : > { %v1367_v42 = vpop.f32.mrb[92].mxu0  ;;  %v1623_v43 = vpop.f32.mrb[92].mxu1 }
 0x200   : > { %v1368_v44 = vadd.f32 %v2801_v63, %v1367_v42  ;;  %v1624_v45 = vadd.f32 %v2801_v63, %v1623_v43  ;;  %v1369_v46 = vpop.f32.mrb[93].mxu0  ;;  %v1625_v47 = vpop.f32.mrb[93].mxu1 }
 0x201   : > { %v1370_v48 = vpop.f32.mrb[94].mxu0  ;;  %v1626_v49 = vpop.f32.mrb[94].mxu1 }
 0x202   : > { %1741 = vst.msk [vmem:[%s2806_s4 + $0x170] sm:$0xff] %vm1694_vm0, %v1368_v44  ;;  %1805 = vst.msk [vmem:[%s2806_s4 + $0x370] sm:$0xff] %vm1694_vm0, %v1624_v45  ;;  %v1371_v50 = vadd.f32 %v2801_v63, %v1370_v48  ;;  %v1627_v51 = vadd.f32 %v2801_v63, %v1626_v49  ;;  %v1372_v52 = vpop.f32.mrb[95].mxu0  ;;  %v1628_v53 = vpop.f32.mrb[95].mxu1 }
 0x204   : > { %1742 = vst.msk [vmem:[%s2806_s4 + $0x178] sm:$0xff] %vm1694_vm0, %v1371_v50  ;;  %1806 = vst.msk [vmem:[%s2806_s4 + $0x378] sm:$0xff] %vm1694_vm0, %v1627_v51 }
 0x207   : > { %v1375_v54 = vpop.f32.mrb[96].mxu0  ;;  %v1631_v55 = vpop.f32.mrb[96].mxu1 }
 0x208   : > { %v1376_v56 = vadd.f32 %v2801_v63, %v1375_v54  ;;  %v1632_v57 = vadd.f32 %v2801_v63, %v1631_v55  ;;  %v1377_v58 = vpop.f32.mrb[97].mxu0  ;;  %v1633_v59 = vpop.f32.mrb[97].mxu1 }
 0x209   : > { %v1378_v60 = vpop.f32.mrb[98].mxu0  ;;  %v1634_v61 = vpop.f32.mrb[98].mxu1  ;;  %v2397_v59 = vld [vmem:[%s3223_s2] ss:$0 sm:$0xff] }
 0x20a   : > { %1743 = vst.msk [vmem:[%s2806_s4 + $0x180] sm:$0xff] %vm1694_vm0, %v1376_v56  ;;  %1807 = vst.msk [vmem:[%s2806_s4 + $0x380] sm:$0xff] %vm1694_vm0, %v1632_v57  ;;  %v1379_v62 = vadd.f32 %v2801_v63, %v1378_v60  ;;  %v1635_v0 = vadd.f32 %v2801_v63, %v1634_v61  ;;  %v1380_v1 = vpop.f32.mrb[99].mxu0  ;;  %v1636_v2 = vpop.f32.mrb[99].mxu1 }
 0x20c   : > { %1744 = vst.msk [vmem:[%s2806_s4 + $0x188] sm:$0xff] %vm1694_vm0, %v1379_v62  ;;  %1808 = vst.msk [vmem:[%s2806_s4 + $0x388] sm:$0xff] %vm1694_vm0, %v1635_v0 }
 0x20f   : > { %v1383_v3 = vpop.f32.mrb[100].mxu0  ;;  %v1639_v4 = vpop.f32.mrb[100].mxu1 }
 0x210   : > { %v1384_v5 = vadd.f32 %v2801_v63, %v1383_v3  ;;  %v1640_v6 = vadd.f32 %v2801_v63, %v1639_v4  ;;  %v1385_v7 = vpop.f32.mrb[101].mxu0  ;;  %v1641_v8 = vpop.f32.mrb[101].mxu1 }
 0x211   : > { %v1386_v9 = vpop.f32.mrb[102].mxu0  ;;  %v1642_v10 = vpop.f32.mrb[102].mxu1 }
 0x212   : > { %1745 = vst.msk [vmem:[%s2806_s4 + $0x190] sm:$0xff] %vm1694_vm0, %v1384_v5  ;;  %1809 = vst.msk [vmem:[%s2806_s4 + $0x390] sm:$0xff] %vm1694_vm0, %v1640_v6  ;;  %v1387_v11 = vadd.f32 %v2801_v63, %v1386_v9  ;;  %v1643_v12 = vadd.f32 %v2801_v63, %v1642_v10  ;;  %v1388_v13 = vpop.f32.mrb[103].mxu0  ;;  %v1644_v14 = vpop.f32.mrb[103].mxu1 }
 0x214   : > { %1746 = vst.msk [vmem:[%s2806_s4 + $0x198] sm:$0xff] %vm1694_vm0, %v1387_v11  ;;  %1810 = vst.msk [vmem:[%s2806_s4 + $0x398] sm:$0xff] %vm1694_vm0, %v1643_v12 }
 0x217   : > { %v1391_v15 = vpop.f32.mrb[104].mxu0  ;;  %v1647_v16 = vpop.f32.mrb[104].mxu1 }
 0x218   : > { %v1392_v17 = vadd.f32 %v2801_v63, %v1391_v15  ;;  %v1648_v18 = vadd.f32 %v2801_v63, %v1647_v16  ;;  %v1393_v19 = vpop.f32.mrb[105].mxu0  ;;  %v1649_v20 = vpop.f32.mrb[105].mxu1 }
 0x219   : > { %v1394_v21 = vpop.f32.mrb[106].mxu0  ;;  %v1650_v22 = vpop.f32.mrb[106].mxu1 }
 0x21a   : > { %1747 = vst.msk [vmem:[%s2806_s4 + $0x1a0] sm:$0xff] %vm1694_vm0, %v1392_v17  ;;  %1811 = vst.msk [vmem:[%s2806_s4 + $0x3a0] sm:$0xff] %vm1694_vm0, %v1648_v18  ;;  %v1395_v23 = vadd.f32 %v2801_v63, %v1394_v21  ;;  %v1651_v24 = vadd.f32 %v2801_v63, %v1650_v22  ;;  %v1396_v25 = vpop.f32.mrb[107].mxu0  ;;  %v1652_v26 = vpop.f32.mrb[107].mxu1 }
 0x21c   : > { %1748 = vst.msk [vmem:[%s2806_s4 + $0x1a8] sm:$0xff] %vm1694_vm0, %v1395_v23  ;;  %1812 = vst.msk [vmem:[%s2806_s4 + $0x3a8] sm:$0xff] %vm1694_vm0, %v1651_v24 }
 0x21f   : > { %v1399_v27 = vpop.f32.mrb[108].mxu0  ;;  %v1655_v28 = vpop.f32.mrb[108].mxu1 }
 0x220   : > { %v1400_v29 = vadd.f32 %v2801_v63, %v1399_v27  ;;  %v1656_v30 = vadd.f32 %v2801_v63, %v1655_v28  ;;  %v1401_v31 = vpop.f32.mrb[109].mxu0  ;;  %v1657_v32 = vpop.f32.mrb[109].mxu1 }
 0x221   : > { %v1402_v33 = vpop.f32.mrb[110].mxu0  ;;  %v1658_v34 = vpop.f32.mrb[110].mxu1 }
 0x222   : > { %1749 = vst.msk [vmem:[%s2806_s4 + $0x1b0] sm:$0xff] %vm1694_vm0, %v1400_v29  ;;  %1813 = vst.msk [vmem:[%s2806_s4 + $0x3b0] sm:$0xff] %vm1694_vm0, %v1656_v30  ;;  %v1403_v35 = vadd.f32 %v2801_v63, %v1402_v33  ;;  %v1659_v36 = vadd.f32 %v2801_v63, %v1658_v34  ;;  %v1404_v37 = vpop.f32.mrb[111].mxu0  ;;  %v1660_v38 = vpop.f32.mrb[111].mxu1 }
 0x224   : > { %1750 = vst.msk [vmem:[%s2806_s4 + $0x1b8] sm:$0xff] %vm1694_vm0, %v1403_v35  ;;  %1814 = vst.msk [vmem:[%s2806_s4 + $0x3b8] sm:$0xff] %vm1694_vm0, %v1659_v36 }
 0x227   : > { %v1407_v39 = vpop.f32.mrb[112].mxu0  ;;  %v1663_v40 = vpop.f32.mrb[112].mxu1 }
 0x228   : > { %v1408_v41 = vadd.f32 %v2801_v63, %v1407_v39  ;;  %v1664_v42 = vadd.f32 %v2801_v63, %v1663_v40  ;;  %v1409_v43 = vpop.f32.mrb[113].mxu0  ;;  %v1665_v44 = vpop.f32.mrb[113].mxu1 }
 0x229   : > { %v1410_v45 = vpop.f32.mrb[114].mxu0  ;;  %v1666_v46 = vpop.f32.mrb[114].mxu1 }
 0x22a   : > { %1751 = vst.msk [vmem:[%s2806_s4 + $0x1c0] sm:$0xff] %vm1694_vm0, %v1408_v41  ;;  %1815 = vst.msk [vmem:[%s2806_s4 + $0x3c0] sm:$0xff] %vm1694_vm0, %v1664_v42  ;;  %v1411_v47 = vadd.f32 %v2801_v63, %v1410_v45  ;;  %v1667_v48 = vadd.f32 %v2801_v63, %v1666_v46  ;;  %v1412_v49 = vpop.f32.mrb[115].mxu0  ;;  %v1668_v50 = vpop.f32.mrb[115].mxu1 }
 0x22c   : > { %1752 = vst.msk [vmem:[%s2806_s4 + $0x1c8] sm:$0xff] %vm1694_vm0, %v1411_v47  ;;  %1816 = vst.msk [vmem:[%s2806_s4 + $0x3c8] sm:$0xff] %vm1694_vm0, %v1667_v48 }
 0x22f   : > { %v1415_v51 = vpop.f32.mrb[116].mxu0  ;;  %v1671_v52 = vpop.f32.mrb[116].mxu1 }
 0x230   : > { %v1416_v53 = vadd.f32 %v2801_v63, %v1415_v51  ;;  %v1672_v54 = vadd.f32 %v2801_v63, %v1671_v52  ;;  %v1417_v55 = vpop.f32.mrb[117].mxu0  ;;  %v1673_v56 = vpop.f32.mrb[117].mxu1 }
 0x231   : > { %v1418_v57 = vpop.f32.mrb[118].mxu0  ;;  %v1674_v58 = vpop.f32.mrb[118].mxu1 }
 0x232   : > { %1753 = vst.msk [vmem:[%s2806_s4 + $0x1d0] sm:$0xff] %vm1694_vm0, %v1416_v53  ;;  %1817 = vst.msk [vmem:[%s2806_s4 + $0x3d0] sm:$0xff] %vm1694_vm0, %v1672_v54  ;;  %v1419_v60 = vadd.f32 %v2397_v59, %v1418_v57  ;;  %v1675_v61 = vadd.f32 %v2397_v59, %v1674_v58  ;;  %v1420_v62 = vpop.f32.mrb[119].mxu0  ;;  %v1676_v0 = vpop.f32.mrb[119].mxu1 }
 0x234   : > { %1754 = vst.msk [vmem:[%s2806_s4 + $0x1d8] sm:$0xff] %vm1694_vm0, %v1419_v60  ;;  %1818 = vst.msk [vmem:[%s2806_s4 + $0x3d8] sm:$0xff] %vm1694_vm0, %v1675_v61 }
 0x237   : > { %v1423_v63 = vpop.f32.mrb[120].mxu0  ;;  %v1679_v1 = vpop.f32.mrb[120].mxu1 }
 0x238   : > { %v1424_v2 = vadd.f32 %v2397_v59, %v1423_v63  ;;  %v1680_v3 = vadd.f32 %v2397_v59, %v1679_v1  ;;  %v1425_v4 = vpop.f32.mrb[121].mxu0  ;;  %v1681_v5 = vpop.f32.mrb[121].mxu1 }
 0x239   : > { %v1426_v6 = vpop.f32.mrb[122].mxu0  ;;  %v1682_v7 = vpop.f32.mrb[122].mxu1 }
 0x23a   : > { %1755 = vst.msk [vmem:[%s2806_s4 + $0x1e0] sm:$0xff] %vm1694_vm0, %v1424_v2  ;;  %1819 = vst.msk [vmem:[%s2806_s4 + $0x3e0] sm:$0xff] %vm1694_vm0, %v1680_v3  ;;  %v1427_v8 = vadd.f32 %v2397_v59, %v1426_v6  ;;  %v1683_v9 = vadd.f32 %v2397_v59, %v1682_v7  ;;  %v1428_v10 = vpop.f32.mrb[123].mxu0  ;;  %v1684_v11 = vpop.f32.mrb[123].mxu1 }
 0x23c   : > { %1756 = vst.msk [vmem:[%s2806_s4 + $0x1e8] sm:$0xff] %vm1694_vm0, %v1427_v8  ;;  %1820 = vst.msk [vmem:[%s2806_s4 + $0x3e8] sm:$0xff] %vm1694_vm0, %v1683_v9 }
 0x23f   : > { %v1431_v12 = vpop.f32.mrb[124].mxu0  ;;  %v1687_v13 = vpop.f32.mrb[124].mxu1 }
 0x240   : > { %v1432_v14 = vadd.f32 %v2397_v59, %v1431_v12  ;;  %v1688_v15 = vadd.f32 %v2397_v59, %v1687_v13  ;;  %v1433_v16 = vpop.f32.mrb[125].mxu0  ;;  %v1689_v17 = vpop.f32.mrb[125].mxu1 }
 0x241   : > { %v1434_v18 = vpop.f32.mrb[126].mxu0  ;;  %v1690_v19 = vpop.f32.mrb[126].mxu1 }
 0x242   : > { %1757 = vst.msk [vmem:[%s2806_s4 + $0x1f0] sm:$0xff] %vm1694_vm0, %v1432_v14  ;;  %1821 = vst.msk [vmem:[%s2806_s4 + $0x3f0] sm:$0xff] %vm1694_vm0, %v1688_v15  ;;  %v1435_v20 = vadd.f32 %v2397_v59, %v1434_v18  ;;  %v1691_v21 = vadd.f32 %v2397_v59, %v1690_v19  ;;  %v1436_v22 = vpop.f32.mrb[127].mxu0  ;;  %v1692_v23 = vpop.f32.mrb[127].mxu1 }
 0x244   : > { %1758 = vst.msk [vmem:[%s2806_s4 + $0x1f8] sm:$0xff] %vm1694_vm0, %v1435_v20  ;;  %1822 = vst.msk [vmem:[%s2806_s4 + $0x3f8] sm:$0xff] %vm1694_vm0, %v1691_v21 }
 0x245 PF: > { %s16_s17 = sadd.s32 1, %s2478_s17   ;;  %s3228_s12 = smov %s2462_s13 }
 0x246   : > { %p13_p9 = scmp.ge.s32.totalorder %s16_s17, 4   ;;  %s3229_s13 = smov %s2466_s14 }
 0x247   : > { %s3230_s14 = smov %s2553_s24  ;;  %s3231_s15 = smov %s2474_s16 }
 0x248   : > { %s3232_s16 = smov %s3234_s19  ;;  %15 = sbr.rel (!%p13_p9) target bundleno = 4 (0x4), region = 78 }
 0x24f   :  { %1851 = vsyncpa [#allocation3], 1 }
 0x250   :  { %1853 = vsyncpa [#allocation3 + $0x1], 1 }

</bundles_post_ra>
